<compile_context>
chip_gen: v6e
topology: v6e:2x2x1
jax: 0.10.0
libtpu: 0.0.40
codegen_flags: <defaults>
</compile_context>

<pallas_src>
import jax
import jax.numpy as jnp
from jax import lax
from jax.experimental import pallas as pl
from jax.experimental.pallas import tpu as pltpu

# ----------------------------- model dimensions -----------------------------
H0 = W0 = 28                 # input spatial (28x28 implied by conv3 k=4)
K1, C1 = 5, 6                # conv1: 1 -> 6
K2, C2 = 5, 16               # conv2: 6 -> 16
K3, C3 = 4, 120              # conv3: 16 -> 120
F1, F2 = 84, 10              # fc1 / fc2 widths

H1 = H0 - K1 + 1             # 24   conv1 output spatial
P1 = H1 // 2                 # 12   pooled1 spatial
H2 = P1 - K2 + 1             # 8    conv2 output spatial
P2 = H2 // 2                 # 4    pooled2 spatial

C1P = 8                      # conv1 out-channels padded to a sublane tile
CIP = 8                      # conv2 in-channels padded (6 -> 8)

XLANES = 896                 # padded flattened input lanes (>= 671 + 116 + 1)
L1 = H1 * W0                 # 672  conv1 full-width lanes (oh*28 + ow)
M1 = L1 - (W0 + 1)           # 643  pool1 max-slab width
N1 = P1 * P1                 # 144  pooled1 lanes (ph*12 + pw)
P1PAD = 256                  # pooled1 padded lane width (>= 4*12 + 4 + 96)
L2 = H2 * P1                 # 96   conv2 full-width lanes (oh*12 + ow)
M2 = L2 - (P1 + 1)           # 83   pool2 max-slab width
N2 = P2 * P2                 # 16   pooled2 lanes (ph*4 + pw)
OUT_LANES = 128              # lane-dense logits (10 valid, zero padded)

_HIGH = jax.lax.Precision.HIGHEST   # reference only


# ------------------------------ fused kernel --------------------------------
def _make_kernel(tb):
    """Build the fused LeNet5 kernel for a batch tile of `tb` images."""
    f32, bf16 = jnp.float32, jnp.bfloat16

    def mxu(a, b):
        # bf16 operands, f32 accumulate: one MXU pass (vs 6 with HIGHEST f32).
        return jnp.dot(a.astype(bf16), b.astype(bf16),
                       preferred_element_type=f32)

    def kernel(x_ref, s1_ref, s2_ref,
               w1_ref, b1_ref, w2_ref, b2_ref, w3_ref, b3_ref,
               w4_ref, b4_ref, w5t_ref, b5_ref, out_ref):
        w1 = w1_ref[...]                                     # (8, 25)  f32
        b1 = b1_ref[...]                                     # (8, 1)
        s1 = s1_ref[...]                                     # (643, 144) bf16
        s2 = s2_ref[...]                                     # (83, 16)  bf16
        w2 = w2_ref[...]                                     # (16, 200) bf16
        b2 = b2_ref[...]                                     # (16, 1)

        cols = []
        for bi in range(tb):
            # --- conv1 (1->6, 5x5) + ReLU: C_in == 1 -> f32 VPU FMAs -------
            acc1 = jnp.zeros((C1P, L1), f32)
            for i in range(K1):
                for j in range(K1):
                    t = i * K1 + j
                    off = i * W0 + j
                    row = x_ref[bi, :, off:off + L1]          # (1, 672)
                    acc1 = acc1 + w1[:, t:t + 1] * row        # (8, 672)
            acc1 = jnp.maximum(acc1 + b1, 0.0)

            # --- fused 2x2 max-pool: max of 4 shifted slabs + 0/1 gather ---
            m1 = jnp.maximum(
                jnp.maximum(acc1[:, 0:M1], acc1[:, 1:1 + M1]),
                jnp.maximum(acc1[:, W0:W0 + M1], acc1[:, W0 + 1:W0 + 1 + M1]))
            p1 = mxu(m1, s1)                                  # (8, 144) f32
            p1 = jnp.concatenate(
                [p1, jnp.zeros((C1P, P1PAD - N1), f32)], axis=1)   # (8, 256)

            # --- conv2 (6->16, 5x5) + ReLU: ONE fused K=200 MXU matmul -----
            xcol2 = jnp.concatenate(
                [p1[:, i * P1 + j:i * P1 + j + L2]
                 for i in range(K2) for j in range(K2)], axis=0)   # (200, 96)
            acc2 = jnp.maximum(mxu(w2, xcol2) + b2, 0.0)      # (16, 96)

            # --- fused 2x2 max-pool ----------------------------------------
            m2 = jnp.maximum(
                jnp.maximum(acc2[:, 0:M2], acc2[:, 1:1 + M2]),
                jnp.maximum(acc2[:, P1:P1 + M2], acc2[:, P1 + 1:P1 + 1 + M2]))
            p2 = mxu(m2, s2)                                  # (16, 16) f32

            # --- conv3 patch column: (256, 1), tap-major / channel-minor ---
            cols.append(jnp.concatenate(
                [p2[:, t:t + 1] for t in range(K3 * K3)], axis=0))

        v = cols[0] if tb == 1 else jnp.concatenate(cols, axis=1)  # (256, TB)

        # --- conv3 (16->120, 4x4 -> 1x1) + ReLU: one (120,256)x(256,TB) ----
        y3 = jnp.maximum(mxu(w3_ref[...], v) + b3_ref[...], 0.0)   # (120, TB)
        # F.avg_pool2d(x, 1) over a 1x1 map is the identity -> no-op.

        # --- fc1 + ReLU ------------------------------------------------------
        y4 = jnp.maximum(mxu(w4_ref[...], y3) + b4_ref[...], 0.0)  # (84, TB)

        # --- fc2: transposed contraction so logits land on the LANE axis ----
        logits = lax.dot_general(
            y4.astype(jnp.bfloat16), w5t_ref[...],
            (((0,), (0,)), ((), ())),
            preferred_element_type=f32) + b5_ref[...]              # (TB, 10)

        out_ref[:, 0, :] = jnp.concatenate(
            [logits, jnp.zeros((tb, OUT_LANES - F2), f32)], axis=1)

    return kernel


# --------------------------- parameter preparation ---------------------------
def _pool_select(n_in, w_in, p_out):
    """0/1 gather matrix: column n=(ph*p_out+pw) selects lane 2*w_in*ph+2*pw."""
    n = jnp.arange(p_out * p_out)
    src = 2 * w_in * (n // p_out) + 2 * (n % p_out)
    return (jnp.arange(n_in)[:, None] == src[None, :]).astype(jnp.float32)


def init_params(key):
    """PyTorch-default-style uniform init, stored in PyTorch layouts."""
    def uniform(k, shape, fan_in):
        bound = 1.0 / jnp.sqrt(jnp.float32(fan_in))
        return jax.random.uniform(k, shape, jnp.float32, -bound, bound)

    ks = jax.random.split(key, 10)
    return {
        "conv1_w": uniform(ks[0], (C1, 1, K1, K1), 1 * K1 * K1),
        "conv1_b": uniform(ks[1], (C1,), 1 * K1 * K1),
        "conv2_w": uniform(ks[2], (C2, C1, K2, K2), C1 * K2 * K2),
        "conv2_b": uniform(ks[3], (C2,), C1 * K2 * K2),
        "conv3_w": uniform(ks[4], (C3, C2, K3, K3), C2 * K3 * K3),
        "conv3_b": uniform(ks[5], (C3,), C2 * K3 * K3),
        "fc1_w": uniform(ks[6], (F1, C3), C3),
        "fc1_b": uniform(ks[7], (F1,), C3),
        "fc2_w": uniform(ks[8], (F2, F1), F1),
        "fc2_b": uniform(ks[9], (F2,), F1),
    }


def prepare_params(p):
    """One-time repack of weights into kernel layouts (hoisted out of forward).

    Matmul operands are stored in bf16 (single MXU pass, half the DMA bytes);
    biases and the conv1 (VPU) weights stay f32.
    """
    f32, bf16 = jnp.float32, jnp.bfloat16
    w1 = jnp.pad(p["conv1_w"].astype(f32).reshape(C1, K1 * K1),
                 ((0, C1P - C1), (0, 0)))                        # (8, 25)
    b1 = jnp.pad(p["conv1_b"].astype(f32), (0, C1P - C1)).reshape(C1P, 1)
    w2 = jnp.transpose(p["conv2_w"].astype(f32), (0, 2, 3, 1))   # (16,5,5,6)
    w2 = jnp.pad(w2, ((0, 0), (0, 0), (0, 0), (0, CIP - C1)))    # (16,5,5,8)
    w2 = w2.reshape(C2, K2 * K2 * CIP)                           # (16, 200)
    b2 = p["conv2_b"].astype(f32).reshape(C2, 1)
    w3 = jnp.transpose(p["conv3_w"].astype(f32), (0, 2, 3, 1))   # (120,4,4,16)
    w3 = w3.reshape(C3, K3 * K3 * C2)                            # (120, 256)
    b3 = p["conv3_b"].astype(f32).reshape(C3, 1)
    return {
        "w1": w1, "b1": b1,
        "w2": w2.astype(bf16), "b2": b2,
        "w3": w3.astype(bf16), "b3": b3,
        "w4": p["fc1_w"].astype(bf16),                           # (84, 120)
        "b4": p["fc1_b"].astype(f32).reshape(F1, 1),
        "w5t": p["fc2_w"].astype(bf16).T,                        # (84, 10)
        "b5": p["fc2_b"].astype(f32).reshape(1, F2),
        "s1": _pool_select(M1, W0, P1).astype(bf16),             # (643, 144)
        "s2": _pool_select(M2, P1, P2).astype(bf16),             # (83, 16)
    }


# --------------------------------- forward ----------------------------------
@jax.jit
def lenet5_forward(prepped, x_nchw):
    """Forward pass matching the PyTorch LeNet5.forward semantics."""
    B = x_nchw.shape[0]
    # Batch tile: amortize per-step overhead / fill MXU N, but keep grid >= 2
    # so both v7x TensorCores get work.  (TB can be raised for large batches;
    # per-step VMEM footprint is only a few MiB even at TB=128.)
    tb = 8 if B >= 16 else max(1, B // 2)
    g = pl.cdiv(B, tb)
    bp = g * tb

    x = x_nchw.astype(jnp.float32).reshape(B, 1, H0 * W0)
    x = jnp.pad(x, ((0, bp - B), (0, 0), (0, XLANES - H0 * W0)))

    def full(shape):
        return pl.BlockSpec(shape, lambda i: (0,) * len(shape))

    out = pl.pallas_call(
        _make_kernel(tb),
        out_shape=jax.ShapeDtypeStruct((bp, 1, OUT_LANES), jnp.float32),
        grid_spec=pltpu.PrefetchScalarGridSpec(
            num_scalar_prefetch=0,
            grid=(g,),
            in_specs=[
                pl.BlockSpec((tb, 1, XLANES), lambda i: (i, 0, 0)),  # images
                full((M1, N1)), full((M2, N2)),                      # pool gathers
                full((C1P, K1 * K1)), full((C1P, 1)),                # conv1 w, b
                full((C2, K2 * K2 * CIP)), full((C2, 1)),            # conv2 w, b
                full((C3, K3 * K3 * C2)), full((C3, 1)),             # conv3 w, b
                full((F1, C3)), full((F1, 1)),                       # fc1 w, b
                full((F1, F2)), full((1, F2)),                       # fc2 w^T, b
            ],
            out_specs=pl.BlockSpec((tb, 1, OUT_LANES), lambda i: (i, 0, 0)),
        ),
        compiler_params=pltpu.CompilerParams(
            dimension_semantics=("parallel",)),
    )(x, prepped["s1"], prepped["s2"],
      prepped["w1"], prepped["b1"], prepped["w2"], prepped["b2"],
      prepped["w3"], prepped["b3"], prepped["w4"], prepped["b4"],
      prepped["w5t"], prepped["b5"])
    return out[:B, 0, :F2]


# ------------------------- plain-JAX reference (check) -----------------------
def lenet5_reference(p, x_nchw):
    x = x_nchw.astype(jnp.float32)

    def conv(x, w, b):
        y = lax.conv_general_dilated(
            x, w, window_strides=(1, 1), padding="VALID",
            dimension_numbers=("NCHW", "OIHW", "NCHW"), precision=_HIGH)
        return y + b.reshape(1, -1, 1, 1)

    def maxpool2(x):
        return lax.reduce_window(x, -jnp.inf, lax.max,
                                 (1, 1, 2, 2), (1, 1, 2, 2), "VALID")

    x = jax.nn.relu(conv(x, p["conv1_w"], p["conv1_b"]))
    x = maxpool2(x)
    x = jax.nn.relu(conv(x, p["conv2_w"], p["conv2_b"]))
    x = maxpool2(x)
    x = jax.nn.relu(conv(x, p["conv3_w"], p["conv3_b"]))
    x = x.reshape(-1, C3)                                        # view(-1, 120)
    x = jax.nn.relu(jnp.dot(x, p["fc1_w"].T, precision=_HIGH) + p["fc1_b"])
    return jnp.dot(x, p["fc2_w"].T, precision=_HIGH) + p["fc2_b"]


if __name__ == "__main__":
    key = jax.random.PRNGKey(0)
    k_params, k_x = jax.random.split(key)

    params = init_params(k_params)
    prepped = prepare_params(params)
    # LeNet5 with conv3 kernel_size=4 implies 28x28 single-channel input.
    x = jax.random.normal(k_x, (2, 1, H0, W0), dtype=jnp.float32)

    out = jax.block_until_ready(lenet5_forward(prepped, x))
    assert out.shape == (2, F2), out.shape

    ref = jax.block_until_ready(lenet5_reference(params, x))
    max_err = float(jnp.max(jnp.abs(out - ref)))
    # bf16 MXU operands give ~1e-3-level logit error vs the f32 reference;
    # 2.5e-2 keeps ~10x margin while still catching any structural bug.
    assert max_err < 2.5e-2, f"mismatch vs reference: max abs err = {max_err}"
    print("KERNEL_OK")
</pallas_src>

<mosaic_0001>
module attributes {stable_mosaic.version = 11 : i64} {
  func.func @kernel(%arg0: i32, %arg1: memref<1x1x896xf32, #tpu.memory_space<vmem>>, %arg2: memref<643x144xbf16, #tpu.memory_space<vmem>>, %arg3: memref<83x16xbf16, #tpu.memory_space<vmem>>, %arg4: memref<8x25xf32, #tpu.memory_space<vmem>>, %arg5: memref<8x1xf32, #tpu.memory_space<vmem>>, %arg6: memref<16x200xbf16, #tpu.memory_space<vmem>>, %arg7: memref<16x1xf32, #tpu.memory_space<vmem>>, %arg8: memref<120x256xbf16, #tpu.memory_space<vmem>>, %arg9: memref<120x1xf32, #tpu.memory_space<vmem>>, %arg10: memref<84x120xbf16, #tpu.memory_space<vmem>>, %arg11: memref<84x1xf32, #tpu.memory_space<vmem>>, %arg12: memref<84x10xbf16, #tpu.memory_space<vmem>>, %arg13: memref<1x10xf32, #tpu.memory_space<vmem>>, %arg14: memref<1x1x128xf32, #tpu.memory_space<vmem>>) attributes {dimension_semantics = [#tpu.dimension_semantics<parallel>], iteration_bounds = array<i64: 2>, scalar_prefetch = 0 : i64, scratch_operands = 0 : i64, tpu.core_type = #tpu.core_type<tc>, window_params = [{transform_indices = @transform_0, window_bounds = array<i64: 1, 1, 896>}, {pipeline_mode = #tpu.pipeline_mode<synchronous>, transform_indices = @transform_1, window_bounds = array<i64: 643, 144>}, {pipeline_mode = #tpu.pipeline_mode<synchronous>, transform_indices = @transform_2, window_bounds = array<i64: 83, 16>}, {pipeline_mode = #tpu.pipeline_mode<synchronous>, transform_indices = @transform_3, window_bounds = array<i64: 8, 25>}, {pipeline_mode = #tpu.pipeline_mode<synchronous>, transform_indices = @transform_4, window_bounds = array<i64: 8, 1>}, {pipeline_mode = #tpu.pipeline_mode<synchronous>, transform_indices = @transform_5, window_bounds = array<i64: 16, 200>}, {pipeline_mode = #tpu.pipeline_mode<synchronous>, transform_indices = @transform_6, window_bounds = array<i64: 16, 1>}, {pipeline_mode = #tpu.pipeline_mode<synchronous>, transform_indices = @transform_7, window_bounds = array<i64: 120, 256>}, {pipeline_mode = #tpu.pipeline_mode<synchronous>, transform_indices = @transform_8, window_bounds = array<i64: 120, 1>}, {pipeline_mode = #tpu.pipeline_mode<synchronous>, transform_indices = @transform_9, window_bounds = array<i64: 84, 120>}, {pipeline_mode = #tpu.pipeline_mode<synchronous>, transform_indices = @transform_10, window_bounds = array<i64: 84, 1>}, {pipeline_mode = #tpu.pipeline_mode<synchronous>, transform_indices = @transform_11, window_bounds = array<i64: 84, 10>}, {pipeline_mode = #tpu.pipeline_mode<synchronous>, transform_indices = @transform_12, window_bounds = array<i64: 1, 10>}, {transform_indices = @transform_13, window_bounds = array<i64: 1, 1, 128>}]} {
    %c0 = arith.constant 0 : index
    %c0_0 = arith.constant 0 : index
    %0 = vector.load %arg4[%c0, %c0_0] : memref<8x25xf32, #tpu.memory_space<vmem>>, vector<8x25xf32>
    %c0_1 = arith.constant 0 : index
    %c0_2 = arith.constant 0 : index
    %1 = vector.load %arg5[%c0_1, %c0_2] : memref<8x1xf32, #tpu.memory_space<vmem>>, vector<8x1xf32>
    %c0_3 = arith.constant 0 : index
    %c0_4 = arith.constant 0 : index
    %2 = vector.load %arg2[%c0_3, %c0_4] : memref<643x144xbf16, #tpu.memory_space<vmem>>, vector<643x144xbf16>
    %c0_5 = arith.constant 0 : index
    %c0_6 = arith.constant 0 : index
    %3 = vector.load %arg3[%c0_5, %c0_6] : memref<83x16xbf16, #tpu.memory_space<vmem>>, vector<83x16xbf16>
    %c0_7 = arith.constant 0 : index
    %c0_8 = arith.constant 0 : index
    %4 = vector.load %arg6[%c0_7, %c0_8] : memref<16x200xbf16, #tpu.memory_space<vmem>>, vector<16x200xbf16>
    %c0_9 = arith.constant 0 : index
    %c0_10 = arith.constant 0 : index
    %5 = vector.load %arg7[%c0_9, %c0_10] : memref<16x1xf32, #tpu.memory_space<vmem>>, vector<16x1xf32>
    %cst = arith.constant 0.000000e+00 : f32
    %6 = vector.broadcast %cst : f32 to vector<8x672xf32>
    %c0_11 = arith.constant 0 : index
    %c0_12 = arith.constant 0 : index
    %c0_13 = arith.constant 0 : index
    %7 = vector.load %arg1[%c0_11, %c0_12, %c0_13] : memref<1x1x896xf32, #tpu.memory_space<vmem>>, vector<1x1x672xf32>
    %8 = vector.shape_cast %7 : vector<1x1x672xf32> to vector<1x672xf32>
    %9 = vector.extract_strided_slice %0 {offsets = [0, 0], sizes = [8, 1], strides = [1, 1]} : vector<8x25xf32> to vector<8x1xf32>
    %10 = vector.broadcast %9 : vector<8x1xf32> to vector<8x672xf32>
    %11 = vector.broadcast %8 : vector<1x672xf32> to vector<8x672xf32>
    %12 = arith.mulf %10, %11 : vector<8x672xf32>
    %13 = arith.addf %6, %12 : vector<8x672xf32>
    %c0_14 = arith.constant 0 : index
    %c0_15 = arith.constant 0 : index
    %c1 = arith.constant 1 : index
    %14 = vector.load %arg1[%c0_14, %c0_15, %c1] : memref<1x1x896xf32, #tpu.memory_space<vmem>>, vector<1x1x672xf32>
    %15 = vector.shape_cast %14 : vector<1x1x672xf32> to vector<1x672xf32>
    %16 = vector.extract_strided_slice %0 {offsets = [0, 1], sizes = [8, 1], strides = [1, 1]} : vector<8x25xf32> to vector<8x1xf32>
    %17 = vector.broadcast %16 : vector<8x1xf32> to vector<8x672xf32>
    %18 = vector.broadcast %15 : vector<1x672xf32> to vector<8x672xf32>
    %19 = arith.mulf %17, %18 : vector<8x672xf32>
    %20 = arith.addf %13, %19 : vector<8x672xf32>
    %c0_16 = arith.constant 0 : index
    %c0_17 = arith.constant 0 : index
    %c2 = arith.constant 2 : index
    %21 = vector.load %arg1[%c0_16, %c0_17, %c2] : memref<1x1x896xf32, #tpu.memory_space<vmem>>, vector<1x1x672xf32>
    %22 = vector.shape_cast %21 : vector<1x1x672xf32> to vector<1x672xf32>
    %23 = vector.extract_strided_slice %0 {offsets = [0, 2], sizes = [8, 1], strides = [1, 1]} : vector<8x25xf32> to vector<8x1xf32>
    %24 = vector.broadcast %23 : vector<8x1xf32> to vector<8x672xf32>
    %25 = vector.broadcast %22 : vector<1x672xf32> to vector<8x672xf32>
    %26 = arith.mulf %24, %25 : vector<8x672xf32>
    %27 = arith.addf %20, %26 : vector<8x672xf32>
    %c0_18 = arith.constant 0 : index
    %c0_19 = arith.constant 0 : index
    %c3 = arith.constant 3 : index
    %28 = vector.load %arg1[%c0_18, %c0_19, %c3] : memref<1x1x896xf32, #tpu.memory_space<vmem>>, vector<1x1x672xf32>
    %29 = vector.shape_cast %28 : vector<1x1x672xf32> to vector<1x672xf32>
    %30 = vector.extract_strided_slice %0 {offsets = [0, 3], sizes = [8, 1], strides = [1, 1]} : vector<8x25xf32> to vector<8x1xf32>
    %31 = vector.broadcast %30 : vector<8x1xf32> to vector<8x672xf32>
    %32 = vector.broadcast %29 : vector<1x672xf32> to vector<8x672xf32>
    %33 = arith.mulf %31, %32 : vector<8x672xf32>
    %34 = arith.addf %27, %33 : vector<8x672xf32>
    %c0_20 = arith.constant 0 : index
    %c0_21 = arith.constant 0 : index
    %c4 = arith.constant 4 : index
    %35 = vector.load %arg1[%c0_20, %c0_21, %c4] : memref<1x1x896xf32, #tpu.memory_space<vmem>>, vector<1x1x672xf32>
    %36 = vector.shape_cast %35 : vector<1x1x672xf32> to vector<1x672xf32>
    %37 = vector.extract_strided_slice %0 {offsets = [0, 4], sizes = [8, 1], strides = [1, 1]} : vector<8x25xf32> to vector<8x1xf32>
    %38 = vector.broadcast %37 : vector<8x1xf32> to vector<8x672xf32>
    %39 = vector.broadcast %36 : vector<1x672xf32> to vector<8x672xf32>
    %40 = arith.mulf %38, %39 : vector<8x672xf32>
    %41 = arith.addf %34, %40 : vector<8x672xf32>
    %c0_22 = arith.constant 0 : index
    %c0_23 = arith.constant 0 : index
    %c28 = arith.constant 28 : index
    %42 = vector.load %arg1[%c0_22, %c0_23, %c28] : memref<1x1x896xf32, #tpu.memory_space<vmem>>, vector<1x1x672xf32>
    %43 = vector.shape_cast %42 : vector<1x1x672xf32> to vector<1x672xf32>
    %44 = vector.extract_strided_slice %0 {offsets = [0, 5], sizes = [8, 1], strides = [1, 1]} : vector<8x25xf32> to vector<8x1xf32>
    %45 = vector.broadcast %44 : vector<8x1xf32> to vector<8x672xf32>
    %46 = vector.broadcast %43 : vector<1x672xf32> to vector<8x672xf32>
    %47 = arith.mulf %45, %46 : vector<8x672xf32>
    %48 = arith.addf %41, %47 : vector<8x672xf32>
    %c0_24 = arith.constant 0 : index
    %c0_25 = arith.constant 0 : index
    %c29 = arith.constant 29 : index
    %49 = vector.load %arg1[%c0_24, %c0_25, %c29] : memref<1x1x896xf32, #tpu.memory_space<vmem>>, vector<1x1x672xf32>
    %50 = vector.shape_cast %49 : vector<1x1x672xf32> to vector<1x672xf32>
    %51 = vector.extract_strided_slice %0 {offsets = [0, 6], sizes = [8, 1], strides = [1, 1]} : vector<8x25xf32> to vector<8x1xf32>
    %52 = vector.broadcast %51 : vector<8x1xf32> to vector<8x672xf32>
    %53 = vector.broadcast %50 : vector<1x672xf32> to vector<8x672xf32>
    %54 = arith.mulf %52, %53 : vector<8x672xf32>
    %55 = arith.addf %48, %54 : vector<8x672xf32>
    %c0_26 = arith.constant 0 : index
    %c0_27 = arith.constant 0 : index
    %c30 = arith.constant 30 : index
    %56 = vector.load %arg1[%c0_26, %c0_27, %c30] : memref<1x1x896xf32, #tpu.memory_space<vmem>>, vector<1x1x672xf32>
    %57 = vector.shape_cast %56 : vector<1x1x672xf32> to vector<1x672xf32>
    %58 = vector.extract_strided_slice %0 {offsets = [0, 7], sizes = [8, 1], strides = [1, 1]} : vector<8x25xf32> to vector<8x1xf32>
    %59 = vector.broadcast %58 : vector<8x1xf32> to vector<8x672xf32>
    %60 = vector.broadcast %57 : vector<1x672xf32> to vector<8x672xf32>
    %61 = arith.mulf %59, %60 : vector<8x672xf32>
    %62 = arith.addf %55, %61 : vector<8x672xf32>
    %c0_28 = arith.constant 0 : index
    %c0_29 = arith.constant 0 : index
    %c31 = arith.constant 31 : index
    %63 = vector.load %arg1[%c0_28, %c0_29, %c31] : memref<1x1x896xf32, #tpu.memory_space<vmem>>, vector<1x1x672xf32>
    %64 = vector.shape_cast %63 : vector<1x1x672xf32> to vector<1x672xf32>
    %65 = vector.extract_strided_slice %0 {offsets = [0, 8], sizes = [8, 1], strides = [1, 1]} : vector<8x25xf32> to vector<8x1xf32>
    %66 = vector.broadcast %65 : vector<8x1xf32> to vector<8x672xf32>
    %67 = vector.broadcast %64 : vector<1x672xf32> to vector<8x672xf32>
    %68 = arith.mulf %66, %67 : vector<8x672xf32>
    %69 = arith.addf %62, %68 : vector<8x672xf32>
    %c0_30 = arith.constant 0 : index
    %c0_31 = arith.constant 0 : index
    %c32 = arith.constant 32 : index
    %70 = vector.load %arg1[%c0_30, %c0_31, %c32] : memref<1x1x896xf32, #tpu.memory_space<vmem>>, vector<1x1x672xf32>
    %71 = vector.shape_cast %70 : vector<1x1x672xf32> to vector<1x672xf32>
    %72 = vector.extract_strided_slice %0 {offsets = [0, 9], sizes = [8, 1], strides = [1, 1]} : vector<8x25xf32> to vector<8x1xf32>
    %73 = vector.broadcast %72 : vector<8x1xf32> to vector<8x672xf32>
    %74 = vector.broadcast %71 : vector<1x672xf32> to vector<8x672xf32>
    %75 = arith.mulf %73, %74 : vector<8x672xf32>
    %76 = arith.addf %69, %75 : vector<8x672xf32>
    %c0_32 = arith.constant 0 : index
    %c0_33 = arith.constant 0 : index
    %c56 = arith.constant 56 : index
    %77 = vector.load %arg1[%c0_32, %c0_33, %c56] : memref<1x1x896xf32, #tpu.memory_space<vmem>>, vector<1x1x672xf32>
    %78 = vector.shape_cast %77 : vector<1x1x672xf32> to vector<1x672xf32>
    %79 = vector.extract_strided_slice %0 {offsets = [0, 10], sizes = [8, 1], strides = [1, 1]} : vector<8x25xf32> to vector<8x1xf32>
    %80 = vector.broadcast %79 : vector<8x1xf32> to vector<8x672xf32>
    %81 = vector.broadcast %78 : vector<1x672xf32> to vector<8x672xf32>
    %82 = arith.mulf %80, %81 : vector<8x672xf32>
    %83 = arith.addf %76, %82 : vector<8x672xf32>
    %c0_34 = arith.constant 0 : index
    %c0_35 = arith.constant 0 : index
    %c57 = arith.constant 57 : index
    %84 = vector.load %arg1[%c0_34, %c0_35, %c57] : memref<1x1x896xf32, #tpu.memory_space<vmem>>, vector<1x1x672xf32>
    %85 = vector.shape_cast %84 : vector<1x1x672xf32> to vector<1x672xf32>
    %86 = vector.extract_strided_slice %0 {offsets = [0, 11], sizes = [8, 1], strides = [1, 1]} : vector<8x25xf32> to vector<8x1xf32>
    %87 = vector.broadcast %86 : vector<8x1xf32> to vector<8x672xf32>
    %88 = vector.broadcast %85 : vector<1x672xf32> to vector<8x672xf32>
    %89 = arith.mulf %87, %88 : vector<8x672xf32>
    %90 = arith.addf %83, %89 : vector<8x672xf32>
    %c0_36 = arith.constant 0 : index
    %c0_37 = arith.constant 0 : index
    %c58 = arith.constant 58 : index
    %91 = vector.load %arg1[%c0_36, %c0_37, %c58] : memref<1x1x896xf32, #tpu.memory_space<vmem>>, vector<1x1x672xf32>
    %92 = vector.shape_cast %91 : vector<1x1x672xf32> to vector<1x672xf32>
    %93 = vector.extract_strided_slice %0 {offsets = [0, 12], sizes = [8, 1], strides = [1, 1]} : vector<8x25xf32> to vector<8x1xf32>
    %94 = vector.broadcast %93 : vector<8x1xf32> to vector<8x672xf32>
    %95 = vector.broadcast %92 : vector<1x672xf32> to vector<8x672xf32>
    %96 = arith.mulf %94, %95 : vector<8x672xf32>
    %97 = arith.addf %90, %96 : vector<8x672xf32>
    %c0_38 = arith.constant 0 : index
    %c0_39 = arith.constant 0 : index
    %c59 = arith.constant 59 : index
    %98 = vector.load %arg1[%c0_38, %c0_39, %c59] : memref<1x1x896xf32, #tpu.memory_space<vmem>>, vector<1x1x672xf32>
    %99 = vector.shape_cast %98 : vector<1x1x672xf32> to vector<1x672xf32>
    %100 = vector.extract_strided_slice %0 {offsets = [0, 13], sizes = [8, 1], strides = [1, 1]} : vector<8x25xf32> to vector<8x1xf32>
    %101 = vector.broadcast %100 : vector<8x1xf32> to vector<8x672xf32>
    %102 = vector.broadcast %99 : vector<1x672xf32> to vector<8x672xf32>
    %103 = arith.mulf %101, %102 : vector<8x672xf32>
    %104 = arith.addf %97, %103 : vector<8x672xf32>
    %c0_40 = arith.constant 0 : index
    %c0_41 = arith.constant 0 : index
    %c60 = arith.constant 60 : index
    %105 = vector.load %arg1[%c0_40, %c0_41, %c60] : memref<1x1x896xf32, #tpu.memory_space<vmem>>, vector<1x1x672xf32>
    %106 = vector.shape_cast %105 : vector<1x1x672xf32> to vector<1x672xf32>
    %107 = vector.extract_strided_slice %0 {offsets = [0, 14], sizes = [8, 1], strides = [1, 1]} : vector<8x25xf32> to vector<8x1xf32>
    %108 = vector.broadcast %107 : vector<8x1xf32> to vector<8x672xf32>
    %109 = vector.broadcast %106 : vector<1x672xf32> to vector<8x672xf32>
    %110 = arith.mulf %108, %109 : vector<8x672xf32>
    %111 = arith.addf %104, %110 : vector<8x672xf32>
    %c0_42 = arith.constant 0 : index
    %c0_43 = arith.constant 0 : index
    %c84 = arith.constant 84 : index
    %112 = vector.load %arg1[%c0_42, %c0_43, %c84] : memref<1x1x896xf32, #tpu.memory_space<vmem>>, vector<1x1x672xf32>
    %113 = vector.shape_cast %112 : vector<1x1x672xf32> to vector<1x672xf32>
    %114 = vector.extract_strided_slice %0 {offsets = [0, 15], sizes = [8, 1], strides = [1, 1]} : vector<8x25xf32> to vector<8x1xf32>
    %115 = vector.broadcast %114 : vector<8x1xf32> to vector<8x672xf32>
    %116 = vector.broadcast %113 : vector<1x672xf32> to vector<8x672xf32>
    %117 = arith.mulf %115, %116 : vector<8x672xf32>
    %118 = arith.addf %111, %117 : vector<8x672xf32>
    %c0_44 = arith.constant 0 : index
    %c0_45 = arith.constant 0 : index
    %c85 = arith.constant 85 : index
    %119 = vector.load %arg1[%c0_44, %c0_45, %c85] : memref<1x1x896xf32, #tpu.memory_space<vmem>>, vector<1x1x672xf32>
    %120 = vector.shape_cast %119 : vector<1x1x672xf32> to vector<1x672xf32>
    %121 = vector.extract_strided_slice %0 {offsets = [0, 16], sizes = [8, 1], strides = [1, 1]} : vector<8x25xf32> to vector<8x1xf32>
    %122 = vector.broadcast %121 : vector<8x1xf32> to vector<8x672xf32>
    %123 = vector.broadcast %120 : vector<1x672xf32> to vector<8x672xf32>
    %124 = arith.mulf %122, %123 : vector<8x672xf32>
    %125 = arith.addf %118, %124 : vector<8x672xf32>
    %c0_46 = arith.constant 0 : index
    %c0_47 = arith.constant 0 : index
    %c86 = arith.constant 86 : index
    %126 = vector.load %arg1[%c0_46, %c0_47, %c86] : memref<1x1x896xf32, #tpu.memory_space<vmem>>, vector<1x1x672xf32>
    %127 = vector.shape_cast %126 : vector<1x1x672xf32> to vector<1x672xf32>
    %128 = vector.extract_strided_slice %0 {offsets = [0, 17], sizes = [8, 1], strides = [1, 1]} : vector<8x25xf32> to vector<8x1xf32>
    %129 = vector.broadcast %128 : vector<8x1xf32> to vector<8x672xf32>
    %130 = vector.broadcast %127 : vector<1x672xf32> to vector<8x672xf32>
    %131 = arith.mulf %129, %130 : vector<8x672xf32>
    %132 = arith.addf %125, %131 : vector<8x672xf32>
    %c0_48 = arith.constant 0 : index
    %c0_49 = arith.constant 0 : index
    %c87 = arith.constant 87 : index
    %133 = vector.load %arg1[%c0_48, %c0_49, %c87] : memref<1x1x896xf32, #tpu.memory_space<vmem>>, vector<1x1x672xf32>
    %134 = vector.shape_cast %133 : vector<1x1x672xf32> to vector<1x672xf32>
    %135 = vector.extract_strided_slice %0 {offsets = [0, 18], sizes = [8, 1], strides = [1, 1]} : vector<8x25xf32> to vector<8x1xf32>
    %136 = vector.broadcast %135 : vector<8x1xf32> to vector<8x672xf32>
    %137 = vector.broadcast %134 : vector<1x672xf32> to vector<8x672xf32>
    %138 = arith.mulf %136, %137 : vector<8x672xf32>
    %139 = arith.addf %132, %138 : vector<8x672xf32>
    %c0_50 = arith.constant 0 : index
    %c0_51 = arith.constant 0 : index
    %c88 = arith.constant 88 : index
    %140 = vector.load %arg1[%c0_50, %c0_51, %c88] : memref<1x1x896xf32, #tpu.memory_space<vmem>>, vector<1x1x672xf32>
    %141 = vector.shape_cast %140 : vector<1x1x672xf32> to vector<1x672xf32>
    %142 = vector.extract_strided_slice %0 {offsets = [0, 19], sizes = [8, 1], strides = [1, 1]} : vector<8x25xf32> to vector<8x1xf32>
    %143 = vector.broadcast %142 : vector<8x1xf32> to vector<8x672xf32>
    %144 = vector.broadcast %141 : vector<1x672xf32> to vector<8x672xf32>
    %145 = arith.mulf %143, %144 : vector<8x672xf32>
    %146 = arith.addf %139, %145 : vector<8x672xf32>
    %c0_52 = arith.constant 0 : index
    %c0_53 = arith.constant 0 : index
    %c112 = arith.constant 112 : index
    %147 = vector.load %arg1[%c0_52, %c0_53, %c112] : memref<1x1x896xf32, #tpu.memory_space<vmem>>, vector<1x1x672xf32>
    %148 = vector.shape_cast %147 : vector<1x1x672xf32> to vector<1x672xf32>
    %149 = vector.extract_strided_slice %0 {offsets = [0, 20], sizes = [8, 1], strides = [1, 1]} : vector<8x25xf32> to vector<8x1xf32>
    %150 = vector.broadcast %149 : vector<8x1xf32> to vector<8x672xf32>
    %151 = vector.broadcast %148 : vector<1x672xf32> to vector<8x672xf32>
    %152 = arith.mulf %150, %151 : vector<8x672xf32>
    %153 = arith.addf %146, %152 : vector<8x672xf32>
    %c0_54 = arith.constant 0 : index
    %c0_55 = arith.constant 0 : index
    %c113 = arith.constant 113 : index
    %154 = vector.load %arg1[%c0_54, %c0_55, %c113] : memref<1x1x896xf32, #tpu.memory_space<vmem>>, vector<1x1x672xf32>
    %155 = vector.shape_cast %154 : vector<1x1x672xf32> to vector<1x672xf32>
    %156 = vector.extract_strided_slice %0 {offsets = [0, 21], sizes = [8, 1], strides = [1, 1]} : vector<8x25xf32> to vector<8x1xf32>
    %157 = vector.broadcast %156 : vector<8x1xf32> to vector<8x672xf32>
    %158 = vector.broadcast %155 : vector<1x672xf32> to vector<8x672xf32>
    %159 = arith.mulf %157, %158 : vector<8x672xf32>
    %160 = arith.addf %153, %159 : vector<8x672xf32>
    %c0_56 = arith.constant 0 : index
    %c0_57 = arith.constant 0 : index
    %c114 = arith.constant 114 : index
    %161 = vector.load %arg1[%c0_56, %c0_57, %c114] : memref<1x1x896xf32, #tpu.memory_space<vmem>>, vector<1x1x672xf32>
    %162 = vector.shape_cast %161 : vector<1x1x672xf32> to vector<1x672xf32>
    %163 = vector.extract_strided_slice %0 {offsets = [0, 22], sizes = [8, 1], strides = [1, 1]} : vector<8x25xf32> to vector<8x1xf32>
    %164 = vector.broadcast %163 : vector<8x1xf32> to vector<8x672xf32>
    %165 = vector.broadcast %162 : vector<1x672xf32> to vector<8x672xf32>
    %166 = arith.mulf %164, %165 : vector<8x672xf32>
    %167 = arith.addf %160, %166 : vector<8x672xf32>
    %c0_58 = arith.constant 0 : index
    %c0_59 = arith.constant 0 : index
    %c115 = arith.constant 115 : index
    %168 = vector.load %arg1[%c0_58, %c0_59, %c115] : memref<1x1x896xf32, #tpu.memory_space<vmem>>, vector<1x1x672xf32>
    %169 = vector.shape_cast %168 : vector<1x1x672xf32> to vector<1x672xf32>
    %170 = vector.extract_strided_slice %0 {offsets = [0, 23], sizes = [8, 1], strides = [1, 1]} : vector<8x25xf32> to vector<8x1xf32>
    %171 = vector.broadcast %170 : vector<8x1xf32> to vector<8x672xf32>
    %172 = vector.broadcast %169 : vector<1x672xf32> to vector<8x672xf32>
    %173 = arith.mulf %171, %172 : vector<8x672xf32>
    %174 = arith.addf %167, %173 : vector<8x672xf32>
    %c0_60 = arith.constant 0 : index
    %c0_61 = arith.constant 0 : index
    %c116 = arith.constant 116 : index
    %175 = vector.load %arg1[%c0_60, %c0_61, %c116] : memref<1x1x896xf32, #tpu.memory_space<vmem>>, vector<1x1x672xf32>
    %176 = vector.shape_cast %175 : vector<1x1x672xf32> to vector<1x672xf32>
    %177 = vector.extract_strided_slice %0 {offsets = [0, 24], sizes = [8, 1], strides = [1, 1]} : vector<8x25xf32> to vector<8x1xf32>
    %178 = vector.broadcast %177 : vector<8x1xf32> to vector<8x672xf32>
    %179 = vector.broadcast %176 : vector<1x672xf32> to vector<8x672xf32>
    %180 = arith.mulf %178, %179 : vector<8x672xf32>
    %181 = arith.addf %174, %180 : vector<8x672xf32>
    %182 = vector.broadcast %1 : vector<8x1xf32> to vector<8x672xf32>
    %183 = arith.addf %181, %182 : vector<8x672xf32>
    %cst_62 = arith.constant 0.000000e+00 : f32
    %184 = vector.broadcast %cst_62 : f32 to vector<8x672xf32>
    %185 = arith.maximumf %183, %184 : vector<8x672xf32>
    %186 = vector.extract_strided_slice %185 {offsets = [0, 0], sizes = [8, 643], strides = [1, 1]} : vector<8x672xf32> to vector<8x643xf32>
    %187 = vector.extract_strided_slice %185 {offsets = [0, 1], sizes = [8, 643], strides = [1, 1]} : vector<8x672xf32> to vector<8x643xf32>
    %188 = arith.maximumf %186, %187 : vector<8x643xf32>
    %189 = vector.extract_strided_slice %185 {offsets = [0, 28], sizes = [8, 643], strides = [1, 1]} : vector<8x672xf32> to vector<8x643xf32>
    %190 = vector.extract_strided_slice %185 {offsets = [0, 29], sizes = [8, 643], strides = [1, 1]} : vector<8x672xf32> to vector<8x643xf32>
    %191 = arith.maximumf %189, %190 : vector<8x643xf32>
    %192 = arith.maximumf %188, %191 : vector<8x643xf32>
    %193 = arith.truncf %192 : vector<8x643xf32> to vector<8x643xbf16>
    %cst_63 = arith.constant dense<0.000000e+00> : vector<8x144xf32>
    %194 = tpu.matmul %193, %2, %cst_63 {dimension_numbers = #tpu.dot_dimension_numbers<[1], [0], [0], [1], [0, 0, 1, 1], [], []>} : vector<8x643xbf16>, vector<643x144xbf16>, vector<8x144xf32> -> vector<8x144xf32>
    %cst_64 = arith.constant 0.000000e+00 : f32
    %195 = vector.broadcast %cst_64 : f32 to vector<8x112xf32>
    %196 = tpu.concatenate %194, %195 in 1 : vector<8x144xf32>, vector<8x112xf32> -> vector<8x256xf32>
    %197 = vector.extract_strided_slice %196 {offsets = [0, 0], sizes = [8, 96], strides = [1, 1]} : vector<8x256xf32> to vector<8x96xf32>
    %198 = vector.extract_strided_slice %196 {offsets = [0, 1], sizes = [8, 96], strides = [1, 1]} : vector<8x256xf32> to vector<8x96xf32>
    %199 = vector.extract_strided_slice %196 {offsets = [0, 2], sizes = [8, 96], strides = [1, 1]} : vector<8x256xf32> to vector<8x96xf32>
    %200 = vector.extract_strided_slice %196 {offsets = [0, 3], sizes = [8, 96], strides = [1, 1]} : vector<8x256xf32> to vector<8x96xf32>
    %201 = vector.extract_strided_slice %196 {offsets = [0, 4], sizes = [8, 96], strides = [1, 1]} : vector<8x256xf32> to vector<8x96xf32>
    %202 = vector.extract_strided_slice %196 {offsets = [0, 12], sizes = [8, 96], strides = [1, 1]} : vector<8x256xf32> to vector<8x96xf32>
    %203 = vector.extract_strided_slice %196 {offsets = [0, 13], sizes = [8, 96], strides = [1, 1]} : vector<8x256xf32> to vector<8x96xf32>
    %204 = vector.extract_strided_slice %196 {offsets = [0, 14], sizes = [8, 96], strides = [1, 1]} : vector<8x256xf32> to vector<8x96xf32>
    %205 = vector.extract_strided_slice %196 {offsets = [0, 15], sizes = [8, 96], strides = [1, 1]} : vector<8x256xf32> to vector<8x96xf32>
    %206 = vector.extract_strided_slice %196 {offsets = [0, 16], sizes = [8, 96], strides = [1, 1]} : vector<8x256xf32> to vector<8x96xf32>
    %207 = vector.extract_strided_slice %196 {offsets = [0, 24], sizes = [8, 96], strides = [1, 1]} : vector<8x256xf32> to vector<8x96xf32>
    %208 = vector.extract_strided_slice %196 {offsets = [0, 25], sizes = [8, 96], strides = [1, 1]} : vector<8x256xf32> to vector<8x96xf32>
    %209 = vector.extract_strided_slice %196 {offsets = [0, 26], sizes = [8, 96], strides = [1, 1]} : vector<8x256xf32> to vector<8x96xf32>
    %210 = vector.extract_strided_slice %196 {offsets = [0, 27], sizes = [8, 96], strides = [1, 1]} : vector<8x256xf32> to vector<8x96xf32>
    %211 = vector.extract_strided_slice %196 {offsets = [0, 28], sizes = [8, 96], strides = [1, 1]} : vector<8x256xf32> to vector<8x96xf32>
    %212 = vector.extract_strided_slice %196 {offsets = [0, 36], sizes = [8, 96], strides = [1, 1]} : vector<8x256xf32> to vector<8x96xf32>
    %213 = vector.extract_strided_slice %196 {offsets = [0, 37], sizes = [8, 96], strides = [1, 1]} : vector<8x256xf32> to vector<8x96xf32>
    %214 = vector.extract_strided_slice %196 {offsets = [0, 38], sizes = [8, 96], strides = [1, 1]} : vector<8x256xf32> to vector<8x96xf32>
    %215 = vector.extract_strided_slice %196 {offsets = [0, 39], sizes = [8, 96], strides = [1, 1]} : vector<8x256xf32> to vector<8x96xf32>
    %216 = vector.extract_strided_slice %196 {offsets = [0, 40], sizes = [8, 96], strides = [1, 1]} : vector<8x256xf32> to vector<8x96xf32>
    %217 = vector.extract_strided_slice %196 {offsets = [0, 48], sizes = [8, 96], strides = [1, 1]} : vector<8x256xf32> to vector<8x96xf32>
    %218 = vector.extract_strided_slice %196 {offsets = [0, 49], sizes = [8, 96], strides = [1, 1]} : vector<8x256xf32> to vector<8x96xf32>
    %219 = vector.extract_strided_slice %196 {offsets = [0, 50], sizes = [8, 96], strides = [1, 1]} : vector<8x256xf32> to vector<8x96xf32>
    %220 = vector.extract_strided_slice %196 {offsets = [0, 51], sizes = [8, 96], strides = [1, 1]} : vector<8x256xf32> to vector<8x96xf32>
    %221 = vector.extract_strided_slice %196 {offsets = [0, 52], sizes = [8, 96], strides = [1, 1]} : vector<8x256xf32> to vector<8x96xf32>
    %222 = tpu.concatenate %197, %198, %199, %200, %201, %202, %203, %204, %205, %206, %207, %208, %209, %210, %211, %212 in 0 : vector<8x96xf32>, vector<8x96xf32>, vector<8x96xf32>, vector<8x96xf32>, vector<8x96xf32>, vector<8x96xf32>, vector<8x96xf32>, vector<8x96xf32>, vector<8x96xf32>, vector<8x96xf32>, vector<8x96xf32>, vector<8x96xf32>, vector<8x96xf32>, vector<8x96xf32>, vector<8x96xf32>, vector<8x96xf32> -> vector<128x96xf32>
    %223 = tpu.concatenate %213, %214, %215, %216, %217, %218, %219, %220, %221 in 0 : vector<8x96xf32>, vector<8x96xf32>, vector<8x96xf32>, vector<8x96xf32>, vector<8x96xf32>, vector<8x96xf32>, vector<8x96xf32>, vector<8x96xf32>, vector<8x96xf32> -> vector<72x96xf32>
    %224 = tpu.concatenate %222, %223 in 0 : vector<128x96xf32>, vector<72x96xf32> -> vector<200x96xf32>
    %225 = arith.truncf %224 : vector<200x96xf32> to vector<200x96xbf16>
    %cst_65 = arith.constant dense<0.000000e+00> : vector<16x96xf32>
    %226 = tpu.matmul %4, %225, %cst_65 {dimension_numbers = #tpu.dot_dimension_numbers<[1], [0], [0], [1], [0, 0, 1, 1], [], []>} : vector<16x200xbf16>, vector<200x96xbf16>, vector<16x96xf32> -> vector<16x96xf32>
    %227 = vector.broadcast %5 : vector<16x1xf32> to vector<16x96xf32>
    %228 = arith.addf %226, %227 : vector<16x96xf32>
    %cst_66 = arith.constant 0.000000e+00 : f32
    %229 = vector.broadcast %cst_66 : f32 to vector<16x96xf32>
    %230 = arith.maximumf %228, %229 : vector<16x96xf32>
    %231 = vector.extract_strided_slice %230 {offsets = [0, 0], sizes = [16, 83], strides = [1, 1]} : vector<16x96xf32> to vector<16x83xf32>
    %232 = vector.extract_strided_slice %230 {offsets = [0, 1], sizes = [16, 83], strides = [1, 1]} : vector<16x96xf32> to vector<16x83xf32>
    %233 = arith.maximumf %231, %232 : vector<16x83xf32>
    %234 = vector.extract_strided_slice %230 {offsets = [0, 12], sizes = [16, 83], strides = [1, 1]} : vector<16x96xf32> to vector<16x83xf32>
    %235 = vector.extract_strided_slice %230 {offsets = [0, 13], sizes = [16, 83], strides = [1, 1]} : vector<16x96xf32> to vector<16x83xf32>
    %236 = arith.maximumf %234, %235 : vector<16x83xf32>
    %237 = arith.maximumf %233, %236 : vector<16x83xf32>
    %238 = arith.truncf %237 : vector<16x83xf32> to vector<16x83xbf16>
    %cst_67 = arith.constant dense<0.000000e+00> : vector<16x16xf32>
    %239 = tpu.matmul %238, %3, %cst_67 {dimension_numbers = #tpu.dot_dimension_numbers<[1], [0], [0], [1], [0, 0, 1, 1], [], []>} : vector<16x83xbf16>, vector<83x16xbf16>, vector<16x16xf32> -> vector<16x16xf32>
    %240 = vector.extract_strided_slice %239 {offsets = [0, 0], sizes = [16, 1], strides = [1, 1]} : vector<16x16xf32> to vector<16x1xf32>
    %241 = vector.extract_strided_slice %239 {offsets = [0, 1], sizes = [16, 1], strides = [1, 1]} : vector<16x16xf32> to vector<16x1xf32>
    %242 = vector.extract_strided_slice %239 {offsets = [0, 2], sizes = [16, 1], strides = [1, 1]} : vector<16x16xf32> to vector<16x1xf32>
    %243 = vector.extract_strided_slice %239 {offsets = [0, 3], sizes = [16, 1], strides = [1, 1]} : vector<16x16xf32> to vector<16x1xf32>
    %244 = vector.extract_strided_slice %239 {offsets = [0, 4], sizes = [16, 1], strides = [1, 1]} : vector<16x16xf32> to vector<16x1xf32>
    %245 = vector.extract_strided_slice %239 {offsets = [0, 5], sizes = [16, 1], strides = [1, 1]} : vector<16x16xf32> to vector<16x1xf32>
    %246 = vector.extract_strided_slice %239 {offsets = [0, 6], sizes = [16, 1], strides = [1, 1]} : vector<16x16xf32> to vector<16x1xf32>
    %247 = vector.extract_strided_slice %239 {offsets = [0, 7], sizes = [16, 1], strides = [1, 1]} : vector<16x16xf32> to vector<16x1xf32>
    %248 = vector.extract_strided_slice %239 {offsets = [0, 8], sizes = [16, 1], strides = [1, 1]} : vector<16x16xf32> to vector<16x1xf32>
    %249 = vector.extract_strided_slice %239 {offsets = [0, 9], sizes = [16, 1], strides = [1, 1]} : vector<16x16xf32> to vector<16x1xf32>
    %250 = vector.extract_strided_slice %239 {offsets = [0, 10], sizes = [16, 1], strides = [1, 1]} : vector<16x16xf32> to vector<16x1xf32>
    %251 = vector.extract_strided_slice %239 {offsets = [0, 11], sizes = [16, 1], strides = [1, 1]} : vector<16x16xf32> to vector<16x1xf32>
    %252 = vector.extract_strided_slice %239 {offsets = [0, 12], sizes = [16, 1], strides = [1, 1]} : vector<16x16xf32> to vector<16x1xf32>
    %253 = vector.extract_strided_slice %239 {offsets = [0, 13], sizes = [16, 1], strides = [1, 1]} : vector<16x16xf32> to vector<16x1xf32>
    %254 = vector.extract_strided_slice %239 {offsets = [0, 14], sizes = [16, 1], strides = [1, 1]} : vector<16x16xf32> to vector<16x1xf32>
    %255 = vector.extract_strided_slice %239 {offsets = [0, 15], sizes = [16, 1], strides = [1, 1]} : vector<16x16xf32> to vector<16x1xf32>
    %256 = tpu.concatenate %240, %241, %242, %243, %244, %245, %246, %247, %248, %249, %250, %251, %252, %253, %254, %255 in 0 : vector<16x1xf32>, vector<16x1xf32>, vector<16x1xf32>, vector<16x1xf32>, vector<16x1xf32>, vector<16x1xf32>, vector<16x1xf32>, vector<16x1xf32>, vector<16x1xf32>, vector<16x1xf32>, vector<16x1xf32>, vector<16x1xf32>, vector<16x1xf32>, vector<16x1xf32>, vector<16x1xf32>, vector<16x1xf32> -> vector<256x1xf32>
    %c0_68 = arith.constant 0 : index
    %c0_69 = arith.constant 0 : index
    %257 = vector.load %arg8[%c0_68, %c0_69] : memref<120x256xbf16, #tpu.memory_space<vmem>>, vector<120x256xbf16>
    %258 = arith.truncf %256 : vector<256x1xf32> to vector<256x1xbf16>
    %cst_70 = arith.constant dense<0.000000e+00> : vector<120x1xf32>
    %259 = tpu.matmul %257, %258, %cst_70 {dimension_numbers = #tpu.dot_dimension_numbers<[1], [0], [0], [1], [0, 0, 1, 1], [], []>} : vector<120x256xbf16>, vector<256x1xbf16>, vector<120x1xf32> -> vector<120x1xf32>
    %c0_71 = arith.constant 0 : index
    %c0_72 = arith.constant 0 : index
    %260 = vector.load %arg9[%c0_71, %c0_72] : memref<120x1xf32, #tpu.memory_space<vmem>>, vector<120x1xf32>
    %261 = arith.addf %259, %260 : vector<120x1xf32>
    %cst_73 = arith.constant 0.000000e+00 : f32
    %262 = vector.broadcast %cst_73 : f32 to vector<120x1xf32>
    %263 = arith.maximumf %261, %262 : vector<120x1xf32>
    %c0_74 = arith.constant 0 : index
    %c0_75 = arith.constant 0 : index
    %264 = vector.load %arg10[%c0_74, %c0_75] : memref<84x120xbf16, #tpu.memory_space<vmem>>, vector<84x120xbf16>
    %265 = arith.truncf %263 : vector<120x1xf32> to vector<120x1xbf16>
    %cst_76 = arith.constant dense<0.000000e+00> : vector<84x1xf32>
    %266 = tpu.matmul %264, %265, %cst_76 {dimension_numbers = #tpu.dot_dimension_numbers<[1], [0], [0], [1], [0, 0, 1, 1], [], []>} : vector<84x120xbf16>, vector<120x1xbf16>, vector<84x1xf32> -> vector<84x1xf32>
    %c0_77 = arith.constant 0 : index
    %c0_78 = arith.constant 0 : index
    %267 = vector.load %arg11[%c0_77, %c0_78] : memref<84x1xf32, #tpu.memory_space<vmem>>, vector<84x1xf32>
    %268 = arith.addf %266, %267 : vector<84x1xf32>
    %cst_79 = arith.constant 0.000000e+00 : f32
    %269 = vector.broadcast %cst_79 : f32 to vector<84x1xf32>
    %270 = arith.maximumf %268, %269 : vector<84x1xf32>
    %271 = arith.truncf %270 : vector<84x1xf32> to vector<84x1xbf16>
    %c0_80 = arith.constant 0 : index
    %c0_81 = arith.constant 0 : index
    %272 = vector.load %arg12[%c0_80, %c0_81] : memref<84x10xbf16, #tpu.memory_space<vmem>>, vector<84x10xbf16>
    %cst_82 = arith.constant dense<0.000000e+00> : vector<1x10xf32>
    %273 = tpu.matmul %271, %272, %cst_82 {dimension_numbers = #tpu.dot_dimension_numbers<[0], [0], [1], [1], [0, 1, 1, 1], [], []>} : vector<84x1xbf16>, vector<84x10xbf16>, vector<1x10xf32> -> vector<1x10xf32>
    %c0_83 = arith.constant 0 : index
    %c0_84 = arith.constant 0 : index
    %274 = vector.load %arg13[%c0_83, %c0_84] : memref<1x10xf32, #tpu.memory_space<vmem>>, vector<1x10xf32>
    %275 = arith.addf %273, %274 : vector<1x10xf32>
    %cst_85 = arith.constant 0.000000e+00 : f32
    %276 = vector.broadcast %cst_85 : f32 to vector<1x118xf32>
    %277 = tpu.concatenate %275, %276 in 1 : vector<1x10xf32>, vector<1x118xf32> -> vector<1x128xf32>
    %c0_86 = arith.constant 0 : index
    %c0_87 = arith.constant 0 : index
    %c0_88 = arith.constant 0 : index
    %278 = vector.load %arg14[%c0_86, %c0_87, %c0_88] : memref<1x1x128xf32, #tpu.memory_space<vmem>>, vector<1x1x128xf32>
    %279 = vector.shape_cast %278 : vector<1x1x128xf32> to vector<1x128xf32>
    %280 = vector.shape_cast %277 : vector<1x128xf32> to vector<1x1x128xf32>
    tpu.vector_store %arg14[%c0_86, %c0_87, %c0_88], %280 {strides = array<i32>} : memref<1x1x128xf32, #tpu.memory_space<vmem>>, vector<1x1x128xf32>,
    return
  }
  func.func @transform_0(%arg0: i32) -> (i32, i32, i32) {
    %c0_i32 = arith.constant 0 : i32
    %c0_i32_0 = arith.constant 0 : i32
    %c0_i32_1 = arith.constant 0 : i32
    return %arg0, %c0_i32, %c0_i32_0 : i32, i32, i32
  }
  func.func @transform_1(%arg0: i32) -> (i32, i32) {
    %c0_i32 = arith.constant 0 : i32
    %c0_i32_0 = arith.constant 0 : i32
    %c0_i32_1 = arith.constant 0 : i32
    return %c0_i32, %c0_i32_0 : i32, i32
  }
  func.func @transform_2(%arg0: i32) -> (i32, i32) {
    %c0_i32 = arith.constant 0 : i32
    %c0_i32_0 = arith.constant 0 : i32
    %c0_i32_1 = arith.constant 0 : i32
    return %c0_i32, %c0_i32_0 : i32, i32
  }
  func.func @transform_3(%arg0: i32) -> (i32, i32) {
    %c0_i32 = arith.constant 0 : i32
    %c0_i32_0 = arith.constant 0 : i32
    %c0_i32_1 = arith.constant 0 : i32
    return %c0_i32, %c0_i32_0 : i32, i32
  }
  func.func @transform_4(%arg0: i32) -> (i32, i32) {
    %c0_i32 = arith.constant 0 : i32
    %c0_i32_0 = arith.constant 0 : i32
    %c0_i32_1 = arith.constant 0 : i32
    return %c0_i32, %c0_i32_0 : i32, i32
  }
  func.func @transform_5(%arg0: i32) -> (i32, i32) {
    %c0_i32 = arith.constant 0 : i32
    %c0_i32_0 = arith.constant 0 : i32
    %c0_i32_1 = arith.constant 0 : i32
    return %c0_i32, %c0_i32_0 : i32, i32
  }
  func.func @transform_6(%arg0: i32) -> (i32, i32) {
    %c0_i32 = arith.constant 0 : i32
    %c0_i32_0 = arith.constant 0 : i32
    %c0_i32_1 = arith.constant 0 : i32
    return %c0_i32, %c0_i32_0 : i32, i32
  }
  func.func @transform_7(%arg0: i32) -> (i32, i32) {
    %c0_i32 = arith.constant 0 : i32
    %c0_i32_0 = arith.constant 0 : i32
    %c0_i32_1 = arith.constant 0 : i32
    return %c0_i32, %c0_i32_0 : i32, i32
  }
  func.func @transform_8(%arg0: i32) -> (i32, i32) {
    %c0_i32 = arith.constant 0 : i32
    %c0_i32_0 = arith.constant 0 : i32
    %c0_i32_1 = arith.constant 0 : i32
    return %c0_i32, %c0_i32_0 : i32, i32
  }
  func.func @transform_9(%arg0: i32) -> (i32, i32) {
    %c0_i32 = arith.constant 0 : i32
    %c0_i32_0 = arith.constant 0 : i32
    %c0_i32_1 = arith.constant 0 : i32
    return %c0_i32, %c0_i32_0 : i32, i32
  }
  func.func @transform_10(%arg0: i32) -> (i32, i32) {
    %c0_i32 = arith.constant 0 : i32
    %c0_i32_0 = arith.constant 0 : i32
    %c0_i32_1 = arith.constant 0 : i32
    return %c0_i32, %c0_i32_0 : i32, i32
  }
  func.func @transform_11(%arg0: i32) -> (i32, i32) {
    %c0_i32 = arith.constant 0 : i32
    %c0_i32_0 = arith.constant 0 : i32
    %c0_i32_1 = arith.constant 0 : i32
    return %c0_i32, %c0_i32_0 : i32, i32
  }
  func.func @transform_12(%arg0: i32) -> (i32, i32) {
    %c0_i32 = arith.constant 0 : i32
    %c0_i32_0 = arith.constant 0 : i32
    %c0_i32_1 = arith.constant 0 : i32
    return %c0_i32, %c0_i32_0 : i32, i32
  }
  func.func @transform_13(%arg0: i32) -> (i32, i32, i32) {
    %c0_i32 = arith.constant 0 : i32
    %c0_i32_0 = arith.constant 0 : i32
    %c0_i32_1 = arith.constant 0 : i32
    return %arg0, %c0_i32, %c0_i32_0 : i32, i32, i32
  }
}

</mosaic_0001>

<bundles_post_ra>
// kernel: lenet5_forward.1
= control target key start
LH: loop header
LB: loop body
LE: loop exit
PB: predicated region body
PF: predicated region fallthrough
CT: control target
= control target key end

     0   :  { %s6394_s0 = inlined_call_operand.vmem [shape: f32[2,1,896], index: 0, kind: input, shape index: {}]   ;;  %s6395_s1 = inlined_call_operand.vmem [shape: bf16[643,144], index: 1, kind: input, shape index: {}]   ;;  %s6396_s2 = inlined_call_operand.vmem [shape: bf16[83,16], index: 2, kind: input, shape index: {}]   ;;  %s6397_s3 = inlined_call_operand.vmem [shape: f32[8,25], index: 3, kind: input, shape index: {}]   ;;  %s6398_s4 = inlined_call_operand.vmem [shape: f32[8,1], index: 4, kind: input, shape index: {}]   ;;  %s6399_s5 = inlined_call_operand.vmem [shape: bf16[16,200], index: 5, kind: input, shape index: {}]   ;;  %s6400_s6 = inlined_call_operand.vmem [shape: f32[16,1], index: 6, kind: input, shape index: {}]   ;;  %s6401_s7 = inlined_call_operand.vmem [shape: bf16[120,256], index: 7, kind: input, shape index: {}]   ;;  %s6402_s8 = inlined_call_operand.vmem [shape: f32[120,1], index: 8, kind: input, shape index: {}]   ;;  %s6403_s9 = inlined_call_operand.vmem [shape: bf16[84,120], index: 9, kind: input, shape index: {}]   ;;  %s6404_s10 = inlined_call_operand.vmem [shape: f32[84,1], index: 10, kind: input, shape index: {}]   ;;  %s6405_s11 = inlined_call_operand.vmem [shape: bf16[84,10], index: 11, kind: input, shape index: {}]   ;;  %s6406_s12 = inlined_call_operand.vmem [shape: f32[1,10], index: 12, kind: input, shape index: {}]   ;;  %s6407_s13 = inlined_call_operand.hbm [shape: f32[2,1,128], index: 13, kind: output, shape index: {}]  }
   0x1   :  { %6505 = sst [smem:[#allocation64_spill]] %s6394_s0 }
   0x2   :  { %6506 = sst [smem:[#allocation65_spill]] %s6397_s3 }
   0x3   :  { %6507 = sst [smem:[#allocation66_spill]] %s6398_s4 }
   0x4   :  { %18 = vsyncpa [#allocation3], 0 }
   0x5   :  { %20 = vsyncpa [#allocation3 + $0x1], 0  ;;  %s4381_s25 = smov 0   ;;  %s4383_s26 = smov 0  }
   0x6   :  { %s4385_s27 = smov 0   ;;  %s4387_s28 = smov 0  }
   0x7 LB: > { %6508 = sst [smem:[#allocation5_spill]] %s4234_s27  ;;  %s4402_s29 = sadd.s32 4294967295, %s4238_s28   ;;  %s4238_s28 = sphi %s4387_s28, %s6682_s28   ;;  %s4234_s27 = sphi %s4385_s27, %s6679_s27   ;;  %s4230_s26 = sphi %s4383_s26, %s6681_s26   ;;  %s4226_s25 = sphi %s4381_s25, %s6680_s25  }
   0x8   : > { %s3388_s30 = sadd.s32 4294967294, %s4238_s28   ;;  %s4406_s14 = sadd.s32 1, %s4238_s28  }
   0x9   : > { %s311_s15 = sadd.s32 1, %s4234_s27  ;;  %s308_s16 = ssub.s32 %s4238_s28, %s4406_s14 }
   0xa   : > { %p321_p0 = scmp.ne.s32.totalorder %s4234_s27, %s4230_s26  ;;  %p309_p1 = scmp.eq.s32.totalorder %s308_s16, 0 }
   0xb   : > { %p322_p2 = scmp.eq.s32.totalorder %s4402_s29, 1  ;;  %p327_p3 = scmp.ne.s32.totalorder %s4230_s26, %s4226_s25 }
   0xc   : > { %p328_p4 = scmp.eq.s32.totalorder %s3388_s30, 1  ;;  %p3391_p7 = scmp.ge.s32.totalorder %s4238_s28, 1 }
   0xd   : > { %s4417_s17 = scalar_select %p309_p1, %s4234_s27, %s311_s15  }
   0xe   : > { %p4419_p5 = por %p322_p2, %p321_p0  ;;  %p4423_p6 = por %p328_p4, %p327_p3 }
   0xf   : > { %6509 = sst [smem:[#allocation6_spill]] %s4417_s17  ;;  %p389_p8 = scmp.lt.s32.totalorder %s4238_s28, 3 }
  0x11   : > { %p390_p9 = pnand %p3391_p7, %p389_p8 }
  0x13   : > { %393 = sbr.rel (%p390_p9) target bundleno = 2892 (0xb4c), region = 72 }
  0x18   : > { %s6512_s3 = sld [smem:[#allocation65_spill]]  ;;  %v4240_v1 = vmov 1   ;;  %v4241_v2 = vmov 3   ;;  %v4242_v3 = vmov 2   ;;  %v4243_v4 = vmov 4   ;;  %p431_p10 = scmp.lt.s32.totalorder %s4402_s29, 1 }
  0x19   : > { %3786 = vset.pattern.permute.xlu0 %v4240_v1  ;;  %3788 = vset.pattern.permute.xlu1 %v4241_v2  ;;  %v4244_v5 = vmov 5   ;;  %v4245_v6 = vmov 6   ;;  %v4246_v7 = vmov 7   ;;  %v4247_v8 = vmov 9   ;;  %s6513_s0 = sld [smem:[#allocation64_spill]]  ;;  %s6432_s16 = smov 127  }
  0x1a   : > { %v4248_v9 = vmov 8   ;;  %v4249_v10 = vmov 12   ;;  %v4250_v11 = vmov 10   ;;  %v4251_v12 = vmov 15   ;;  %s432_s22 = scalar_select %p431_p10, %s4402_s29, 1 }
  0x1b   : > { %v4252_v13 = vmov 11   ;;  %v4253_v14 = vmov 18   ;;  %v4254_v15 = vmov 13   ;;  %v4255_v16 = vmov 21   ;;  %s6459_s20 = smov 126   ;;  %s6448_s21 = smov 125  }
  0x1c   : > { %v4256_v17 = vmov 14   ;;  %v4257_v18 = vmov 24   ;;  %v4258_v19 = vmov 16   ;;  %v6417_v20 = vmov 0   ;;  %s3676_s23 = smul.u32 7, %s432_s22  ;;  %s6454_s22 = smov 124  }
  0x1d   : > { %v4260_v21 = vmov 17   ;;  %v4261_v22 = vmov 19   ;;  %v4262_v23 = vmov 20   ;;  %v4263_v24 = vmov 22   ;;  %s6408_s24 = smov 99   ;;  %s6409_s30 = smov 98  }
  0x1e   : > { %v4432_v0 = vld [vmem:[%s6512_s3] sm:$0xff]  ;;  %v4264_v25 = vmov 23   ;;  %v541_v26 = vlaneseq  ;;  %s6558_s4 = sld [smem:[#allocation66_spill]]  ;;  %vm611_vm0 = vcmask 1039360   ;;  %vm657_vm1 = vcmask 1031168   ;;  %s6504_s27 = smov 114  }
  0x1f   : > { %584 = vperm.xlu0 %3786, %v4432_v0   ;;  %676 = vperm.xlu1 %3788, %v4432_v0   ;;  %s4468_s15 = scalar_lea.vmem %s6513_s0, %s3676_s23  ;;  %s6462_s23 = smov 100   ;;  %vm703_vm2 = vcmask 1022976   ;;  %vm749_vm3 = vcmask 1014784   ;;  %vm795_vm4 = vcmask 818176   ;;  %vm841_vm5 = vcmask 809984  }
  0x20   : > { %v4463_v27 = vshrl.u32 %v541_v26, 7  ;;  %v4473_v30 = vld [vmem:[%s4468_s15] sm:$0x3f]  ;;  %vm887_vm6 = vcmask 801792   ;;  %vm933_vm7 = vcmask 793600   ;;  %vm6493_vm8 = vcmask 785408  }
  0x21   : > { %vm6500_vm9 = vcmask 588800   ;;  %vm6494_vm10 = vcmask 580608   ;;  %vm6495_vm11 = vcmask 572416   ;;  %vm6496_vm12 = vcmask 564224   ;;  %s6503_s0 = smov 115   ;;  %s6671_s17 = smov 126  }
  0x22   : > { %v6424_v28 = vsub.s32 2, %v4463_v27  ;;  %v6423_v29 = vsub.s32 1, %v4463_v27  ;;  %v6422_v33 = vsub.s32 4, %v4463_v27  ;;  %v6420_v34 = vsub.s32 3, %v4463_v27  ;;  %s6502_s3 = smov 117  }
  0x23   : > { %3787 = vset.pattern.permute.xlu0 %v4242_v3  ;;  %3789 = vset.pattern.permute.xlu1 %v4243_v4  ;;  %v6419_v36 = vsub.s32 0, %v4463_v27  ;;  %vm6497_vm13 = vcmask 556032   ;;  %vm6499_vm14 = vcmask 359424   ;;  %vm6498_vm15 = vcmask 351232  }
  0x24   : > { %630 = vperm.xlu0 %3787, %v4432_v0   ;;  %722 = vperm.xlu1 %3789, %v4432_v0   ;;  %v4478_v31 = vrot.slane %v4473_v30, %v6424_v28  ;;  %v4483_v32 = vrot.slane %v4473_v30, %v6423_v29  ;;  %v4497_v39 = vrot.slane %v4473_v30, %v6422_v33 }
  0x25   : > { %v4502_v40 = vrot.slane %v4473_v30, %v6420_v34  ;;  %v4515_v44 = vrot.slane %v4473_v30, %v6419_v36  ;;  %v6426_v34 = vsub.s32 5, %v4463_v27 }
  0x27   : > { %v4859_v28 = vrot.slane %v4473_v30, %v6426_v34 }
  0x28   : > { %3790 = vset.pattern.permute.xlu1 %v4244_v5  ;;  %3791 = vset.pattern.permute.xlu0 %v4245_v6 }
  0x29   : > { %768 = vperm.xlu1 %3790, %v4432_v0   ;;  %814 = vperm.xlu0 %3791, %v4432_v0  }
  0x2d   : > { %3792 = vset.pattern.permute.xlu1 %v4246_v7  ;;  %3794 = vset.pattern.permute.xlu0 %v4247_v8 }
  0x2e   : > { %860 = vperm.xlu1 %3792, %v4432_v0   ;;  %952 = vperm.xlu0 %3794, %v4432_v0  }
  0x32   : > { %3793 = vset.pattern.permute.xlu1 %v4248_v9  ;;  %3797 = vset.pattern.permute.xlu0 %v4249_v10 }
  0x33   : > { %906 = vperm.xlu1 %3793, %v4432_v0   ;;  %1090 = vperm.xlu0 %3797, %v4432_v0  }
  0x37   : > { %3795 = vset.pattern.permute.xlu1 %v4250_v11  ;;  %3800 = vset.pattern.permute.xlu0 %v4251_v12 }
  0x38   : > { %998 = vperm.xlu1 %3795, %v4432_v0   ;;  %1228 = vperm.xlu0 %3800, %v4432_v0  }
  0x3c   : > { %3796 = vset.pattern.permute.xlu1 %v4252_v13  ;;  %3803 = vset.pattern.permute.xlu0 %v4253_v14 }
  0x3d   : > { %1044 = vperm.xlu1 %3796, %v4432_v0   ;;  %1366 = vperm.xlu0 %3803, %v4432_v0  }
  0x41   : > { %3798 = vset.pattern.permute.xlu1 %v4254_v15  ;;  %3806 = vset.pattern.permute.xlu0 %v4255_v16 }
  0x42   : > { %1136 = vperm.xlu1 %3798, %v4432_v0   ;;  %1546 = vperm.xlu0 %3806, %v4432_v0  }
  0x46   : > { %3799 = vset.pattern.permute.xlu1 %v4256_v17  ;;  %3809 = vset.pattern.permute.xlu0 %v4257_v18 }
  0x47   : > { %1182 = vperm.xlu1 %3799, %v4432_v0   ;;  %1699 = vperm.xlu0 %3809, %v4432_v0  }
  0x4b   : > { %3801 = vset.pattern.permute.xlu1 %v4258_v19  ;;  %3926 = vset.pattern.permute.xlu0 %v6417_v20 }
  0x4c   : > { %1274 = vperm.xlu1 %3801, %v4432_v0  }
  0x50   : > { %3802 = vset.pattern.permute.xlu1 %v4260_v21 }
  0x51   : > { %1320 = vperm.xlu1 %3802, %v4432_v0  }
  0x55   : > { %3804 = vset.pattern.permute.xlu1 %v4261_v22 }
  0x56   : > { %1412 = vperm.xlu1 %3804, %v4432_v0  }
  0x5a   : > { %3805 = vset.pattern.permute.xlu1 %v4262_v23 }
  0x5b   : > { %1459 = vperm.xlu1 %3805, %v4432_v0  }
  0x5f   : > { %3807 = vset.pattern.permute.xlu1 %v4263_v24 }
  0x60   : > { %1597 = vperm.xlu1 %3807, %v4432_v0  }
  0x64   : > { %3808 = vset.pattern.permute.xlu1 %v4264_v25 }
  0x65   : > { %1648 = vperm.xlu1 %3808, %v4432_v0  }
  0x69   : > { %3810 = vset.pattern.permute.xlu1 %v6417_v20 }
  0x6a   : > { %537 = vperm.xlu1 %3810, %v4432_v0  }
  0x9a   : > { %v4487_v35 = vpop.permute.xlu0 %584  ;;  %v4531_v49 = vpop.permute.xlu1 %676 }
  0x9b   : > { %v589_v37 = vmul.f32 %v4487_v35, %v4478_v31  ;;  %v588_v38 = vmul.f32 %v4487_v35, %v4483_v32  ;;  %v591_v41 = vmul.f32 %v4487_v35, %v4497_v39  ;;  %v590_v42 = vmul.f32 %v4487_v35, %v4502_v40 }
  0x9c   : > { %v587_v46 = vmul.f32 %v4487_v35, %v4515_v44  ;;  %v681_v52 = vmul.f32 %v4531_v49, %v4478_v31  ;;  %v680_v53 = vmul.f32 %v4531_v49, %v4483_v32  ;;  %v683_v55 = vmul.f32 %v4531_v49, %v4497_v39 }
  0x9d   : > { %603 = vrot.lane.b32.xlu0 %v589_v37, %s6432_s16  ;;  %601 = vrot.lane.b32.xlu1 %v588_v38, %s6432_s16  ;;  %v682_v56 = vmul.f32 %v4531_v49, %v4502_v40  ;;  %v679_v58 = vmul.f32 %v4531_v49, %v4515_v44 }
  0x9f   : > { %v4510_v43 = vpop.permute.xlu0 %630  ;;  %v4545_v54 = vpop.permute.xlu1 %722 }
  0xa0   : > { %v634_v45 = vmul.f32 %v4510_v43, %v4483_v32  ;;  %v636_v47 = vmul.f32 %v4510_v43, %v4502_v40  ;;  %v635_v48 = vmul.f32 %v4510_v43, %v4478_v31  ;;  %v633_v50 = vmul.f32 %v4510_v43, %v4515_v44 }
  0xa1   : > { %607 = vrot.lane.b32.xlu0 %v591_v41, %s6432_s16  ;;  %605 = vrot.lane.b32.xlu1 %v590_v42, %s6432_s16  ;;  %v637_v51 = vmul.f32 %v4510_v43, %v4497_v39  ;;  %v726_v57 = vmul.f32 %v4545_v54, %v4483_v32  ;;  %v728_v59 = vmul.f32 %v4545_v54, %v4502_v40 }
  0xa2   : > { %v727_v60 = vmul.f32 %v4545_v54, %v4478_v31  ;;  %v725_v62 = vmul.f32 %v4545_v54, %v4515_v44  ;;  %v729_v63 = vmul.f32 %v4545_v54, %v4497_v39 }
  0xa4   : > { %v4565_v61 = vpop.permute.xlu1 %768  ;;  %v4581_v3 = vpop.permute.xlu0 %814 }
  0xa5   : > { %647 = vrot.lane.b32.xlu0 %v634_v45, %s6459_s20  ;;  %599 = vrot.lane.b32.xlu1 %v587_v46, %s6432_s16  ;;  %v773_v0 = vmul.f32 %v4565_v61, %v4478_v31  ;;  %v772_v1 = vmul.f32 %v4565_v61, %v4483_v32  ;;  %v775_v4 = vmul.f32 %v4565_v61, %v4497_v39 }
  0xa6   : > { %v774_v5 = vmul.f32 %v4565_v61, %v4502_v40  ;;  %v818_v7 = vmul.f32 %v4581_v3, %v4483_v32  ;;  %v771_v8 = vmul.f32 %v4565_v61, %v4515_v44  ;;  %v820_v9 = vmul.f32 %v4581_v3, %v4502_v40 }
  0xa7   : > { %v819_v10 = vmul.f32 %v4581_v3, %v4478_v31  ;;  %v817_v12 = vmul.f32 %v4581_v3, %v4515_v44  ;;  %v821_v13 = vmul.f32 %v4581_v3, %v4497_v39 }
  0xa9   : > { %651 = vrot.lane.b32.xlu0 %v636_v47, %s6459_s20  ;;  %649 = vrot.lane.b32.xlu1 %v635_v48, %s6459_s20  ;;  %v4577_v2 = vpop.permute.xlu1 %860  ;;  %v4643_v37 = vpop.permute.xlu0 %952 }
  0xaa   : > { %v865_v15 = vmul.f32 %v4577_v2, %v4478_v31  ;;  %v864_v16 = vmul.f32 %v4577_v2, %v4483_v32  ;;  %v867_v18 = vmul.f32 %v4577_v2, %v4497_v39  ;;  %v866_v19 = vmul.f32 %v4577_v2, %v4502_v40 }
  0xab   : > { %v863_v22 = vmul.f32 %v4577_v2, %v4515_v44  ;;  %v957_v42 = vmul.f32 %v4643_v37, %v4478_v31  ;;  %v956_v45 = vmul.f32 %v4643_v37, %v4483_v32  ;;  %v959_v47 = vmul.f32 %v4643_v37, %v4497_v39 }
  0xac   : > { %v958_v48 = vmul.f32 %v4643_v37, %v4502_v40 }
  0xad   : > { %645 = vrot.lane.b32.xlu0 %v633_v50, %s6459_s20  ;;  %653 = vrot.lane.b32.xlu1 %v637_v51, %s6459_s20 }
  0xae   : > { %v4587_v6 = vpop.permute.xlu1 %906  ;;  %v4667_v51 = vpop.permute.xlu0 %1090 }
  0xaf   : > { %v910_v21 = vmul.f32 %v4587_v6, %v4483_v32  ;;  %v912_v24 = vmul.f32 %v4587_v6, %v4502_v40  ;;  %v911_v25 = vmul.f32 %v4587_v6, %v4478_v31  ;;  %v909_v38 = vmul.f32 %v4587_v6, %v4515_v44 }
  0xb0   : > { %v913_v41 = vmul.f32 %v4587_v6, %v4497_v39 }
  0xb1   : > { %695 = vrot.lane.b32.xlu0 %v681_v52, %s6448_s21  ;;  %693 = vrot.lane.b32.xlu1 %v680_v53, %s6448_s21  ;;  %v955_v53 = vmul.f32 %v4643_v37, %v4515_v44 }
  0xb3   : > { %v4601_v11 = vpop.permute.xlu1 %998 }
  0xb4   : > { %v1002_v52 = vmul.f32 %v4601_v11, %v4483_v32 }
  0xb5   : > { %699 = vrot.lane.b32.xlu0 %v683_v55, %s6448_s21  ;;  %697 = vrot.lane.b32.xlu1 %v682_v56, %s6448_s21  ;;  %v1004_v55 = vmul.f32 %v4601_v11, %v4502_v40  ;;  %v1003_v56 = vmul.f32 %v4601_v11, %v4478_v31 }
  0xb8   : > { %v4609_v14 = vpop.permute.xlu1 %1044 }
  0xb9   : > { %739 = vrot.lane.b32.xlu0 %v726_v57, %s6454_s22  ;;  %691 = vrot.lane.b32.xlu1 %v679_v58, %s6448_s21  ;;  %v4681_v58 = vpop.permute.xlu0 %1228 }
  0xbd   : > { %743 = vrot.lane.b32.xlu0 %v728_v59, %s6454_s22  ;;  %741 = vrot.lane.b32.xlu1 %v727_v60, %s6454_s22  ;;  %v4619_v17 = vpop.permute.xlu1 %1136  ;;  %v1001_v59 = vmul.f32 %v4601_v11, %v4515_v44  ;;  %v1005_v60 = vmul.f32 %v4601_v11, %v4497_v39 }
  0xc1   : > { %737 = vrot.lane.b32.xlu0 %v725_v62, %s6454_s22  ;;  %745 = vrot.lane.b32.xlu1 %v729_v63, %s6454_s22  ;;  %v4693_v63 = vpop.permute.xlu0 %1366 }
  0xc2   : > { %v4631_v23 = vpop.permute.xlu1 %1182 }
  0xc5   : > { %787 = vrot.lane.b32.xlu0 %v773_v0, %s6462_s23  ;;  %785 = vrot.lane.b32.xlu1 %v772_v1, %s6462_s23  ;;  %v1049_v0 = vmul.f32 %v4609_v14, %v4478_v31  ;;  %v1048_v1 = vmul.f32 %v4609_v14, %v4483_v32 }
  0xc7   : > { %v4641_v26 = vpop.permute.xlu1 %1274 }
  0xc9   : > { %791 = vrot.lane.b32.xlu0 %v775_v4, %s6462_s23  ;;  %789 = vrot.lane.b32.xlu1 %v774_v5, %s6462_s23  ;;  %v1051_v4 = vmul.f32 %v4609_v14, %v4497_v39  ;;  %v1050_v5 = vmul.f32 %v4609_v14, %v4502_v40 }
  0xcc   : > { %v4655_v46 = vpop.permute.xlu1 %1320 }
  0xcd   : > { %831 = vrot.lane.b32.xlu0 %v818_v7, %s6408_s24  ;;  %783 = vrot.lane.b32.xlu1 %v771_v8, %s6462_s23  ;;  %v4707_v8 = vpop.permute.xlu0 %1546  ;;  %v1327_v33 = vmul.f32 %v4655_v46, %v4497_v39  ;;  %v1326_v29 = vmul.f32 %v4655_v46, %v4502_v40 }
  0xd1   : > { %835 = vrot.lane.b32.xlu0 %v820_v9, %s6408_s24  ;;  %833 = vrot.lane.b32.xlu1 %v819_v10, %s6408_s24  ;;  %v4665_v50 = vpop.permute.xlu1 %1412  ;;  %v1094_v9 = vmul.f32 %v4667_v51, %v4483_v32  ;;  %v1047_v10 = vmul.f32 %v4609_v14, %v4515_v44 }
  0xd5   : > { %829 = vrot.lane.b32.xlu0 %v817_v12, %s6408_s24  ;;  %837 = vrot.lane.b32.xlu1 %v821_v13, %s6408_s24  ;;  %s6410_s24 = smov 97   ;;  %v4719_v13 = vpop.permute.xlu0 %1699 }
  0xd6   : > { %v4679_v57 = vpop.permute.xlu1 %1459 }
  0xd9   : > { %879 = vrot.lane.b32.xlu0 %v865_v15, %s6409_s30  ;;  %877 = vrot.lane.b32.xlu1 %v864_v16, %s6409_s30  ;;  %v1096_v15 = vmul.f32 %v4667_v51, %v4502_v40  ;;  %v1095_v16 = vmul.f32 %v4667_v51, %v4478_v31 }
  0xdb   : > { %v4691_v62 = vpop.permute.xlu1 %1597 }
  0xdd   : > { %883 = vrot.lane.b32.xlu0 %v867_v18, %s6409_s30  ;;  %881 = vrot.lane.b32.xlu1 %v866_v19, %s6409_s30 }
  0xe0   : > { %v4705_v7 = vpop.permute.xlu1 %1648 }
  0xe1   : > { %923 = vrot.lane.b32.xlu0 %v910_v21, %s6410_s24  ;;  %875 = vrot.lane.b32.xlu1 %v863_v22, %s6409_s30  ;;  %s6411_s30 = smov 96   ;;  %v1093_v21 = vmul.f32 %v4667_v51, %v4515_v44  ;;  %v1097_v22 = vmul.f32 %v4667_v51, %v4497_v39 }
  0xe5   : > { %927 = vrot.lane.b32.xlu0 %v912_v24, %s6410_s24  ;;  %925 = vrot.lane.b32.xlu1 %v911_v25, %s6410_s24  ;;  %v4717_v12 = vpop.permute.xlu1 %537 }
  0xe9   : > { %921 = vrot.lane.b32.xlu0 %v909_v38, %s6410_s24  ;;  %929 = vrot.lane.b32.xlu1 %v913_v41, %s6410_s24  ;;  %s6412_s24 = smov 72   ;;  %v1141_v38 = vmul.f32 %v4619_v17, %v4478_v31  ;;  %v1140_v41 = vmul.f32 %v4619_v17, %v4483_v32 }
  0xed   : > { %971 = vrot.lane.b32.xlu0 %v957_v42, %s6411_s30  ;;  %969 = vrot.lane.b32.xlu1 %v956_v45, %s6411_s30 }
  0xf1   : > { %975 = vrot.lane.b32.xlu0 %v959_v47, %s6411_s30  ;;  %973 = vrot.lane.b32.xlu1 %v958_v48, %s6411_s30  ;;  %v1143_v47 = vmul.f32 %v4619_v17, %v4497_v39  ;;  %v1142_v48 = vmul.f32 %v4619_v17, %v4502_v40 }
  0xf5   : > { %1015 = vrot.lane.b32.xlu0 %v1002_v52, %s6412_s24  ;;  %967 = vrot.lane.b32.xlu1 %v955_v53, %s6411_s30  ;;  %s6413_s30 = smov 71  }
  0xf9   : > { %1019 = vrot.lane.b32.xlu0 %v1004_v55, %s6412_s24  ;;  %1017 = vrot.lane.b32.xlu1 %v1003_v56, %s6412_s24  ;;  %v1186_v55 = vmul.f32 %v4631_v23, %v4483_v32  ;;  %v1139_v56 = vmul.f32 %v4619_v17, %v4515_v44 }
  0xfd   : > { %1013 = vrot.lane.b32.xlu0 %v1001_v59, %s6412_s24  ;;  %1021 = vrot.lane.b32.xlu1 %v1005_v60, %s6412_s24  ;;  %s6414_s24 = smov 70  }
 0x101   : > { %1063 = vrot.lane.b32.xlu0 %v1049_v0, %s6413_s30  ;;  %1061 = vrot.lane.b32.xlu1 %v1048_v1, %s6413_s30  ;;  %v1188_v0 = vmul.f32 %v4631_v23, %v4502_v40  ;;  %v1187_v1 = vmul.f32 %v4631_v23, %v4478_v31 }
 0x105   : > { %1067 = vrot.lane.b32.xlu0 %v1051_v4, %s6413_s30  ;;  %1065 = vrot.lane.b32.xlu1 %v1050_v5, %s6413_s30 }
 0x109   : > { %1107 = vrot.lane.b32.xlu0 %v1094_v9, %s6414_s24  ;;  %1059 = vrot.lane.b32.xlu1 %v1047_v10, %s6413_s30  ;;  %s6415_s30 = smov 69   ;;  %v1185_v9 = vmul.f32 %v4631_v23, %v4515_v44  ;;  %v1189_v10 = vmul.f32 %v4631_v23, %v4497_v39 }
 0x10d   : > { %1111 = vrot.lane.b32.xlu0 %v1096_v15, %s6414_s24  ;;  %1109 = vrot.lane.b32.xlu1 %v1095_v16, %s6414_s24 }
 0x10f   : > { %v4727_v18 = vpop.permute.xlu0 %603  ;;  %v4729_v19 = vpop.permute.xlu1 %601 }
 0x111   : > { %1105 = vrot.lane.b32.xlu0 %v1093_v21, %s6414_s24  ;;  %1113 = vrot.lane.b32.xlu1 %v1097_v22, %s6414_s24  ;;  %s6416_s24 = smov 68   ;;  %v1233_v21 = vmul.f32 %v4681_v58, %v4478_v31  ;;  %v1232_v22 = vmul.f32 %v4681_v58, %v4483_v32 }
 0x113   : > { %v4737_v24 = vpop.permute.xlu0 %607  ;;  %v4739_v25 = vpop.permute.xlu1 %605 }
 0x115   : > { %1155 = vrot.lane.b32.xlu0 %v1141_v38, %s6415_s30  ;;  %1153 = vrot.lane.b32.xlu1 %v1140_v41, %s6415_s30 }
 0x117   : > { %v4747_v42 = vpop.permute.xlu0 %647  ;;  %v4749_v45 = vpop.permute.xlu1 %599 }
 0x119   : > { %1159 = vrot.lane.b32.xlu0 %v1143_v47, %s6415_s30  ;;  %1157 = vrot.lane.b32.xlu1 %v1142_v48, %s6415_s30  ;;  %v1235_v47 = vmul.f32 %v4681_v58, %v4497_v39  ;;  %v1234_v48 = vmul.f32 %v4681_v58, %v4502_v40 }
 0x11b   : > { %v4757_v52 = vpop.permute.xlu0 %651  ;;  %v4759_v53 = vpop.permute.xlu1 %649 }
 0x11d   : > { %1199 = vrot.lane.b32.xlu0 %v1186_v55, %s6416_s24  ;;  %1151 = vrot.lane.b32.xlu1 %v1139_v56, %s6415_s30  ;;  %s6421_s30 = smov 44  }
 0x11f   : > { %v4767_v59 = vpop.permute.xlu0 %645  ;;  %v4769_v60 = vpop.permute.xlu1 %653 }
 0x121   : > { %1203 = vrot.lane.b32.xlu0 %v1188_v0, %s6416_s24  ;;  %1201 = vrot.lane.b32.xlu1 %v1187_v1, %s6416_s24  ;;  %v1278_v0 = vmul.f32 %v4641_v26, %v4483_v32  ;;  %v1231_v1 = vmul.f32 %v4681_v58, %v4515_v44 }
 0x123   : > { %v4777_v4 = vpop.permute.xlu0 %695  ;;  %v4779_v5 = vpop.permute.xlu1 %693 }
 0x125   : > { %1197 = vrot.lane.b32.xlu0 %v1185_v9, %s6416_s24  ;;  %1205 = vrot.lane.b32.xlu1 %v1189_v10, %s6416_s24  ;;  %s6427_s24 = smov 43  }
 0x127   : > { %v4787_v15 = vpop.permute.xlu0 %699  ;;  %v4789_v16 = vpop.permute.xlu1 %697 }
 0x129   : > { %1247 = vrot.lane.b32.xlu0 %v1233_v21, %s6421_s30  ;;  %1245 = vrot.lane.b32.xlu1 %v1232_v22, %s6421_s30  ;;  %v1280_v21 = vmul.f32 %v4641_v26, %v4502_v40  ;;  %v1279_v22 = vmul.f32 %v4641_v26, %v4478_v31 }
 0x12b   : > { %v4797_v38 = vpop.permute.xlu0 %739  ;;  %v4799_v41 = vpop.permute.xlu1 %691 }
 0x12d   : > { %1251 = vrot.lane.b32.xlu0 %v1235_v47, %s6421_s30  ;;  %1249 = vrot.lane.b32.xlu1 %v1234_v48, %s6421_s30 }
 0x12f   : > { %v4807_v55 = vpop.permute.xlu0 %743  ;;  %v4809_v56 = vpop.permute.xlu1 %741 }
 0x131   : > { %1291 = vrot.lane.b32.xlu0 %v1278_v0, %s6427_s24  ;;  %1243 = vrot.lane.b32.xlu1 %v1231_v1, %s6421_s30  ;;  %v1277_v0 = vmul.f32 %v4641_v26, %v4515_v44  ;;  %v1281_v1 = vmul.f32 %v4641_v26, %v4497_v39  ;;  %s4281_s30 = smov 42  }
 0x133   : > { %v4817_v9 = vpop.permute.xlu0 %737  ;;  %v4819_v10 = vpop.permute.xlu1 %745 }
 0x135   : > { %1295 = vrot.lane.b32.xlu0 %v1280_v21, %s6427_s24  ;;  %1293 = vrot.lane.b32.xlu1 %v1279_v22, %s6427_s24  ;;  %v1325_v21 = vmul.f32 %v4655_v46, %v4478_v31  ;;  %v1324_v22 = vmul.f32 %v4655_v46, %v4483_v32 }
 0x137   : > { %v4827_v47 = vpop.permute.xlu0 %787  ;;  %v4829_v48 = vpop.permute.xlu1 %785 }
 0x138   : > { %6514 = vst [vmem:[#allocation7_spill] sm:$0xff] %v4829_v48 }
 0x139   : > { %1289 = vrot.lane.b32.xlu0 %v1277_v0, %s6427_s24  ;;  %1297 = vrot.lane.b32.xlu1 %v1281_v1, %s6427_s24  ;;  %s4282_s24 = smov 41  }
 0x13b   : > { %v4837_v20 = vpop.permute.xlu0 %791  ;;  %v4839_v36 = vpop.permute.xlu1 %789 }
 0x13c   : > { %6515 = vst [vmem:[#allocation8_spill] sm:$0xff] %v4837_v20  ;;  %6516 = vst [vmem:[#allocation9_spill] sm:$0xff] %v4839_v36  ;;  %v6541_v36 = vsub.s32 0, %v4463_v27 }
 0x13d   : > { %1339 = vrot.lane.b32.xlu0 %v1325_v21, %s4281_s30  ;;  %1337 = vrot.lane.b32.xlu1 %v1324_v22, %s4281_s30 }
 0x13f   : > { %v4848_v0 = vpop.permute.xlu0 %831  ;;  %v4850_v1 = vpop.permute.xlu1 %783 }
 0x140   : > { %6517 = vst [vmem:[#allocation10_spill] sm:$0xff] %v4848_v0  ;;  %6518 = vst [vmem:[#allocation11_spill] sm:$0xff] %v4850_v1  ;;  %v1323_v0 = vmul.f32 %v4655_v46, %v4515_v44  ;;  %v592_v1 = vmul.f32 %v4487_v35, %v4859_v28 }
 0x141   : > { %1343 = vrot.lane.b32.xlu0 %v1327_v33, %s4281_s30  ;;  %1341 = vrot.lane.b32.xlu1 %v1326_v29, %s4281_s30  ;;  %v1371_v29 = vmul.f32 %v4693_v63, %v4478_v31  ;;  %v1370_v33 = vmul.f32 %v4693_v63, %v4483_v32 }
 0x143   : > { %v4863_v21 = vpop.permute.xlu0 %835  ;;  %v4865_v22 = vpop.permute.xlu1 %833 }
 0x144   : > { %6519 = vst [vmem:[#allocation12_spill] sm:$0xff] %v4863_v21  ;;  %6520 = vst [vmem:[#allocation13_spill] sm:$0xff] %v4865_v22  ;;  %v6534_v22 = vsub.s32 1, %v4463_v27 }
 0x145   : > { %1335 = vrot.lane.b32.xlu0 %v1323_v0, %s4281_s30  ;;  %609 = vrot.lane.b32.xlu1 %v592_v1, %s6432_s16  ;;  %v1373_v1 = vmul.f32 %v4693_v63, %v4497_v39  ;;  %s4283_s16 = smov 40  }
 0x147   : > { %v4873_v30 = vpop.permute.xlu0 %829  ;;  %v4875_v34 = vpop.permute.xlu1 %837 }
 0x148   : > { %6521 = vst [vmem:[#allocation14_spill] sm:$0xff] %v4873_v30  ;;  %6522 = vst [vmem:[#allocation15_spill] sm:$0xff] %v4875_v34  ;;  %v1372_v34 = vmul.f32 %v4693_v63, %v4502_v40 }
 0x149   : > { %1385 = vrot.lane.b32.xlu0 %v1371_v29, %s4282_s24  ;;  %1383 = vrot.lane.b32.xlu1 %v1370_v33, %s4282_s24  ;;  %v1369_v29 = vmul.f32 %v4693_v63, %v4515_v44  ;;  %v638_v33 = vmul.f32 %v4510_v43, %v4859_v28 }
 0x14b   : > { %v4883_v35 = vpop.permute.xlu0 %879  ;;  %v4885_v0 = vpop.permute.xlu1 %877 }
 0x14c   : > { %6523 = vst [vmem:[#allocation16_spill] sm:$0xff] %v4883_v35  ;;  %6524 = vst [vmem:[#allocation17_spill] sm:$0xff] %v4885_v0 }
 0x14d   : > { %1389 = vrot.lane.b32.xlu0 %v1373_v1, %s4282_s24  ;;  %1387 = vrot.lane.b32.xlu1 %v1372_v34, %s4282_s24  ;;  %v1417_v34 = vmul.f32 %v4665_v50, %v4478_v31 }
 0x14f   : > { %v4893_v30 = vpop.permute.xlu0 %883  ;;  %v4895_v21 = vpop.permute.xlu1 %881 }
 0x150   : > { %6525 = vst [vmem:[#allocation18_spill] sm:$0xff] %v4893_v30  ;;  %6526 = vst [vmem:[#allocation19_spill] sm:$0xff] %v4895_v21  ;;  %v1416_v30 = vmul.f32 %v4665_v50, %v4483_v32 }
 0x151   : > { %1381 = vrot.lane.b32.xlu0 %v1369_v29, %s4282_s24  ;;  %655 = vrot.lane.b32.xlu1 %v638_v33, %s6459_s20  ;;  %v1419_v33 = vmul.f32 %v4665_v50, %v4497_v39  ;;  %s6553_s20 = smov 99  }
 0x153   : > { %v4903_v0 = vpop.permute.xlu0 %923  ;;  %v4905_v1 = vpop.permute.xlu1 %875 }
 0x154   : > { %6527 = vst [vmem:[#allocation20_spill] sm:$0xff] %v4903_v0  ;;  %6528 = vst [vmem:[#allocation21_spill] sm:$0xff] %v4905_v1  ;;  %v1418_v0 = vmul.f32 %v4665_v50, %v4502_v40  ;;  %v4922_v1 = vld [vmem:[%s4468_s15] sm:$0x7f]  ;;  %s4284_s15 = smov 16  }
 0x155   : > { %1431 = vrot.lane.b32.xlu0 %v1417_v34, %s4283_s16  ;;  %1429 = vrot.lane.b32.xlu1 %v1416_v30, %s4283_s16  ;;  %v1415_v30 = vmul.f32 %v4665_v50, %v4515_v44 }
 0x157   : > { %v4913_v43 = vpop.permute.xlu0 %927  ;;  %v4915_v29 = vpop.permute.xlu1 %925 }
 0x158   : > { %6529 = vst [vmem:[#allocation22_spill] sm:$0xff] %v4913_v43  ;;  %6530 = vst [vmem:[#allocation23_spill] sm:$0xff] %v4915_v29  ;;  %v684_v43 = vmul.f32 %v4531_v49, %v4859_v28  ;;  %v6533_v29 = vsub.s32 2, %v4463_v27 }
 0x159   : > { %1435 = vrot.lane.b32.xlu0 %v1419_v33, %s4283_s16  ;;  %1433 = vrot.lane.b32.xlu1 %v1418_v0, %s4283_s16  ;;  %v4942_v33 = vrot.slane %v4922_v1, %v6534_v22  ;;  %v6538_v22 = vsub.s32 3, %v4463_v27 }
 0x15a   : > { %v4937_v35 = vrot.slane %v4922_v1, %v6533_v29 }
 0x15b   : > { %v4926_v21 = vpop.permute.xlu0 %921  ;;  %v4928_v34 = vpop.permute.xlu1 %929  ;;  %v1499_v29 = vmul.f32 %v4942_v33, %v4679_v57 }
 0x15c   : > { %6531 = vst [vmem:[#allocation24_spill] sm:$0xff] %v4926_v21  ;;  %6532 = vst [vmem:[#allocation25_spill] sm:$0xff] %v4928_v34  ;;  %v1500_v49 = vmul.f32 %v4937_v35, %v4679_v57  ;;  %v6537_v21 = vsub.s32 4, %v4463_v27 }
 0x15d   : > { %1427 = vrot.lane.b32.xlu0 %v1415_v30, %s4283_s16  ;;  %701 = vrot.lane.b32.xlu1 %v684_v43, %s6448_s21  ;;  %v4962_v30 = vrot.slane %v4922_v1, %v6538_v22  ;;  %v4977_v22 = vrot.slane %v4922_v1, %v6541_v36  ;;  %s6468_s21 = smov 15  }
 0x15e   : > { %v4957_v20 = vrot.slane %v4922_v1, %v6537_v21 }
 0x15f   : > { %v4946_v0 = vpop.permute.xlu0 %971  ;;  %v4948_v34 = vpop.permute.xlu1 %969  ;;  %v1501_v21 = vmul.f32 %v4962_v30, %v4679_v57 }
 0x160   : > { %6535 = vst [vmem:[#allocation26_spill] sm:$0xff] %v4946_v0  ;;  %6536 = vst [vmem:[#allocation27_spill] sm:$0xff] %v4948_v34  ;;  %v1502_v0 = vmul.f32 %v4957_v20, %v4679_v57 }
 0x161   : > { %1516 = vrot.lane.b32.xlu0 %v1500_v49, %s4284_s15  ;;  %1514 = vrot.lane.b32.xlu1 %v1499_v29, %s4284_s15 }
 0x163   : > { %v4966_v43 = vpop.permute.xlu0 %975  ;;  %v4968_v34 = vpop.permute.xlu1 %973 }
 0x164   : > { %6539 = vst [vmem:[#allocation28_spill] sm:$0xff] %v4966_v43  ;;  %6540 = vst [vmem:[#allocation29_spill] sm:$0xff] %v4968_v34  ;;  %v1498_v43 = vmul.f32 %v4977_v22, %v4679_v57  ;;  %v730_v34 = vmul.f32 %v4545_v54, %v4859_v28 }
 0x165   : > { %1520 = vrot.lane.b32.xlu0 %v1502_v0, %s4284_s15  ;;  %1518 = vrot.lane.b32.xlu1 %v1501_v21, %s4284_s15  ;;  %v1551_v0 = vmul.f32 %v4707_v8, %v4937_v35  ;;  %v1550_v21 = vmul.f32 %v4707_v8, %v4942_v33 }
 0x167   : > { %v4981_v49 = vpop.permute.xlu0 %1015  ;;  %v4983_v29 = vpop.permute.xlu1 %967 }
 0x168   : > { %6542 = vst [vmem:[#allocation30_spill] sm:$0xff] %v4981_v49 }
 0x169   : > { %1512 = vrot.lane.b32.xlu0 %v1498_v43, %s4284_s15  ;;  %747 = vrot.lane.b32.xlu1 %v730_v34, %s6454_s22  ;;  %v1553_v34 = vmul.f32 %v4707_v8, %v4957_v20  ;;  %s6465_s22 = smov 14  }
 0x16b   : > { %v4991_v36 = vpop.permute.xlu0 %1019  ;;  %v4993_v48 = vpop.permute.xlu1 %1017 }
 0x16c   : > { %6543 = vst [vmem:[#allocation31_spill] sm:$0xff] %v4991_v36  ;;  %6544 = vst [vmem:[#allocation32_spill] sm:$0xff] %v4993_v48  ;;  %v1552_v36 = vmul.f32 %v4707_v8, %v4962_v30 }
 0x16d   : > { %1567 = vrot.lane.b32.xlu0 %v1551_v0, %s6468_s21  ;;  %1565 = vrot.lane.b32.xlu1 %v1550_v21, %s6468_s21  ;;  %v1549_v0 = vmul.f32 %v4707_v8, %v4977_v22  ;;  %v776_v21 = vmul.f32 %v4565_v61, %v4859_v28 }
 0x16f   : > { %v5001_v54 = vpop.permute.xlu0 %1013  ;;  %v5003_v43 = vpop.permute.xlu1 %1021 }
 0x170   : > { %6545 = vst [vmem:[#allocation33_spill] sm:$0xff] %v5001_v54  ;;  %6546 = vst [vmem:[#allocation34_spill] sm:$0xff] %v5003_v43 }
 0x171   : > { %1571 = vrot.lane.b32.xlu0 %v1553_v34, %s6468_s21  ;;  %1569 = vrot.lane.b32.xlu1 %v1552_v36, %s6468_s21  ;;  %v1602_v36 = vmul.f32 %v4691_v62, %v4937_v35  ;;  %v1601_v34 = vmul.f32 %v4691_v62, %v4942_v33 }
 0x173   : > { %v5011_v49 = vpop.permute.xlu0 %1063  ;;  %v5013_v48 = vpop.permute.xlu1 %1061 }
 0x174   : > { %6547 = vst [vmem:[#allocation35_spill] sm:$0xff] %v5013_v48 }
 0x175   : > { %1563 = vrot.lane.b32.xlu0 %v1549_v0, %s6468_s21  ;;  %793 = vrot.lane.b32.xlu1 %v776_v21, %s6462_s23  ;;  %v1604_v21 = vmul.f32 %v4691_v62, %v4957_v20  ;;  %s6474_s23 = smov 13   ;;  %s6560_s21 = smov 98  }
 0x177   : > { %v5021_v43 = vpop.permute.xlu0 %1067  ;;  %v5023_v54 = vpop.permute.xlu1 %1065 }
 0x178   : > { %6548 = vst [vmem:[#allocation36_spill] sm:$0xff] %v5021_v43  ;;  %6549 = vst [vmem:[#allocation37_spill] sm:$0xff] %v5023_v54  ;;  %v1603_v43 = vmul.f32 %v4691_v62, %v4962_v30 }
 0x179   : > { %1618 = vrot.lane.b32.xlu0 %v1602_v36, %s6465_s22  ;;  %1616 = vrot.lane.b32.xlu1 %v1601_v34, %s6465_s22  ;;  %v1600_v36 = vmul.f32 %v4691_v62, %v4977_v22  ;;  %v822_v34 = vmul.f32 %v4581_v3, %v4859_v28 }
 0x17b   : > { %v5031_v61 = vpop.permute.xlu0 %1107  ;;  %v5033_v0 = vpop.permute.xlu1 %1059 }
 0x17c   : > { %6550 = vst [vmem:[#allocation38_spill] sm:$0xff] %v5031_v61  ;;  %6551 = vst [vmem:[#allocation39_spill] sm:$0xff] %v5033_v0 }
 0x17d   : > { %1622 = vrot.lane.b32.xlu0 %v1604_v21, %s6465_s22  ;;  %1620 = vrot.lane.b32.xlu1 %v1603_v43, %s6465_s22  ;;  %v1653_v43 = vmul.f32 %v4705_v7, %v4937_v35  ;;  %v1652_v21 = vmul.f32 %v4705_v7, %v4942_v33 }
 0x17f   : > { %v5041_v54 = vpop.permute.xlu0 %1111  ;;  %v5043_v48 = vpop.permute.xlu1 %1109 }
 0x180   : > { %6552 = vst [vmem:[#allocation40_spill] sm:$0xff] %v5041_v54 }
 0x181   : > { %1614 = vrot.lane.b32.xlu0 %v1600_v36, %s6465_s22  ;;  %839 = vrot.lane.b32.xlu1 %v822_v34, %s6553_s20  ;;  %v1655_v34 = vmul.f32 %v4705_v7, %v4957_v20  ;;  %s6476_s22 = smov 12   ;;  %s6563_s20 = smov 96  }
 0x183   : > { %v5051_v61 = vpop.permute.xlu0 %1105  ;;  %v5053_v0 = vpop.permute.xlu1 %1113 }
 0x184   : > { %6554 = vst [vmem:[#allocation41_spill] sm:$0xff] %v5051_v61  ;;  %6555 = vst [vmem:[#allocation42_spill] sm:$0xff] %v5053_v0  ;;  %v1654_v0 = vmul.f32 %v4705_v7, %v4962_v30 }
 0x185   : > { %1669 = vrot.lane.b32.xlu0 %v1653_v43, %s6474_s23  ;;  %1667 = vrot.lane.b32.xlu1 %v1652_v21, %s6474_s23  ;;  %v437_v43 = vld [vmem:[%s6558_s4] sm:$0xff]  ;;  %s6672_s4 = smov 125  }
 0x187   : > { %v5061_v3 = vpop.permute.xlu0 %1155  ;;  %v5063_v36 = vpop.permute.xlu1 %1153 }
 0x188   : > { %6556 = vst [vmem:[#allocation43_spill] sm:$0xff] %v5061_v3  ;;  %6557 = vst [vmem:[#allocation44_spill] sm:$0xff] %v5063_v36  ;;  %v868_v36 = vmul.f32 %v4577_v2, %v4859_v28 }
 0x189   : > { %1673 = vrot.lane.b32.xlu0 %v1655_v34, %s6474_s23  ;;  %1671 = vrot.lane.b32.xlu1 %v1654_v0, %s6474_s23  ;;  %v1703_v0 = vmul.f32 %v4719_v13, %v4942_v33  ;;  %v1651_v34 = vmul.f32 %v4705_v7, %v4977_v22 }
 0x18b   : > { %v5074_v61 = vpop.permute.xlu0 %1159  ;;  %v5076_v21 = vpop.permute.xlu1 %1157 }
 0x18c   : > { %6559 = vst [vmem:[#allocation45_spill] sm:$0xff] %v5074_v61 }
 0x18d   : > { %885 = vrot.lane.b32.xlu0 %v868_v36, %s6560_s21  ;;  %1751 = vperm.xlu1 %3810, %v437_v43   ;;  %v1705_v36 = vmul.f32 %v4719_v13, %v4962_v30  ;;  %v1704_v43 = vmul.f32 %v4719_v13, %v4937_v35  ;;  %s6562_s21 = smov 97  }
 0x18f   : > { %v5081_v3 = vpop.permute.xlu0 %1199  ;;  %v5083_v54 = vpop.permute.xlu1 %1151 }
 0x190   : > { %6561 = vst [vmem:[#allocation46_spill] sm:$0xff] %v5081_v3 }
 0x191   : > { %1718 = vrot.lane.b32.xlu0 %v1703_v0, %s6476_s22  ;;  %1665 = vrot.lane.b32.xlu1 %v1651_v34, %s6474_s23  ;;  %v914_v0 = vmul.f32 %v4587_v6, %v4859_v28  ;;  %v1706_v34 = vmul.f32 %v4719_v13, %v4957_v20  ;;  %s6565_s23 = smov 72  }
 0x193   : > { %v5091_v61 = vpop.permute.xlu0 %1203  ;;  %v5093_v2 = vpop.permute.xlu1 %1201 }
 0x195   : > { %1722 = vrot.lane.b32.xlu0 %v1705_v36, %s6476_s22  ;;  %1720 = vrot.lane.b32.xlu1 %v1704_v43, %s6476_s22  ;;  %v960_v36 = vmul.f32 %v4643_v37, %v4859_v28  ;;  %v1702_v43 = vmul.f32 %v4719_v13, %v4977_v22 }
 0x197   : > { %v5101_v33 = vpop.permute.xlu0 %1197  ;;  %v5103_v3 = vpop.permute.xlu1 %1205 }
 0x199   : > { %931 = vrot.lane.b32.xlu0 %v914_v0, %s6562_s21  ;;  %1724 = vrot.lane.b32.xlu1 %v1706_v34, %s6476_s22  ;;  %v1052_v0 = vmul.f32 %v4609_v14, %v4859_v28  ;;  %v1006_v34 = vmul.f32 %v4601_v11, %v4859_v28  ;;  %s6564_s21 = smov 71  }
 0x19b   : > { %v5111_v30 = vpop.permute.xlu0 %1247  ;;  %v5113_v35 = vpop.permute.xlu1 %1245 }
 0x19d   : > { %977 = vrot.lane.b32.xlu0 %v960_v36, %s6563_s20  ;;  %1716 = vrot.lane.b32.xlu1 %v1702_v43, %s6476_s22  ;;  %v1144_v36 = vmul.f32 %v4619_v17, %v4859_v28  ;;  %v1098_v43 = vmul.f32 %v4667_v51, %v4859_v28  ;;  %s6566_s20 = smov 69   ;;  %s6567_s22 = smov 70  }
 0x19f   : > { %v5121_v6 = vpop.permute.xlu0 %1251  ;;  %v5123_v20 = vpop.permute.xlu1 %1249 }
 0x1a1   : > { %1069 = vrot.lane.b32.xlu0 %v1052_v0, %s6564_s21  ;;  %1023 = vrot.lane.b32.xlu1 %v1006_v34, %s6565_s23  ;;  %v1236_v0 = vmul.f32 %v4681_v58, %v4859_v28  ;;  %v1190_v34 = vmul.f32 %v4631_v23, %v4859_v28  ;;  %s6569_s23 = smov 44   ;;  %s6570_s21 = smov 68  }
 0x1a3   : > { %v5131_v37 = vpop.permute.xlu0 %1291  ;;  %v5133_v22 = vpop.permute.xlu1 %1243 }
 0x1a5   : > { %1161 = vrot.lane.b32.xlu0 %v1144_v36, %s6566_s20  ;;  %1115 = vrot.lane.b32.xlu1 %v1098_v43, %s6567_s22  ;;  %v1328_v36 = vmul.f32 %v4655_v46, %v4859_v28  ;;  %v1282_v43 = vmul.f32 %v4641_v26, %v4859_v28  ;;  %s6572_s22 = smov 43   ;;  %v6574_v26 = vsub.s32 5, %v4463_v27  ;;  %s6660_s20 = smov 127  }
 0x1a7   : > { %v5141_v14 = vpop.permute.xlu0 %1295  ;;  %v5143_v11 = vpop.permute.xlu1 %1293 }
 0x1a8   : > { %6568 = vst [vmem:[#allocation47_spill] sm:$0xff] %v5141_v14  ;;  %v1489_v14 = vsub.s32 6, %v4463_v27 }
 0x1a9   : > { %1253 = vrot.lane.b32.xlu0 %v1236_v0, %s6569_s23  ;;  %1207 = vrot.lane.b32.xlu1 %v1190_v34, %s6570_s21  ;;  %v1420_v0 = vmul.f32 %v4665_v50, %v4859_v28  ;;  %v1374_v34 = vmul.f32 %v4693_v63, %v4859_v28  ;;  %s4295_s23 = smov 92   ;;  %s4296_s21 = smov 101  }
 0x1aa   : > { %v1490_v46 = vrot.slane %v4922_v1, %v1489_v14 }
 0x1ab   : > { %v5151_v17 = vpop.permute.xlu0 %1289  ;;  %v5153_v51 = vpop.permute.xlu1 %1297 }
 0x1ac   : > { %6571 = vst [vmem:[#allocation48_spill] sm:$0xff] %v5153_v51  ;;  %v1486_v51 = vrot.slane %v4922_v1, %v6574_v26  ;;  %v1555_v1 = vmul.f32 %v4707_v8, %v1490_v46 }
 0x1ad   : > { %1345 = vrot.lane.b32.xlu0 %v1328_v36, %s4281_s30  ;;  %1299 = vrot.lane.b32.xlu1 %v1282_v43, %s6572_s22  ;;  %s6579_s30 = smov 13   ;;  %s4297_s22 = smov 102  }
 0x1ae   : > { %v1503_v50 = vmul.f32 %v1486_v51, %v4679_v57  ;;  %v1554_v14 = vmul.f32 %v4707_v8, %v1486_v51  ;;  %v1657_v8 = vmul.f32 %v4705_v7, %v1490_v46 }
 0x1af   : > { %v5162_v23 = vpop.permute.xlu0 %1339  ;;  %v5164_v58 = vpop.permute.xlu1 %1337 }
 0x1b0   : > { %6573 = vst [vmem:[#allocation49_spill] sm:$0xff] %v5164_v58  ;;  %v1504_v58 = vmul.f32 %v1490_v46, %v4679_v57  ;;  %v1606_v57 = vmul.f32 %v4691_v62, %v1490_v46 }
 0x1b1   : > { %1437 = vrot.lane.b32.xlu0 %v1420_v0, %s4283_s16  ;;  %1391 = vrot.lane.b32.xlu1 %v1374_v34, %s4282_s24  ;;  %s6575_s16 = smov 15   ;;  %s6577_s24 = smov 14  }
 0x1b3   : > { %v5176_v36 = vpop.permute.xlu0 %1343  ;;  %v5178_v43 = vpop.permute.xlu1 %1341 }
 0x1b5   : > { %1524 = vrot.lane.b32.xlu0 %v1504_v58, %s4284_s15  ;;  %1522 = vrot.lane.b32.xlu1 %v1503_v50, %s4284_s15  ;;  %v1605_v58 = vmul.f32 %v4691_v62, %v1486_v51  ;;  %v1708_v62 = vmul.f32 %v4719_v13, %v1490_v46  ;;  %s6582_s15 = smov 12  }
 0x1b7   : > { %v5184_v63 = vpop.permute.xlu0 %1335  ;;  %v5186_v27 = vpop.permute.xlu1 %609 }
 0x1b9   : > { %1575 = vrot.lane.b32.xlu0 %v1555_v1, %s6575_s16  ;;  %1573 = vrot.lane.b32.xlu1 %v1554_v14, %s6575_s16  ;;  %v1656_v1 = vmul.f32 %v4705_v7, %v1486_v51  ;;  %s4298_s16 = smov 103  }
 0x1bb   : > { %v5192_v0 = vpop.permute.xlu0 %1385  ;;  %v5194_v34 = vpop.permute.xlu1 %1383 }
 0x1bc   : > { %6576 = vst [vmem:[#allocation50_spill] sm:$0xff] %v5194_v34 }
 0x1bd   : > { %1626 = vrot.lane.b32.xlu0 %v1606_v57, %s6577_s24  ;;  %1624 = vrot.lane.b32.xlu1 %v1605_v58, %s6577_s24  ;;  %v1707_v57 = vmul.f32 %v4719_v13, %v1486_v51  ;;  %s6669_s24 = smov 100  }
 0x1bf   : > { %v5200_v26 = vpop.permute.xlu0 %1389  ;;  %v5202_v50 = vpop.permute.xlu1 %1387 }
 0x1c0   : > { %6578 = vst [vmem:[#allocation51_spill] sm:$0xff] %v5200_v26 }
 0x1c1   : > { %1677 = vrot.lane.b32.xlu0 %v1657_v8, %s6579_s30  ;;  %1675 = vrot.lane.b32.xlu1 %v1656_v1, %s6579_s30  ;;  %s4291_s30 = smov 113  }
 0x1c3   : > { %v5208_v14 = vpop.permute.xlu0 %1381  ;;  %v5210_v34 = vpop.permute.xlu1 %655 }
 0x1c4   : > { %6580 = vst [vmem:[#allocation52_spill] sm:$0xff] %v5208_v14  ;;  %6581 = vst [vmem:[#allocation53_spill] sm:$0xff] %v5210_v34 }
 0x1c5   : > { %1728 = vrot.lane.b32.xlu0 %v1708_v62, %s6582_s15  ;;  %1726 = vrot.lane.b32.xlu1 %v1707_v57, %s6582_s15  ;;  %s4292_s15 = smov 116  }
 0x1c7   : > { %v5216_v58 = vpop.permute.xlu0 %1431  ;;  %v5218_v26 = vpop.permute.xlu1 %1429 }
 0x1cb   : > { %v5220_v7 = vpop.permute.xlu0 %1435  ;;  %v5222_v8 = vpop.permute.xlu1 %1433 }
 0x1cc   : > { %6583 = vst [vmem:[#allocation54_spill] sm:$0xff] %v5220_v7  ;;  %v572_v7 = vmul.f32 %v4483_v32, %v4717_v12  ;;  %v614_v32 = vsel %vm611_vm0, %v4727_v18, %v4739_v25 }
 0x1cf   : > { %v5224_v1 = vpop.permute.xlu0 %1427  ;;  %v5226_v14 = vpop.permute.xlu1 %701 }
 0x1d0   : > { %6584 = vst [vmem:[#allocation55_spill] sm:$0xff] %v5224_v1  ;;  %6585 = vst [vmem:[#allocation56_spill] sm:$0xff] %v5226_v14  ;;  %v613_v14 = vsel %vm611_vm0, %v4729_v19, %v4727_v18  ;;  %v573_v1 = vmul.f32 %v4478_v31, %v4717_v12  ;;  %v571_v31 = vmul.f32 %v4515_v44, %v4717_v12 }
 0x1d1   : > { %v660_v18 = vsel %vm657_vm1, %v4759_v53, %v4757_v52  ;;  %v5276_v44 = vmul.f32 %v4859_v28, %v4717_v12 }
 0x1d3   : > { %v5228_v34 = vpop.permute.xlu0 %1516  ;;  %v5230_v46 = vpop.permute.xlu1 %1514 }
 0x1d4   : > { %6586 = vst [vmem:[#allocation57_spill] sm:$0xff] %v5230_v46  ;;  %v625_v46 = vadd.f32 %v614_v32, %v573_v1  ;;  %v706_v1 = vsel %vm703_vm2, %v4777_v4, %v4789_v16 }
 0x1d7   : > { %v5232_v13 = vpop.permute.xlu0 %1520  ;;  %v5234_v51 = vpop.permute.xlu1 %1518 }
 0x1d8   : > { %6587 = vst [vmem:[#allocation58_spill] sm:$0xff] %v5232_v13  ;;  %6588 = vst [vmem:[#allocation59_spill] sm:$0xff] %v5234_v51  ;;  %v615_v51 = vsel %vm611_vm0, %v4739_v25, %v4737_v24  ;;  %v5272_v25 = vmul.f32 %v4497_v39, %v4717_v12 }
 0x1db   : > { %v5236_v62 = vpop.permute.xlu0 %1512  ;;  %v5238_v57 = vpop.permute.xlu1 %747 }
 0x1dc   : > { %6589 = vst [vmem:[#allocation60_spill] sm:$0xff] %v5236_v62  ;;  %6590 = vst [vmem:[#allocation61_spill] sm:$0xff] %v5238_v57  ;;  %v574_v57 = vmul.f32 %v4502_v40, %v4717_v12  ;;  %v659_v40 = vsel %vm657_vm1, %v4747_v42, %v4759_v53  ;;  %v705_v53 = vsel %vm703_vm2, %v4779_v5, %v4777_v4 }
 0x1dd   : > { %v752_v4 = vsel %vm749_vm3, %v4809_v56, %v4807_v55 }
 0x1df   : > { %v5247_v13 = vpop.permute.xlu0 %1567  ;;  %v5249_v62 = vpop.permute.xlu1 %1565 }
 0x1e0   : > { %6591 = vst [vmem:[#allocation62_spill] sm:$0xff] %v5247_v13  ;;  %6592 = vst [vmem:[#allocation63_spill] sm:$0xff] %v5249_v62  ;;  %v612_v62 = vsel %vm611_vm0, %v4749_v45, %v4729_v19  ;;  %v624_v13 = vadd.f32 %v613_v14, %v572_v7  ;;  %v658_v19 = vsel %vm657_vm1, %v4767_v59, %v4747_v42 }
 0x1e1   : > { %v661_v45 = vsel %vm657_vm1, %v4757_v52, %v4769_v60  ;;  %v626_v7 = vadd.f32 %v615_v51, %v574_v57  ;;  %v623_v28 = vadd.f32 %v612_v62, %v571_v31  ;;  %v671_v42 = vadd.f32 %v660_v18, %v625_v46 }
 0x1e2   : > { %v670_v12 = vadd.f32 %v659_v40, %v624_v13  ;;  %v707_v52 = vsel %vm703_vm2, %v4789_v16, %v4787_v15  ;;  %v704_v59 = vsel %vm703_vm2, %v4799_v41, %v4779_v5  ;;  %v751_v51 = vsel %vm749_vm3, %v4797_v38, %v4809_v56  ;;  %v6593_v41 = vld [vmem:[#allocation7_spill] sm:$0xff] }
 0x1e3   : > { %v5287_v14 = vpop.permute.xlu0 %1571  ;;  %v5289_v39 = vpop.permute.xlu1 %1569  ;;  %v669_v62 = vadd.f32 %v658_v19, %v623_v28  ;;  %v672_v13 = vadd.f32 %v661_v45, %v626_v7  ;;  %v717_v46 = vadd.f32 %v706_v1, %v671_v42  ;;  %v750_v16 = vsel %vm749_vm3, %v4817_v9, %v4797_v38  ;;  %v6595_v45 = vld [vmem:[#allocation9_spill] sm:$0xff]  ;;  %v6596_v9 = vld [vmem:[#allocation8_spill] sm:$0xff]  ;;  %v6597_v7 = vld [vmem:[#allocation11_spill] sm:$0xff] }
 0x1e4   : > { %v716_v57 = vadd.f32 %v705_v53, %v670_v12  ;;  %v753_v5 = vsel %vm749_vm3, %v4807_v55, %v4819_v10  ;;  %v797_v32 = vsel %vm795_vm4, %v6593_v41, %v4827_v47  ;;  %v798_v53 = vsel %vm795_vm4, %v4827_v47, %v6595_v45  ;;  %v6598_v12 = vld [vmem:[#allocation13_spill] sm:$0xff]  ;;  %v6599_v1 = vld [vmem:[#allocation10_spill] sm:$0xff] }
 0x1e5   : > { %v718_v18 = vadd.f32 %v707_v52, %v672_v13  ;;  %v715_v56 = vadd.f32 %v704_v59, %v669_v62  ;;  %v763_v38 = vadd.f32 %v752_v4, %v717_v46  ;;  %v799_v55 = vsel %vm795_vm4, %v6595_v45, %v6596_v9  ;;  %v6600_v62 = vld [vmem:[#allocation12_spill] sm:$0xff]  ;;  %v6602_v46 = vld [vmem:[#allocation15_spill] sm:$0xff] }
 0x1e6   : > { %v762_v19 = vadd.f32 %v751_v51, %v716_v57  ;;  %v796_v28 = vsel %vm795_vm4, %v6597_v7, %v6593_v41  ;;  %v843_v42 = vsel %vm841_vm5, %v6599_v1, %v6598_v12  ;;  %v844_v47 = vsel %vm841_vm5, %v6598_v12, %v6600_v62  ;;  %v6601_v57 = vld [vmem:[#allocation14_spill] sm:$0xff]  ;;  %v6603_v45 = vld [vmem:[#allocation16_spill] sm:$0xff]  ;;  %v6604_v7 = vld [vmem:[#allocation17_spill] sm:$0xff] }
 0x1e7   : > { %v5315_v31 = vpop.permute.xlu0 %1563  ;;  %v5317_v40 = vpop.permute.xlu1 %793  ;;  %v761_v52 = vadd.f32 %v750_v16, %v715_v56  ;;  %v764_v59 = vadd.f32 %v753_v5, %v718_v18  ;;  %v809_v13 = vadd.f32 %v798_v53, %v763_v38  ;;  %v842_v4 = vsel %vm841_vm5, %v6601_v57, %v6599_v1  ;;  %v6606_v1 = vld [vmem:[#allocation18_spill] sm:$0xff]  ;;  %v6607_v57 = vld [vmem:[#allocation21_spill] sm:$0xff]  ;;  %v6608_v9 = vld [vmem:[#allocation23_spill] sm:$0xff] }
 0x1e8   : > { %6594 = vst [vmem:[#allocation7_spill] sm:$0xff] %v5317_v40  ;;  %v808_v51 = vadd.f32 %v797_v32, %v762_v19  ;;  %v845_v41 = vsel %vm841_vm5, %v6600_v62, %v6602_v46  ;;  %v889_v16 = vsel %vm887_vm6, %v6604_v7, %v6603_v45  ;;  %v6605_v19 = vld [vmem:[#allocation19_spill] sm:$0xff]  ;;  %v888_v46 = vsel %vm887_vm6, %v6607_v57, %v6604_v7  ;;  %v6613_v57 = vld [vmem:[#allocation26_spill] sm:$0xff] }
 0x1e9   : > { %v810_v32 = vadd.f32 %v799_v55, %v764_v59  ;;  %v807_v18 = vadd.f32 %v796_v28, %v761_v52  ;;  %v890_v53 = vsel %vm887_vm6, %v6603_v45, %v6605_v19  ;;  %v855_v12 = vadd.f32 %v844_v47, %v809_v13  ;;  %v6609_v55 = vld [vmem:[#allocation20_spill] sm:$0xff]  ;;  %v6614_v40 = vld [vmem:[#allocation27_spill] sm:$0xff] }
 0x1ea   : > { %v854_v56 = vadd.f32 %v843_v42, %v808_v51  ;;  %v891_v62 = vsel %vm887_vm6, %v6605_v19, %v6606_v1  ;;  %v935_v28 = vsel %vm933_vm7, %v6609_v55, %v6608_v9  ;;  %v6610_v51 = vld [vmem:[#allocation22_spill] sm:$0xff]  ;;  %v6611_v13 = vld [vmem:[#allocation24_spill] sm:$0xff]  ;;  %v6612_v1 = vld [vmem:[#allocation25_spill] sm:$0xff] }
 0x1eb   : > { %v5343_v5 = vpop.permute.xlu0 %1618  ;;  %v5348_v38 = vpop.permute.xlu1 %1616  ;;  %v853_v42 = vadd.f32 %v842_v4, %v807_v18  ;;  %v856_v52 = vadd.f32 %v845_v41, %v810_v32  ;;  %v936_v45 = vsel %vm933_vm7, %v6608_v9, %v6610_v51  ;;  %v901_v47 = vadd.f32 %v890_v53, %v855_v12  ;;  %v6615_v9 = vld [vmem:[#allocation29_spill] sm:$0xff]  ;;  %v6616_v12 = vld [vmem:[#allocation28_spill] sm:$0xff] }
 0x1ec   : > { %v900_v59 = vadd.f32 %v889_v16, %v854_v56  ;;  %v934_v19 = vsel %vm933_vm7, %v6611_v13, %v6609_v55  ;;  %v937_v7 = vsel %vm933_vm7, %v6610_v51, %v6612_v1  ;;  %v981_v4 = vsel %vm6493_vm8, %v6614_v40, %v6613_v57  ;;  %v6617_v13 = vld [vmem:[#allocation32_spill] sm:$0xff]  ;;  %v6618_v1 = vld [vmem:[#allocation30_spill] sm:$0xff] }
 0x1ed   : > { %v902_v16 = vadd.f32 %v891_v62, %v856_v52  ;;  %v899_v32 = vadd.f32 %v888_v46, %v853_v42  ;;  %v982_v56 = vsel %vm6493_vm8, %v6613_v57, %v6615_v9  ;;  %v947_v53 = vadd.f32 %v936_v45, %v901_v47  ;;  %v6619_v52 = vld [vmem:[#allocation31_spill] sm:$0xff]  ;;  %v6620_v57 = vld [vmem:[#allocation33_spill] sm:$0xff] }
 0x1ee   : > { %v946_v18 = vadd.f32 %v935_v28, %v900_v59  ;;  %v983_v55 = vsel %vm6493_vm8, %v6615_v9, %v6616_v12  ;;  %v980_v51 = vsel %vm6493_vm8, %v4983_v29, %v6614_v40  ;;  %v1027_v62 = vsel %vm6500_vm9, %v6618_v1, %v6617_v13  ;;  %v6621_v29 = vld [vmem:[#allocation34_spill] sm:$0xff] }
 0x1ef   : > { %v5371_v41 = vpop.permute.xlu0 %1622  ;;  %v945_v46 = vadd.f32 %v934_v19, %v899_v32  ;;  %v948_v28 = vadd.f32 %v937_v7, %v902_v16  ;;  %v1028_v59 = vsel %vm6500_vm9, %v6617_v13, %v6619_v52  ;;  %v5388_v45 = vpop.permute.xlu1 %1620  ;;  %v993_v47 = vadd.f32 %v982_v56, %v947_v53  ;;  %v6622_v19 = vld [vmem:[#allocation35_spill] sm:$0xff]  ;;  %v6624_v13 = vld [vmem:[#allocation37_spill] sm:$0xff]  ;;  %v6627_v12 = vld [vmem:[#allocation38_spill] sm:$0xff] }
 0x1f0   : > { %v992_v42 = vadd.f32 %v981_v4, %v946_v18  ;;  %v1026_v9 = vsel %vm6500_vm9, %v6620_v57, %v6618_v1  ;;  %v1029_v40 = vsel %vm6500_vm9, %v6619_v52, %v6621_v29  ;;  %v1073_v7 = vsel %vm6494_vm10, %v6622_v19, %v5011_v49  ;;  %v6625_v1 = vld [vmem:[#allocation36_spill] sm:$0xff]  ;;  %v6626_v52 = vld [vmem:[#allocation39_spill] sm:$0xff] }
 0x1f1   : > { %v994_v16 = vadd.f32 %v983_v55, %v948_v28  ;;  %v991_v32 = vadd.f32 %v980_v51, %v945_v46  ;;  %v1074_v56 = vsel %vm6494_vm10, %v5011_v49, %v6624_v13  ;;  %vm1347_vm8 = vcmask 343040   ;;  %v6628_v28 = vld [vmem:[#allocation40_spill] sm:$0xff] }
 0x1f2   : > { %v1038_v18 = vadd.f32 %v1027_v62, %v992_v42  ;;  %v1039_v53 = vadd.f32 %v1028_v59, %v993_v47  ;;  %v1075_v57 = vsel %vm6494_vm10, %v6624_v13, %v6625_v1  ;;  %v1072_v29 = vsel %vm6494_vm10, %v6626_v52, %v6622_v19  ;;  %v6629_v59 = vld [vmem:[#allocation41_spill] sm:$0xff]  ;;  %v6630_v13 = vld [vmem:[#allocation42_spill] sm:$0xff]  ;;  %v6631_v52 = vld [vmem:[#allocation43_spill] sm:$0xff] }
 0x1f3   : > { %v5399_v4 = vpop.permute.xlu0 %1614  ;;  %v1119_v55 = vsel %vm6495_vm11, %v6627_v12, %v5043_v48  ;;  %v1037_v51 = vadd.f32 %v1026_v9, %v991_v32  ;;  %v1040_v62 = vadd.f32 %v1029_v40, %v994_v16  ;;  %v1120_v49 = vsel %vm6495_vm11, %v5043_v48, %v6628_v28  ;;  %v6632_v1 = vld [vmem:[#allocation44_spill] sm:$0xff]  ;;  %v5430_v32 = vpop.permute.xlu1 %839 }
 0x1f4   : > { %6623 = vst [vmem:[#allocation9_spill] sm:$0xff] %v5399_v4  ;;  %v1084_v46 = vadd.f32 %v1073_v7, %v1038_v18  ;;  %v1085_v42 = vadd.f32 %v1074_v56, %v1039_v53  ;;  %v1118_v47 = vsel %vm6495_vm11, %v6629_v59, %v6627_v12  ;;  %v1121_v19 = vsel %vm6495_vm11, %v6628_v28, %v6630_v13  ;;  %v6633_v18 = vld [vmem:[#allocation45_spill] sm:$0xff] }
 0x1f5   : > { %v1165_v4 = vsel %vm6496_vm12, %v6632_v1, %v6631_v52  ;;  %v1086_v40 = vadd.f32 %v1075_v57, %v1040_v62  ;;  %v1083_v7 = vadd.f32 %v1072_v29, %v1037_v51  ;;  %v1166_v48 = vsel %vm6496_vm12, %v6631_v52, %v5076_v21  ;;  %v6634_v57 = vld [vmem:[#allocation46_spill] sm:$0xff] }
 0x1f6   : > { %v1130_v16 = vadd.f32 %v1119_v55, %v1084_v46  ;;  %vm1393_vm10 = vcmask 334848   ;;  %v1131_v12 = vadd.f32 %v1120_v49, %v1085_v42  ;;  %v1167_v56 = vsel %vm6496_vm12, %v5076_v21, %v6633_v18 }
 0x1f7   : > { %v5425_v9 = vpop.permute.xlu0 %1669  ;;  %v1164_v53 = vsel %vm6496_vm12, %v5083_v54, %v6632_v1  ;;  %v1211_v29 = vsel %vm6497_vm13, %v6634_v57, %v5093_v2  ;;  %v1129_v55 = vadd.f32 %v1118_v47, %v1083_v7  ;;  %v1132_v51 = vadd.f32 %v1121_v19, %v1086_v40 }
 0x1f8   : > { %v1176_v62 = vadd.f32 %v1165_v4, %v1130_v16  ;;  %v1212_v46 = vsel %vm6497_vm13, %v5093_v2, %v5091_v61  ;;  %vm1439_vm11 = vcmask 326656   ;;  %v1177_v28 = vadd.f32 %v1166_v48, %v1131_v12  ;;  %v6635_v16 = vld [vmem:[#allocation47_spill] sm:$0xff]  ;;  %v5470_v48 = vpop.permute.xlu1 %1667 }
 0x1f9   : > { %v1210_v21 = vsel %vm6497_vm13, %v5101_v33, %v6634_v57  ;;  %v1213_v54 = vsel %vm6497_vm13, %v5091_v61, %v5103_v3  ;;  %v1257_v1 = vsel %vm6499_vm14, %v5113_v35, %v5111_v30  ;;  %v1178_v4 = vadd.f32 %v1167_v56, %v1132_v51  ;;  %v6637_v56 = vld [vmem:[#allocation49_spill] sm:$0xff] }
 0x1fa   : > { %v1175_v42 = vadd.f32 %v1164_v53, %v1129_v55  ;;  %v1222_v59 = vadd.f32 %v1211_v29, %v1176_v62  ;;  %v1258_v2 = vsel %vm6499_vm14, %v5111_v30, %v5123_v20  ;;  %vm1526_vm12 = vcmask 130048  }
 0x1fb   : > { %v5453_v49 = vpop.permute.xlu0 %1673  ;;  %v1223_v47 = vadd.f32 %v1212_v46, %v1177_v28  ;;  %v1259_v33 = vsel %vm6499_vm14, %v5123_v20, %v5121_v6  ;;  %v1256_v61 = vsel %vm6499_vm14, %v5133_v22, %v5113_v35  ;;  %v1303_v19 = vsel %vm6498_vm15, %v5131_v37, %v5143_v11  ;;  %v6636_v35 = vld [vmem:[#allocation48_spill] sm:$0xff] }
 0x1fc   : > { %v1221_v52 = vadd.f32 %v1210_v21, %v1175_v42  ;;  %v1224_v40 = vadd.f32 %v1213_v54, %v1178_v4  ;;  %v1268_v7 = vadd.f32 %v1257_v1, %v1222_v59  ;;  %v1304_v30 = vsel %vm6498_vm15, %v5143_v11, %v6635_v16  ;;  %v6639_v42 = vld [vmem:[#allocation51_spill] sm:$0xff] }
 0x1fd   : > { %vm1577_vm13 = vcmask 121856   ;;  %v1269_v12 = vadd.f32 %v1258_v2, %v1223_v47  ;;  %v1302_v20 = vsel %vm6498_vm15, %v5151_v17, %v5131_v37  ;;  %v1305_v22 = vsel %vm6498_vm15, %v6635_v16, %v6636_v35 }
 0x1fe   : > { %v1349_v53 = vsel %vm1347_vm8, %v6637_v56, %v5162_v23  ;;  %v1270_v29 = vadd.f32 %v1259_v33, %v1224_v40  ;;  %v1267_v11 = vadd.f32 %v1256_v61, %v1221_v52  ;;  %v1314_v55 = vadd.f32 %v1303_v19, %v1268_v7  ;;  %v6640_v33 = vld [vmem:[#allocation52_spill] sm:$0xff]  ;;  %v1672_v19 = vpop.permute.xlu1 %1671  ;;  %v6641_v40 = vld [vmem:[#allocation53_spill] sm:$0xff] }
 0x1ff   : > { %v5481_v57 = vpop.permute.xlu0 %885  ;;  %v1350_v51 = vsel %vm1347_vm8, %v5162_v23, %v5178_v43  ;;  %v1315_v62 = vadd.f32 %v1304_v30, %v1269_v12  ;;  %v1351_v37 = vsel %vm1347_vm8, %v5178_v43, %v5176_v36  ;;  %v1348_v17 = vsel %vm1347_vm8, %v5184_v63, %v6637_v56  ;;  %v6638_v23 = vld [vmem:[#allocation50_spill] sm:$0xff]  ;;  %v6644_v56 = vld [vmem:[#allocation59_spill] sm:$0xff] }
 0x200   : > { %vm1628_vm15 = vcmask 113664   ;;  %v1313_v46 = vadd.f32 %v1302_v20, %v1267_v11  ;;  %v1316_v28 = vadd.f32 %v1305_v22, %v1270_v29  ;;  %v1360_v21 = vadd.f32 %v1349_v53, %v1314_v55  ;;  %v6642_v30 = vld [vmem:[#allocation54_spill] sm:$0xff] }
 0x201   : > { %v616_v54 = vsel %vm611_vm0, %v4737_v24, %v5186_v27  ;;  %vm1679_vm14 = vcmask 105472   ;;  %v1361_v1 = vadd.f32 %v1350_v51, %v1315_v62  ;;  %v1395_v4 = vsel %vm1393_vm10, %v6638_v23, %v5192_v0  ;;  %v6645_v51 = vld [vmem:[#allocation55_spill] sm:$0xff] }
 0x202   : > { %v1396_v43 = vsel %vm1393_vm10, %v5192_v0, %v5202_v50  ;;  %v1397_v63 = vsel %vm1393_vm10, %v5202_v50, %v6639_v42  ;;  %v1362_v2 = vadd.f32 %v1351_v37, %v1316_v28  ;;  %v1359_v47 = vadd.f32 %v1348_v17, %v1313_v46  ;;  %v6646_v17 = vld [vmem:[#allocation56_spill] sm:$0xff]  ;;  %v6647_v28 = vld [vmem:[#allocation62_spill] sm:$0xff] }
 0x203   : > { %v5504_v59 = vpop.permute.xlu0 %1718  ;;  %v628_v24 = vadd.f32 %v5186_v27, %v5276_v44  ;;  %v1394_v61 = vsel %vm1393_vm10, %v6640_v33, %v6638_v23  ;;  %v627_v52 = vadd.f32 %v616_v54, %v5272_v25  ;;  %v662_v0 = vsel %vm657_vm1, %v4769_v60, %v6641_v40  ;;  %v6643_v60 = vld [vmem:[#allocation57_spill] sm:$0xff] }
 0x204   : > { %v1441_v50 = vsel %vm1439_vm11, %v5218_v26, %v5216_v58  ;;  %v1442_v7 = vsel %vm1439_vm11, %v5216_v58, %v5222_v8  ;;  %v1406_v27 = vadd.f32 %v1395_v4, %v1360_v21  ;;  %v1407_v44 = vadd.f32 %v1396_v43, %v1361_v1  ;;  %v6648_v21 = vld [vmem:[#allocation63_spill] sm:$0xff]  ;;  %v6649_v4 = vld [vmem:[#allocation58_spill] sm:$0xff] }
 0x205   : > { %v1408_v16 = vadd.f32 %v1397_v63, %v1362_v2  ;;  %v1443_v12 = vsel %vm1439_vm11, %v5222_v8, %v6642_v30  ;;  %v1405_v25 = vadd.f32 %v1394_v61, %v1359_v47  ;;  %v674_v20 = vadd.f32 %v6641_v40, %v628_v24  ;;  %v6650_v2 = vld [vmem:[#allocation60_spill] sm:$0xff]  ;;  %v6651_v61 = vld [vmem:[#allocation61_spill] sm:$0xff] }
 0x206   : > { %v1528_v22 = vsel %vm1526_vm12, %v6643_v60, %v5228_v34  ;;  %v1529_v53 = vsel %vm1526_vm12, %v5228_v34, %v6644_v56  ;;  %v673_v58 = vadd.f32 %v662_v0, %v627_v52  ;;  %v1452_v11 = vadd.f32 %v1441_v50, %v1406_v27 }
 0x207   : > { %v5531_v29 = vpop.permute.xlu0 %1722  ;;  %v1453_v55 = vadd.f32 %v1442_v7, %v1407_v44  ;;  %v1440_v8 = vsel %vm1439_vm11, %v6645_v51, %v5218_v26  ;;  %v1454_v37 = vadd.f32 %v1443_v12, %v1408_v16  ;;  %v708_v46 = vsel %vm703_vm2, %v4787_v15, %v6646_v17 }
 0x208   : > { %v5536_v62 = vpop.permute.xlu1 %1751  ;;  %v1579_v34 = vsel %vm1577_vm13, %v6648_v21, %v6647_v28  ;;  %v1580_v54 = vsel %vm1577_vm13, %v6647_v28, %v5289_v39  ;;  %v720_v1 = vadd.f32 %v6646_v17, %v674_v20  ;;  %v1540_v23 = vadd.f32 %v1528_v22, %v1452_v11  ;;  %v6653_v11 = vld [vmem:[#allocation8_spill] sm:$0xff] }
 0x209   : > { %v1530_v26 = vsel %vm1526_vm12, %v6644_v56, %v6649_v4  ;;  %v1541_v43 = vadd.f32 %v1529_v53, %v1453_v55  ;;  %v1451_v63 = vadd.f32 %v1440_v8, %v1405_v25  ;;  %v1527_v15 = vsel %vm1526_vm12, %v6650_v2, %v6643_v60 }
 0x20a   : > { %v1630_v47 = vsel %vm1628_vm15, %v5348_v38, %v5343_v5  ;;  %v1631_v24 = vsel %vm1628_vm15, %v5343_v5, %v5388_v45  ;;  %v754_v52 = vsel %vm749_vm3, %v4819_v10, %v6651_v61  ;;  %v1591_v40 = vadd.f32 %v1579_v34, %v1540_v23 }
 0x20b   : > { %v932_v33 = vpop.permute.xlu0 %931  ;;  %v1581_v0 = vsel %vm1577_vm13, %v5289_v39, %v5287_v14  ;;  %v1592_v50 = vadd.f32 %v1580_v54, %v1541_v43  ;;  %v719_v27 = vadd.f32 %v708_v46, %v673_v58  ;;  %v1542_v44 = vadd.f32 %v1530_v26, %v1454_v37  ;;  %v6652_v58 = vld [vmem:[#allocation7_spill] sm:$0xff] }
 0x20c   : > { %v1666_v7 = vpop.permute.xlu1 %1665  ;;  %v1681_v16 = vsel %vm1679_vm14, %v5470_v48, %v5425_v9  ;;  %v1682_v5 = vsel %vm1679_vm14, %v5425_v9, %v1672_v19  ;;  %v766_v12 = vadd.f32 %v6651_v61, %v720_v1  ;;  %v1642_v25 = vadd.f32 %v1630_v47, %v1591_v40  ;;  %v6655_v26 = vld [vmem:[#allocation15_spill] sm:$0xff]  ;;  %v6656_v61 = vld [vmem:[#allocation18_spill] sm:$0xff] }
 0x20d   : > { %v1643_v10 = vadd.f32 %v1631_v24, %v1592_v50  ;;  %vm1730_vm3 = vcmask 97280   ;;  %v1539_v20 = vadd.f32 %v1527_v15, %v1451_v63  ;;  %v765_v60 = vadd.f32 %v754_v52, %v719_v27 }
 0x20e   : > { %v1593_v22 = vadd.f32 %v1581_v0, %v1542_v44  ;;  %v1632_v39 = vsel %vm1628_vm15, %v5388_v45, %v5371_v41  ;;  %v1578_v53 = vsel %vm1577_vm13, %v5315_v31, %v6648_v21  ;;  %v800_v9 = vsel %vm795_vm4, %v6653_v11, %v6652_v58  ;;  %v6654_v31 = vld [vmem:[#allocation9_spill] sm:$0xff] }
 0x20f   : > { %v978_v56 = vpop.permute.xlu0 %977  ;;  %v1693_v55 = vadd.f32 %v1681_v16, %v1642_v25  ;;  %v1694_v51 = vadd.f32 %v1682_v5, %v1643_v10  ;;  %v812_v37 = vadd.f32 %v6652_v58, %v766_v12  ;;  %v1683_v17 = vsel %vm1679_vm14, %v1672_v19, %v5453_v49  ;;  %v6657_v5 = vld [vmem:[#allocation25_spill] sm:$0xff] }
 0x210   : > { %v1721_v8 = vpop.permute.xlu1 %1720  ;;  %v1644_v28 = vadd.f32 %v1632_v39, %v1593_v22  ;;  %v1629_v21 = vsel %vm1628_vm15, %v6654_v31, %v5348_v38  ;;  %v1590_v1 = vadd.f32 %v1578_v53, %v1539_v20  ;;  %v811_v23 = vadd.f32 %v800_v9, %v765_v60  ;;  %v6658_v60 = vld [vmem:[#allocation28_spill] sm:$0xff] }
 0x211   : > { %v1732_v45 = vsel %vm1730_vm3, %v5504_v59, %v1721_v8  ;;  %v1733_v46 = vsel %vm1730_vm3, %v1721_v8, %v5531_v29  ;;  %v846_v43 = vsel %vm841_vm5, %v6655_v26, %v5430_v32  ;;  %v858_v63 = vadd.f32 %v5430_v32, %v812_v37  ;;  %v6661_v8 = vld [vmem:[#allocation34_spill] sm:$0xff] }
 0x212   : > { %v1744_v34 = vadd.f32 %v1732_v45, %v1693_v55  ;;  %v1745_v54 = vadd.f32 %v1733_v46, %v1694_v51  ;;  %v1695_v2 = vadd.f32 %v1683_v17, %v1644_v28  ;;  %v1641_v38 = vadd.f32 %v1629_v21, %v1590_v1  ;;  %v6662_v28 = vld [vmem:[#allocation36_spill] sm:$0xff] }
 0x213   : > { %v1070_v19 = vpop.permute.xlu0 %1069  ;;  %v892_v52 = vsel %vm887_vm6, %v6656_v61, %v5481_v57  ;;  %v1680_v40 = vsel %vm1679_vm14, %v1666_v7, %v5470_v48  ;;  %v857_v0 = vadd.f32 %v846_v43, %v811_v23  ;;  %v904_v16 = vadd.f32 %v5481_v57, %v858_v63 }
 0x214   : > { %v5596_v15 = vadd.f32 %v5536_v62, %v1744_v34  ;;  %v5599_v47 = vadd.f32 %v5536_v62, %v1745_v54  ;;  %v5601_v24 = vpop.permute.xlu1 %1724  ;;  %v938_v12 = vsel %vm933_vm7, %v6657_v5, %v932_v33  ;;  %v1692_v20 = vadd.f32 %v1680_v40, %v1641_v38 }
 0x215   : > { %v1734_v32 = vsel %vm1730_vm3, %v5531_v29, %v5601_v24  ;;  %v903_v10 = vadd.f32 %v892_v52, %v857_v0  ;;  %v950_v7 = vadd.f32 %v932_v33, %v904_v16  ;;  %vm6659_vm5 = vcmask 785408  }
 0x216   : > { %v1761_v50 = vmax.f32 %v5596_v15, 0.0  ;;  %v1762_v27 = vmax.f32 %v5599_v47, 0.0  ;;  %v1746_v44 = vadd.f32 %v1734_v32, %v1695_v2  ;;  %v984_v22 = vsel %vm6659_vm5, %v6658_v60, %v978_v56  ;;  %v4086_v47 = vld [vmem:[%s6395_s1 + $0x100] ss:$8 sps:$4 sm:$0xff]  }
 0x217   : > { %v1162_v25 = vpop.permute.xlu0 %1161  ;;  %v949_v57 = vadd.f32 %v938_v12, %v903_v10  ;;  %v996_v11 = vadd.f32 %v978_v56, %v950_v7  ;;  %vm6663_vm6 = vcmask 580608   ;;  %vm6664_vm7 = vcmask 572416  }
 0x218   : > { %v3811_v48 = vpack.i.bf16 %v1762_v27, %v1761_v50  ;;  %v1717_v29 = vpop.permute.xlu1 %1716  ;;  %v5625_v53 = vadd.f32 %v5536_v62, %v1746_v44  ;;  %v1076_v31 = vsel %vm6663_vm6, %v6662_v28, %v1070_v19  ;;  %vm6665_vm5 = vcmask 564224  }
 0x219   : > { %v1731_v39 = vsel %vm1730_vm3, %v1717_v29, %v5504_v59  ;;  %v995_v55 = vadd.f32 %v984_v22, %v949_v57  ;;  %v1168_v63 = vsel %vm6665_vm5, %v6633_v18, %v1162_v25  ;;  %vm6666_vm6 = vcmask 556032  }
 0x21a   : > { %v1743_v58 = vadd.f32 %v1731_v39, %v1692_v20  ;;  %3812 = vrot.lane.b32.xlu1 %v3811_v48, %s6660_s20  ;;  %v1763_v59 = vmax.f32 %v5625_v53, 0.0  ;;  %vm2658_vm5 = vcmask 678912  }
 0x21b   : > { %v1254_v9 = vpop.permute.xlu0 %1253 }
 0x21c   : > { %v5629_v51 = vadd.f32 %v5536_v62, %v1743_v58  ;;  %v1024_v33 = vpop.permute.xlu1 %1023 }
 0x21d   : > { %v1030_v37 = vsel %vm6500_vm9, %v6661_v8, %v1024_v33  ;;  %v1042_v17 = vadd.f32 %v1024_v33, %v996_v11  ;;  %vm6667_vm9 = vcmask 359424  }
 0x21e   : > { %v1760_v45 = vmax.f32 %v5629_v51, 0.0  ;;  %v1041_v46 = vadd.f32 %v1030_v37, %v995_v55  ;;  %v1260_v0 = vsel %vm6667_vm9, %v5121_v6, %v1254_v9  ;;  %v4096_v51 = vld [vmem:[%s6395_s1 + $0x1e4] ss:$8 sps:$4 sm:$0xff]   ;;  %vm2252_vm9 = vcmask 1041408  }
 0x21f   : > { %v1346_v21 = vpop.permute.xlu0 %1345  ;;  %v1088_v56 = vadd.f32 %v1070_v19, %v1042_v17 }
 0x220   : > { %v3816_v34 = vpack.i.bf16 %v1760_v45, %v1763_v59  ;;  %v1087_v54 = vadd.f32 %v1076_v31, %v1041_v46  ;;  %v1116_v1 = vpop.permute.xlu1 %1115  ;;  %v1352_v20 = vsel %vm1347_vm8, %v5176_v36, %v1346_v21  ;;  %vm2251_vm8 = vcmask 1040384  }
 0x221   : > { %v1122_v23 = vsel %vm6664_vm7, %v6630_v13, %v1116_v1  ;;  %v1134_v26 = vadd.f32 %v1116_v1, %v1088_v56  ;;  %vm6668_vm7 = vcmask 351232  }
 0x222   : > { %v1133_v43 = vadd.f32 %v1122_v23, %v1087_v54  ;;  %3817 = vrot.lane.b32.xlu0 %v3816_v34, %s6660_s20 }
 0x223   : > { %v1438_v2 = vpop.permute.xlu0 %1437  ;;  %v1180_v38 = vadd.f32 %v1162_v25, %v1134_v26 }
 0x224   : > { %v1179_v19 = vadd.f32 %v1168_v63, %v1133_v43  ;;  %v1208_v61 = vpop.permute.xlu1 %1207 }
 0x225   : > { %v1214_v52 = vsel %vm6666_vm6, %v5103_v3, %v1208_v61  ;;  %v1226_v40 = vadd.f32 %v1208_v61, %v1180_v38  ;;  %v4014_v61 = vld [vmem:[%s6395_s1 + $0x70] ss:$8 sps:$4 sm:$0xff]   ;;  %vm3090_vm6 = vcmask 982016  }
 0x226   : > { %v1225_v32 = vadd.f32 %v1214_v52, %v1179_v19  ;;  %v4012_v19 = vld [vmem:[%s6395_s1 + $0x74] ss:$8 sps:$4 sm:$0xff]  }
 0x227   : > { %v1272_v13 = vadd.f32 %v1254_v9, %v1226_v40  ;;  %v1525_v44 = vpop.permute.xlu0 %1524  ;;  %2261 = vmatprep.subr.bf16.mxu0 %v4012_v19 }
 0x228   : > { %v1271_v16 = vadd.f32 %v1260_v0, %v1225_v32  ;;  %v1300_v5 = vpop.permute.xlu1 %1299  ;;  %2262 = vmatpush1.bf16.msra.mxu0 %v4014_v61  ;;  %v4018_v0 = vld [vmem:[%s6395_s1 + $0x54] ss:$8 sps:$4 sm:$0xff]  }
 0x229   : > { %v1306_v12 = vsel %vm6668_vm7, %v6636_v35, %v1300_v5  ;;  %v1318_v10 = vadd.f32 %v1300_v5, %v1272_v13  ;;  %v1444_v35 = vsel %vm1439_vm11, %v6642_v30, %v1438_v2  ;;  %v4020_v13 = vld [vmem:[%s6395_s1 + $0x50] ss:$8 sps:$4 sm:$0xff]   ;;  %vm2465_vm11 = vcmask 924672  }
 0x22a   : > { %v1317_v18 = vadd.f32 %v1306_v12, %v1271_v16  ;;  %v4021_v16 = vld [vmem:[%s6395_s1 + $0x44] ss:$8 sps:$4 sm:$0xff]   ;;  %v4047_v5 = vld [vmem:[%s6395_s1 + $0x170] ss:$8 sps:$4 sm:$0xff]   ;;  %vm3270_vm7 = vcmask 687104  }
 0x22b   : > { %v1576_v48 = vpop.permute.xlu0 %1575  ;;  %v1364_v29 = vadd.f32 %v1346_v21, %v1318_v10  ;;  %v4050_v12 = vld [vmem:[%s6395_s1 + $0x164] ss:$8 sps:$4 sm:$0xff]   ;;  %v4023_v10 = vld [vmem:[%s6395_s1 + $0x40] ss:$8 sps:$4 sm:$0xff]  }
 0x22c   : > { %v1392_v25 = vpop.permute.xlu1 %1391  ;;  %v1363_v3 = vadd.f32 %v1352_v20, %v1317_v18  ;;  %v4053_v18 = vld [vmem:[%s6395_s1 + $0x160] ss:$8 sps:$4 sm:$0xff]   ;;  %v4024_v20 = vld [vmem:[%s6395_s1 + $0x34] ss:$8 sps:$4 sm:$0xff]  }
 0x22d   : > { %v1398_v7 = vsel %vm1393_vm10, %v6639_v42, %v1392_v25  ;;  %v1410_v22 = vadd.f32 %v1392_v25, %v1364_v29  ;;  %v4056_v25 = vld [vmem:[%s6395_s1 + $0x154] ss:$8 sps:$4 sm:$0xff]   ;;  %v4062_v29 = vld [vmem:[%s6395_s1 + $0x144] ss:$8 sps:$4 sm:$0xff]   ;;  %vm2247_vm10 = vcmask 23552  }
 0x22e   : > { %v1409_v60 = vadd.f32 %v1398_v7, %v1363_v3  ;;  %v4026_v3 = vld [vmem:[%s6395_s1 + $0x30] ss:$8 sps:$4 sm:$0xff]   ;;  %v4027_v7 = vld [vmem:[%s6395_s1 + $0x24] ss:$8 sps:$4 sm:$0xff]  }
 0x22f   : > { %v1627_v39 = vpop.permute.xlu0 %1626  ;;  %v1456_v58 = vadd.f32 %v1438_v2, %v1410_v22  ;;  %v4030_v22 = vld [vmem:[%s6395_s1 + $0x14] ss:$8 sps:$4 sm:$0xff]  }
 0x230   : > { %v1523_v6 = vpop.permute.xlu1 %1522  ;;  %v1455_v11 = vadd.f32 %v1444_v35, %v1409_v60  ;;  %v4029_v60 = vld [vmem:[%s6395_s1 + $0x20] ss:$8 sps:$4 sm:$0xff]  }
 0x231   : > { %v1531_v9 = vsel %vm1526_vm12, %v6649_v4, %v1523_v6  ;;  %v1532_v36 = vsel %vm1526_vm12, %v1523_v6, %v1525_v44  ;;  %v4044_v44 = vld [vmem:[%s6395_s1 + $0x174] ss:$8 sps:$4 sm:$0xff]   ;;  %v4065_v6 = vld [vmem:[%s6395_s1 + $0x140] ss:$8 sps:$4 sm:$0xff]  }
 0x232   : > { %v1543_v8 = vadd.f32 %v1531_v9, %v1455_v11  ;;  %v1544_v37 = vadd.f32 %v1532_v36, %v1456_v58  ;;  %2302 = vmatprep.subr.bf16.mxu1 %v4044_v44  ;;  %v4035_v35 = vld [vmem:[%s6395_s1] ss:$8 sps:$4 sm:$0xff]   ;;  %v4036_v58 = vld [vmem:[%s6395_s1 + $0xf4] ss:$8 sps:$4 sm:$0xff]   ;;  %v4038_v11 = vld [vmem:[%s6395_s1 + $0xf0] ss:$8 sps:$4 sm:$0xff]  }
 0x233   : > { %v1678_v17 = vpop.permute.xlu0 %1677  ;;  %2303 = vmatpush1.bf16.msra.mxu1 %v4047_v5  ;;  %v4039_v9 = vld [vmem:[%s6395_s1 + $0xe4] ss:$8 sps:$4 sm:$0xff]   ;;  %v4041_v36 = vld [vmem:[%s6395_s1 + $0xe0] ss:$8 sps:$4 sm:$0xff]   ;;  %v4083_v44 = vld [vmem:[%s6395_s1 + $0x274] ss:$8 sps:$4 sm:$0xff]  }
 0x234   : > { %v1574_v57 = vpop.permute.xlu1 %1573  ;;  %2304 = vmatprep.subr.bf16.mxu1 %v4050_v12  ;;  %v4102_v5 = vld [vmem:[%s6395_s1 + $0x1d4] ss:$8 sps:$4 sm:$0xff]   ;;  %v4104_v12 = vld [vmem:[%s6395_s1 + $0x1d0] ss:$8 sps:$4 sm:$0xff]  }
 0x235   : > { %v1582_v33 = vsel %vm1577_vm13, %v5287_v14, %v1574_v57  ;;  %v1583_v42 = vsel %vm1577_vm13, %v1574_v57, %v1576_v48  ;;  %v4059_v48 = vld [vmem:[%s6395_s1 + $0x150] ss:$8 sps:$4 sm:$0xff]   ;;  %v4033_v57 = vld [vmem:[%s6395_s1 + $0x4] ss:$8 sps:$4 sm:$0xff]   ;;  %vm2461_vm13 = vcmask 932864  }
 0x236   : > { %v1594_v28 = vadd.f32 %v1582_v33, %v1543_v8  ;;  %v1595_v31 = vadd.f32 %v1583_v42, %v1544_v37  ;;  %v4046_v33 = vld [vmem:[%s6395_s1 + $0xd0] ss:$8 sps:$4 sm:$0xff]   ;;  %v4048_v42 = vld [vmem:[%s6395_s1 + $0xc4] ss:$8 sps:$4 sm:$0xff]   ;;  %v4052_v8 = vld [vmem:[%s6395_s1 + $0xc0] ss:$8 sps:$4 sm:$0xff]  }
 0x237   : > { %v1729_v54 = vpop.permute.xlu0 %1728  ;;  %2305 = vmatpush1.bf16.msra.mxu1 %v4053_v18  ;;  %v4054_v37 = vld [vmem:[%s6395_s1 + $0xb4] ss:$8 sps:$4 sm:$0xff]   ;;  %v4108_v18 = vld [vmem:[%s6395_s1 + $0x1c4] ss:$8 sps:$4 sm:$0xff]  }
 0x238   : > { %v1625_v55 = vpop.permute.xlu1 %1624  ;;  %2306 = vmatprep.subr.bf16.mxu1 %v4056_v25  ;;  %v4114_v25 = vld [vmem:[%s6395_s1 + $0x1b4] ss:$8 sps:$4 sm:$0xff]  }
 0x239   : > { %v1633_v46 = vsel %vm1628_vm15, %v5371_v41, %v1625_v55  ;;  %v1634_v30 = vsel %vm1628_vm15, %v1625_v55, %v1627_v39  ;;  %v4032_v39 = vld [vmem:[%s6395_s1 + $0x10] ss:$8 sps:$4 sm:$0xff]   ;;  %v4042_v55 = vld [vmem:[%s6395_s1 + $0xd4] ss:$8 sps:$4 sm:$0xff]   ;;  %vm2433_vm15 = vcmask 752640  }
 0x23a   : > { %v1645_v34 = vadd.f32 %v1633_v46, %v1594_v28  ;;  %v1646_v14 = vadd.f32 %v1634_v30, %v1595_v31  ;;  %v4060_v46 = vld [vmem:[%s6395_s1 + $0xa4] ss:$8 sps:$4 sm:$0xff]   ;;  %v4064_v30 = vld [vmem:[%s6395_s1 + $0xa0] ss:$8 sps:$4 sm:$0xff]   ;;  %v4066_v31 = vld [vmem:[%s6395_s1 + $0x94] ss:$8 sps:$4 sm:$0xff]  }
 0x23b   : > { %2307 = vmatpush1.bf16.msra.mxu1 %v4059_v48  ;;  %v4120_v48 = vld [vmem:[%s6395_s1 + $0x1a4] ss:$8 sps:$4 sm:$0xff]  }
 0x23c   : > { %v1676_v21 = vpop.permute.xlu1 %1675  ;;  %2308 = vmatprep.subr.bf16.mxu1 %v4062_v29  ;;  %v4126_v29 = vld [vmem:[%s6395_s1 + $0x194] ss:$8 sps:$4 sm:$0xff]  }
 0x23d   : > { %v1684_v4 = vsel %vm1679_vm14, %v5453_v49, %v1676_v21  ;;  %v1685_v56 = vsel %vm1679_vm14, %v1676_v21, %v1678_v17  ;;  %v4058_v17 = vld [vmem:[%s6395_s1 + $0xb0] ss:$8 sps:$4 sm:$0xff]   ;;  %v4068_v21 = vld [vmem:[%s6395_s1 + $0x134] ss:$8 sps:$4 sm:$0xff]   ;;  %vm2449_vm14 = vcmask 957440  }
 0x23e   : > { %v1696_v1 = vadd.f32 %v1684_v4, %v1645_v34  ;;  %v1697_v23 = vadd.f32 %v1685_v56, %v1646_v14  ;;  %v4070_v4 = vld [vmem:[%s6395_s1 + $0x90] ss:$8 sps:$4 sm:$0xff]   ;;  %v4072_v34 = vld [vmem:[%s6395_s1 + $0x84] ss:$8 sps:$4 sm:$0xff]  }
 0x23f   : > { %2309 = vmatpush1.bf16.msra.mxu1 %v4065_v6  ;;  %v4071_v56 = vld [vmem:[%s6395_s1 + $0x130] ss:$8 sps:$4 sm:$0xff]   ;;  %v4074_v14 = vld [vmem:[%s6395_s1 + $0x124] ss:$8 sps:$4 sm:$0xff]  }
 0x240   : > { %v1727_v26 = vpop.permute.xlu1 %1726  ;;  %2310 = vmatprep.subr.bf16.mxu1 %v4068_v21  ;;  %v4131_v6 = vld [vmem:[%s6395_s1 + $0x184] ss:$8 sps:$4 sm:$0xff]   ;;  %v4093_v21 = vld [vmem:[%s6395_s1 + $0x250] ss:$8 sps:$4 sm:$0xff]  }
 0x241   : > { %v1735_v43 = vsel %vm1730_vm3, %v5601_v24, %v1727_v26  ;;  %v1736_v41 = vsel %vm1730_vm3, %v1727_v26, %v1729_v54  ;;  %v4015_v24 = vld [vmem:[%s6395_s1 + $0x64] ss:$8 sps:$4 sm:$0xff]   ;;  %v4077_v26 = vld [vmem:[%s6395_s1 + $0x120] ss:$8 sps:$4 sm:$0xff]   ;;  %vm4303_vm3 = vmmov 0  }
 0x242   : > { %v1747_v63 = vadd.f32 %v1735_v43, %v1696_v1  ;;  %v1748_v2 = vadd.f32 %v1736_v41, %v1697_v23  ;;  %2263 = vmatprep.subr.bf16.mxu0 %v4015_v24  ;;  %v4076_v23 = vld [vmem:[%s6395_s1 + $0x80] ss:$8 sps:$4 sm:$0xff]   ;;  %v4078_v24 = vld [vmem:[%s6395_s1 + $0x114] ss:$8 sps:$4 sm:$0xff]  }
 0x243   : > { %2311 = vmatpush1.bf16.msra.mxu1 %v4071_v56  ;;  %v4099_v56 = vld [vmem:[%s6395_s1 + $0x240] ss:$8 sps:$4 sm:$0xff]  }
 0x244   : > { %v5674_v38 = vadd.f32 %v5536_v62, %v1747_v63  ;;  %v5677_v49 = vadd.f32 %v5536_v62, %v1748_v2  ;;  %v4017_v62 = vld [vmem:[%s6395_s1 + $0x60] ss:$8 sps:$4 sm:$0xff]   ;;  %2312 = vmatprep.subr.bf16.mxu1 %v4074_v14  ;;  %v4105_v14 = vld [vmem:[%s6395_s1 + $0x230] ss:$8 sps:$4 sm:$0xff]  }
 0x245   : > { %2264 = vmatpush1.bf16.msra.mxu0 %v4017_v62  ;;  %v4080_v62 = vld [vmem:[%s6395_s1 + $0x110] ss:$8 sps:$4 sm:$0xff]  }
 0x246   : > { %v1764_v52 = vmax.f32 %v5674_v38, 0.0  ;;  %v1765_v40 = vmax.f32 %v5677_v49, 0.0  ;;  %2265 = vmatprep.subr.bf16.mxu0 %v4018_v0 }
 0x247   : > { %2313 = vmatpush1.bf16.msra.mxu1 %v4077_v26  ;;  %v518_v26 = vld [vmem:[%s6395_s1 + $0x280] sm:$0x33] }
 0x248   : > { %v3821_v32 = vpack.i.bf16 %v1765_v40, %v1764_v52  ;;  %2314 = vmatprep.subr.bf16.mxu1 %v4078_v24  ;;  %v4123_v24 = vld [vmem:[%s6395_s1 + $0x200] ss:$8 sps:$4 sm:$0xff]  }
 0x249   : > { %2266 = vmatpush1.bf16.msra.mxu0 %v4020_v13 }
 0x24a   : > { %3822 = vrot.lane.b32.xlu1 %v3821_v32, %s6660_s20  ;;  %2267 = vmatprep.subr.bf16.mxu0 %v4021_v16  ;;  %v4084_v16 = vld [vmem:[%s6395_s1 + $0x104] ss:$8 sps:$4 sm:$0xff]  }
 0x24b   : > { %2315 = vmatpush1.bf16.msra.mxu1 %v4080_v62  ;;  %v3472_v62 = vcombine.low %v518_v26, %v518_v26 }
 0x24c   : > { %2316 = vmatprep.subr.bf16.mxu1 %v4084_v16 }
 0x24d   : > { %2268 = vmatpush1.bf16.msra.mxu0 %v4023_v10  ;;  %v4110_v10 = vld [vmem:[%s6395_s1 + $0x1c0] ss:$8 sps:$4 sm:$0xff]  }
 0x24e   : > { %2269 = vmatprep.subr.bf16.mxu0 %v4024_v20  ;;  %v4116_v20 = vld [vmem:[%s6395_s1 + $0x1b0] ss:$8 sps:$4 sm:$0xff]  }
 0x24f   : > { %2317 = vmatpush1.bf16.msra.mxu1 %v4086_v47 }
 0x251   : > { %2270 = vmatpush1.bf16.msra.mxu0 %v4026_v3  ;;  %v4122_v3 = vld [vmem:[%s6395_s1 + $0x1a0] ss:$8 sps:$4 sm:$0xff]  }
 0x252   : > { %2271 = vmatprep.subr.bf16.mxu0 %v4027_v7  ;;  %v4128_v7 = vld [vmem:[%s6395_s1 + $0x190] ss:$8 sps:$4 sm:$0xff]  }
 0x255   : > { %2272 = vmatpush1.bf16.msra.mxu0 %v4029_v60  ;;  %v4133_v60 = vld [vmem:[%s6395_s1 + $0x180] ss:$8 sps:$4 sm:$0xff]  }
 0x256   : > { %2273 = vmatprep.subr.bf16.mxu0 %v4030_v22 }
 0x259   : > { %2274 = vmatpush1.bf16.msra.mxu0 %v4032_v39 }
 0x25a   : > { %2275 = vmatprep.subr.bf16.mxu0 %v4033_v57 }
 0x25d   : > { %2276 = vmatpush1.bf16.msra.mxu0 %v4035_v35 }
 0x25e   : > { %2277 = vmatprep.subr.bf16.mxu0 %v4036_v58 }
 0x261   : > { %2278 = vmatpush2.bf16.msra.mxu0 %v4038_v11 }
 0x262   : > { %2279 = vmatprep.subr.bf16.mxu0 %v4039_v9  ;;  %v6670_v9 = vmov 0  }
 0x265   : > { %2280 = vmatpush2.bf16.msra.mxu0 %v4041_v36 }
 0x266   : > { %2281 = vmatprep.subr.bf16.mxu0 %v4042_v55 }
 0x269   : > { %2282 = vmatpush2.bf16.msra.mxu0 %v4046_v33 }
 0x26a   : > { %2283 = vmatprep.subr.bf16.mxu0 %v4048_v42 }
 0x26d   : > { %2284 = vmatpush2.bf16.msra.mxu0 %v4052_v8 }
 0x26e   : > { %2285 = vmatprep.subr.bf16.mxu0 %v4054_v37 }
 0x271   : > { %2286 = vmatpush2.bf16.msra.mxu0 %v4058_v17 }
 0x272   : > { %2287 = vmatprep.subr.bf16.mxu0 %v4060_v46  ;;  %v4081_v46 = vld [vmem:[%s6395_s1 + $0x270] ss:$8 sps:$4 sm:$0xff]  }
 0x275   : > { %2288 = vmatpush2.bf16.msra.mxu0 %v4064_v30  ;;  %v4089_v30 = vld [vmem:[%s6395_s1 + $0x264] ss:$8 sps:$4 sm:$0xff]  }
 0x276   : > { %2289 = vmatprep.subr.bf16.mxu0 %v4066_v31  ;;  %v4095_v31 = vld [vmem:[%s6395_s1 + $0x254] ss:$8 sps:$4 sm:$0xff]  }
 0x279   : > { %2290 = vmatpush2.bf16.msra.mxu0 %v4070_v4  ;;  %v4101_v4 = vld [vmem:[%s6395_s1 + $0x244] ss:$8 sps:$4 sm:$0xff]  }
 0x27a   : > { %2291 = vmatprep.subr.bf16.mxu0 %v4072_v34  ;;  %v4107_v34 = vld [vmem:[%s6395_s1 + $0x234] ss:$8 sps:$4 sm:$0xff]  }
 0x27d   : > { %2292 = vmatpush2.bf16.msra.mxu0 %v4076_v23  ;;  %v4119_v23 = vld [vmem:[%s6395_s1 + $0x214] ss:$8 sps:$4 sm:$0xff]  }
 0x27e   : > { %2343 = vmatprep.subr.bf16.mxu0 %v4083_v44 }
 0x28c   : > { %v3813_v28 = vpop.permute.xlu1 %3812 }
 0x28d   : > { %v3815_v54 = vunpack.i.h.bf16 %v3813_v28  ;;  %v3814_v1 = vunpack.i.l.bf16 %v3813_v28  ;;  %v4087_v28 = vld [vmem:[%s6395_s1 + $0x260] ss:$8 sps:$4 sm:$0xff]  }
 0x28f   : > { %v1785_v41 = vsel %vm611_vm0, %v3814_v1, %v3815_v54 }
 0x290   : > { %v5829_v32 = vmax.f32 %v1761_v50, %v1785_v41  ;;  %v4090_v50 = vld [vmem:[%s6395_s1 + $0x1f4] ss:$8 sps:$4 sm:$0xff]  }
 0x291   : > { %2318 = vmatprep.subr.bf16.mxu1 %v4090_v50 }
 0x294   : > { %v3818_v43 = vpop.permute.xlu0 %3817 }
 0x295   : > { %v3820_v63 = vunpack.i.h.bf16 %v3818_v43  ;;  %v3819_v2 = vunpack.i.l.bf16 %v3818_v43  ;;  %v4289_v43 = vmov 65535  }
 0x296   : > { %v2253_v41 = vsel %vm2251_vm8, 4294967295, %v4289_v43  ;;  %vm3317_vm8 = vcmask 80896  }
 0x297   : > { %v1784_v19 = vsel %vm611_vm0, %v3820_v63, %v3814_v1  ;;  %v1786_v61 = vsel %vm611_vm0, %v3815_v54, %v3819_v2  ;;  %v4113_v54 = vld [vmem:[%s6395_s1 + $0x224] ss:$8 sps:$4 sm:$0xff]   ;;  %v4111_v1 = vld [vmem:[%s6395_s1 + $0x220] ss:$8 sps:$4 sm:$0xff]   ;;  %v4117_v63 = vld [vmem:[%s6395_s1 + $0x210] ss:$8 sps:$4 sm:$0xff]  }
 0x298   : > { %v5833_v0 = vmax.f32 %v1760_v45, %v1784_v19  ;;  %v5837_v13 = vmax.f32 %v1762_v27, %v1786_v61  ;;  %v4092_v27 = vld [vmem:[%s6395_s1 + $0x1f0] ss:$8 sps:$4 sm:$0xff]   ;;  %v4098_v45 = vld [vmem:[%s6395_s1 + $0x1e0] ss:$8 sps:$4 sm:$0xff]   ;;  %v3473_v19 = vcombine.high %v518_v26, %v518_v26  ;;  %v5974_v61 = vsel %vm2252_vm9, %v2253_v41, 0 }
 0x299   : > { %2319 = vmatpush2.bf16.msra.mxu1 %v4092_v27  ;;  %v2256_v16 = vand.u32 %v3472_v62, %v5974_v61 }
 0x29a   : > { %1807 = vrot.lane.b32.xlu1 %v5833_v0, %s6669_s24  ;;  %v3826_v15 = vpack.i.bf16 %v5837_v13, %v5829_v32  ;;  %2320 = vmatprep.subr.bf16.mxu1 %v4096_v51 }
 0x29c   : > { %3827 = vrot.lane.b32.xlu0 %v3826_v15, %s6669_s24 }
 0x29d   : > { %2321 = vmatpush2.bf16.msra.mxu1 %v4098_v45 }
 0x29e   : > { %2322 = vmatprep.subr.bf16.mxu1 %v4102_v5 }
 0x2a1   : > { %2323 = vmatpush2.bf16.msra.mxu1 %v4104_v12 }
 0x2a2   : > { %2324 = vmatprep.subr.bf16.mxu1 %v4108_v18 }
 0x2a5   : > { %2325 = vmatpush2.bf16.msra.mxu1 %v4110_v10 }
 0x2a6   : > { %2326 = vmatprep.subr.bf16.mxu1 %v4114_v25 }
 0x2a9   : > { %2327 = vmatpush2.bf16.msra.mxu1 %v4116_v20 }
 0x2aa   : > { %2328 = vmatprep.subr.bf16.mxu1 %v4120_v48 }
 0x2ad   : > { %2329 = vmatpush2.bf16.msra.mxu1 %v4122_v3 }
 0x2ae   : > { %2330 = vmatprep.subr.bf16.mxu1 %v4126_v29 }
 0x2b1   : > { %2331 = vmatpush2.bf16.msra.mxu1 %v4128_v7 }
 0x2b2   : > { %2332 = vmatprep.subr.bf16.mxu1 %v4131_v6 }
 0x2b5   : > { %2333 = vmatpush2.bf16.msra.mxu1 %v4133_v60 }
 0x2b6   : > { %2561 = vmatprep.subr.bf16.mxu1 %v6670_v9 }
 0x2bc   : > { %v3823_v22 = vpop.permute.xlu1 %3822 }
 0x2bd   : > { %v3825_v39 = vunpack.i.h.bf16 %v3823_v22  ;;  %v3824_v57 = vunpack.i.l.bf16 %v3823_v22 }
 0x2bf   : > { %v1800_v35 = vmax.f32 %v1765_v40, %v3825_v39  ;;  %v1787_v58 = vsel %vm611_vm0, %v3819_v2, %v3824_v57  ;;  %v1788_v11 = vsel %vm611_vm0, %v3824_v57, %v3825_v39  ;;  %v4125_v2 = vld [vmem:[%s6395_s1 + $0x204] ss:$8 sps:$4 sm:$0xff]  }
 0x2c0   : > { %v5908_v36 = vmax.f32 %v1763_v59, %v1787_v58  ;;  %v5912_v55 = vmax.f32 %v1764_v52, %v1788_v11 }
 0x2c1   : > { %1817 = vrot.lane.b32.xlu1 %v1800_v35, %s6669_s24 }
 0x2c2   : > { %v3831_v49 = vpack.i.bf16 %v5912_v55, %v5908_v36 }
 0x2c4   : > { %3832 = vrot.lane.b32.xlu0 %v3831_v49, %s6669_s24 }
 0x30c   : > { %v1808_v53 = vpop.permute.xlu1 %1807 }
 0x30e   : > { %v5918_v40 = vpop.permute.xlu0 %3827 }
 0x30f   : > { %v3830_v33 = vunpack.i.h.bf16 %v5918_v40  ;;  %v3829_v42 = vunpack.i.l.bf16 %v5918_v40 }
 0x311   : > { %v1820_v59 = vsel %vm795_vm4, %v3829_v42, %v3830_v33  ;;  %v1819_v38 = vsel %vm795_vm4, %v1808_v53, %v3829_v42 }
 0x312   : > { %v1831_v52 = vmax.f32 %v5829_v32, %v1820_v59  ;;  %v1830_v8 = vmax.f32 %v5833_v0, %v1819_v38  ;;  %v2259_v32 = vand.u32 %v3473_v19, %v5974_v61 }
 0x314   : > { %v1837_v37 = vpack.c.bf16 %v1831_v52, %v1831_v52  ;;  %v1836_v17 = vpack.c.bf16 %v1830_v8, %v1830_v8 }
 0x316   : > { %2293 = vmatprep.mubr.bf16.mxu0 %v1837_v37 }
 0x317   : > { %2294 = vmatmul.mubr.bf16.vlgmr.msra.gmra.mxu0 %v1836_v17 }
 0x318   : > { %2344 = vmatpush1.bf16.msra.mxu0 %v4081_v46 }
 0x319   : > { %2345 = vmatprep.subr.bf16.mxu0 %v4089_v30 }
 0x31c   : > { %2346 = vmatpush1.bf16.msra.mxu0 %v4087_v28 }
 0x31d   : > { %2347 = vmatprep.subr.bf16.mxu0 %v4095_v31 }
 0x320   : > { %2348 = vmatpush1.bf16.msra.mxu0 %v4093_v21 }
 0x321   : > { %2349 = vmatprep.subr.bf16.mxu0 %v4101_v4 }
 0x324   : > { %2350 = vmatpush1.bf16.msra.mxu0 %v4099_v56 }
 0x325   : > { %2351 = vmatprep.subr.bf16.mxu0 %v4107_v34 }
 0x328   : > { %2352 = vmatpush1.bf16.msra.mxu0 %v4105_v14 }
 0x329   : > { %2353 = vmatprep.subr.bf16.mxu0 %v4113_v54 }
 0x32c   : > { %2354 = vmatpush1.bf16.msra.mxu0 %v4111_v1 }
 0x32d   : > { %2355 = vmatprep.subr.bf16.mxu0 %v4119_v23 }
 0x330   : > { %2356 = vmatpush1.bf16.msra.mxu0 %v4117_v63 }
 0x331   : > { %2357 = vmatprep.subr.bf16.mxu0 %v4125_v2 }
 0x333   : > { %v1818_v0 = vpop.permute.xlu1 %1817 }
 0x334   : > { %v1835_v44 = vmax.f32 %v1800_v35, %v1818_v0  ;;  %2358 = vmatpush1.bf16.msra.mxu0 %v4123_v24 }
 0x335   : > { %2373 = vmatprep.subr.bf16.mxu0 %v2259_v32 }
 0x336   : > { %v1841_v15 = vpack.c.bf16 %v1835_v44, %v1835_v44  ;;  %v3833_v47 = vpop.permute.xlu0 %3832 }
 0x337   : > { %v3835_v50 = vunpack.i.h.bf16 %v3833_v47  ;;  %v3834_v27 = vunpack.i.l.bf16 %v3833_v47 }
 0x338   : > { %3474 = vmatprep.mubr.msk.bf16.mxu0 %vm2247_vm10, %v1841_v15  ;;  %2374 = vmatpush2.bf16.msra.mxu0 %v2256_v16 }
 0x339   : > { %v1823_v51 = vsel %vm795_vm4, %v3835_v50, %v1818_v0  ;;  %v1822_v45 = vsel %vm795_vm4, %v3834_v27, %v3835_v50  ;;  %v1821_v5 = vsel %vm795_vm4, %v3830_v33, %v3834_v27  ;;  %vm2457_vm4 = vcmask 941056  }
 0x33a   : > { %v1834_v12 = vmax.f32 %v5912_v55, %v1823_v51  ;;  %v1833_v18 = vmax.f32 %v5908_v36, %v1822_v45  ;;  %v1832_v10 = vmax.f32 %v5837_v13, %v1821_v5  ;;  %v4134_v45 = vld [vmem:[%s6399_s5 + $0x4] ss:$8 sps:$4 sm:$0xff]  }
 0x33c   : > { %v1839_v25 = vpack.c.bf16 %v1833_v18, %v1833_v18  ;;  %v1840_v20 = vpack.c.bf16 %v1834_v12, %v1834_v12  ;;  %v1838_v48 = vpack.c.bf16 %v1832_v10, %v1832_v10 }
 0x33e   : > { %2334 = vmatprep.mubr.bf16.mxu1 %v1839_v25  ;;  %2376 = vmatmul.mubr.bf16.vlgmr.msra.gmra.mxu0 %v1840_v20 }
 0x33f   : > { %2335 = vmatmul.mubr.bf16.vlgmr.msra.gmra.mxu1 %v1838_v48 }
 0x3d7   : > { %v2295_v3 = vpop.f32.mrf.mxu0 }
 0x3d9   : > { %v2297_v29 = vpop.f32.mrf.mxu0 }
 0x3db   : > { %v2299_v7 = vpop.f32.mrf.mxu0 }
 0x3dd   : > { %v2300_v6 = vpop.f32.mrf.mxu0 }
 0x3fe   : > { %v2377_v60 = vpop.f32.mrf.mxu0 }
 0x3ff   : > { %v2336_v22 = vpop.f32.mrf.mxu1 }
 0x400   : > { %v2379_v39 = vpop.f32.mrf.mxu0  ;;  %v2337_v57 = vadd.f32 %v2336_v22, %v2295_v3  ;;  %v532_v22 = vld [vmem:[%s6400_s6] sm:$0xff] }
 0x401   : > { %v2338_v35 = vpop.f32.mrf.mxu1 }
 0x402   : > { %v2339_v58 = vadd.f32 %v2338_v35, %v2297_v29  ;;  %v2381_v11 = vpop.f32.mrf.mxu0  ;;  %v5989_v49 = vadd.f32 %v2377_v60, %v2337_v57  ;;  %v533_v35 = vld [vmem:[%s6400_s6 + $0x8] sm:$0xff] }
 0x403   : > { %v2340_v36 = vpop.f32.mrf.mxu1 }
 0x404   : > { %v2380_v55 = vadd.f32 %v2379_v39, %v2339_v58  ;;  %v2382_v13 = vpop.f32.mrf.mxu0 }
 0x405   : > { %v2341_v40 = vpop.f32.mrf.mxu1 }
 0x406   : > { %v2384_v33 = vsel %vm1526_vm12, %v2380_v55, 0.0  ;;  %vm2453_vm12 = vcmask 949248  }
 0x407   : > { %v5993_v42 = vpack.i.bf16 %v2384_v33, %v5989_v49 }
 0x409   : > { %3842 = vrot.lane.b32.xlu1 %v5993_v42, %s6503_s0  ;;  %3837 = vrot.lane.b32.xlu0 %v5993_v42, %s4291_s30  ;;  %s6673_s0 = smov 124  }
 0x40d   : > { %3852 = vrot.lane.b32.xlu1 %v5993_v42, %s4292_s15  ;;  %3847 = vrot.lane.b32.xlu0 %v5993_v42, %s6504_s27  ;;  %s4300_s27 = smov 112  }
 0x411   : > { %3862 = vrot.lane.b32.xlu1 %v5993_v42, %s6671_s17  ;;  %3857 = vrot.lane.b32.xlu0 %v5993_v42, %s6502_s3  ;;  %s4299_s3 = smov 104  }
 0x415   : > { %3872 = vrot.lane.b32.xlu1 %v5993_v42, %s6660_s20  ;;  %3867 = vrot.lane.b32.xlu0 %v5993_v42, %s6672_s4 }
 0x419   : > { %2425 = vrot.lane.b32.xlu1 %v5989_v49, %s6669_s24  ;;  %3877 = vrot.lane.b32.xlu0 %v5993_v42, %s4295_s23  ;;  %s4301_s24 = smov 91   ;;  %s4306_s23 = smov 123  }
 0x41d   : > { %2422 = vrot.lane.b32.xlu1 %v5989_v49, %s4296_s21  ;;  %2419 = vrot.lane.b32.xlu0 %v5989_v49, %s4297_s22  ;;  %s6676_s21 = smov 115   ;;  %s6677_s22 = smov 117  }
 0x421   : > { %2416 = vrot.lane.b32.xlu1 %v5989_v49, %s4298_s16  ;;  %2413 = vrot.lane.b32.xlu0 %v5989_v49, %s4299_s3  ;;  %s6675_s3 = smov 114  }
 0x425   : > { %2395 = vrot.lane.b32.xlu1 %v5989_v49, %s6673_s0  ;;  %2410 = vrot.lane.b32.xlu0 %v5989_v49, %s4300_s27  ;;  %s4305_s27 = smov 122  }
 0x47b   : > { %v6021_v53 = vpop.permute.xlu1 %3842  ;;  %v6023_v59 = vpop.permute.xlu0 %3837 }
 0x47c   : > { %v3845_v38 = vunpack.i.h.bf16 %v6021_v53  ;;  %v3844_v52 = vunpack.i.l.bf16 %v6021_v53  ;;  %v3840_v8 = vunpack.i.h.bf16 %v6023_v59  ;;  %v3839_v37 = vunpack.i.l.bf16 %v6023_v59 }
 0x47e   : > { %v2458_v17 = vsel %vm2457_vm4, %v3844_v52, %v3845_v38  ;;  %v2466_v46 = vsel %vm2465_vm11, %v3839_v37, %v3840_v8 }
 0x47f   : > { %v3886_v30 = vpack.i.bf16 %v3845_v38, %v2458_v17  ;;  %v3881_v28 = vpack.i.bf16 %v3840_v8, %v2466_v46  ;;  %v6033_v31 = vpop.permute.xlu1 %3852  ;;  %v6035_v21 = vpop.permute.xlu0 %3847 }
 0x480   : > { %v3855_v4 = vunpack.i.h.bf16 %v6033_v31  ;;  %v3854_v56 = vunpack.i.l.bf16 %v6033_v31  ;;  %v3850_v34 = vunpack.i.h.bf16 %v6035_v21  ;;  %v3849_v14 = vunpack.i.l.bf16 %v6035_v21 }
 0x481   : > { %3887 = vrot.lane.b32.xlu1 %v3886_v30, %s4301_s24  ;;  %3882 = vrot.lane.b32.xlu0 %v3881_v28, %s4301_s24 }
 0x482   : > { %v2462_v54 = vsel %vm2461_vm13, %v3849_v14, %v3850_v34  ;;  %v2454_v1 = vsel %vm2453_vm12, %v3854_v56, %v3855_v4  ;;  %v2525_v13 = vpack.c.bf16 %v3849_v14, %v3844_v52 }
 0x483   : > { %v3891_v23 = vpack.i.bf16 %v3850_v34, %v2462_v54  ;;  %v6047_v26 = vpop.permute.xlu1 %3862  ;;  %v3858_v43 = vpop.permute.xlu0 %3857  ;;  %v3901_v62 = vpack.i.bf16 %v3855_v4, %v2454_v1 }
 0x484   : > { %v3865_v41 = vunpack.i.h.bf16 %v6047_v26  ;;  %v3864_v63 = vunpack.i.l.bf16 %v6047_v26  ;;  %v3860_v2 = vunpack.i.h.bf16 %v3858_v43  ;;  %v3859_v19 = vunpack.i.l.bf16 %v3858_v43 }
 0x485   : > { %3892 = vrot.lane.b32.xlu0 %v3891_v23, %s4301_s24 }
 0x486   : > { %v2450_v24 = vsel %vm2449_vm14, %v3859_v19, %v3860_v2  ;;  %v2441_v16 = vsel %vm657_vm1, %v3864_v63, %v3865_v41  ;;  %vm6674_vm1 = vcmask 588800  }
 0x487   : > { %v3896_v32 = vpack.i.bf16 %v3860_v2, %v2450_v24  ;;  %v3873_v0 = vpop.permute.xlu1 %3872  ;;  %v3868_v44 = vpop.permute.xlu0 %3867  ;;  %v3906_v5 = vpack.i.bf16 %v3865_v41, %v2441_v16  ;;  %3477 = vmatprep.mubr.msk.bf16.mxu1 %vm6674_vm1, %v4134_v45 }
 0x488   : > { %v3870_v15 = vunpack.i.h.bf16 %v3868_v44  ;;  %v3869_v47 = vunpack.i.l.bf16 %v3868_v44  ;;  %v3875_v50 = vunpack.i.h.bf16 %v3873_v0  ;;  %v3874_v27 = vunpack.i.l.bf16 %v3873_v0 }
 0x489   : > { %3897 = vrot.lane.b32.xlu1 %v3896_v32, %s4301_s24  ;;  %3902 = vrot.lane.b32.xlu0 %v3901_v62, %s4301_s24 }
 0x48a   : > { %v2444_v51 = vsel %vm703_vm2, %v3869_v47, %v3870_v15  ;;  %v2438_v48 = vsel %vm611_vm0, %v3874_v27, %v3875_v50  ;;  %v2522_v59 = vpack.c.bf16 %v3874_v27, %v5989_v49  ;;  %vm2503_vm0 = vcmask 744448  }
 0x48b   : > { %v3916_v12 = vpack.i.bf16 %v3870_v15, %v2444_v51  ;;  %v2426_v18 = vpop.permute.xlu1 %2425  ;;  %v3878_v10 = vpop.permute.xlu0 %3877  ;;  %v3921_v60 = vpack.i.bf16 %v3875_v50, %v2438_v48  ;;  %vm2557_vm2 = vcmask 1043456  }
 0x48c   : > { %v3880_v25 = vunpack.i.h.bf16 %v3878_v10  ;;  %v3879_v20 = vunpack.i.l.bf16 %v3878_v10 }
 0x48d   : > { %3907 = vrot.lane.b32.xlu1 %v3906_v5, %s4301_s24  ;;  %3917 = vrot.lane.b32.xlu0 %v3916_v12, %s4301_s24 }
 0x48e   : > { %v2434_v3 = vsel %vm2433_vm15, %v3879_v20, %v3880_v25  ;;  %v4136_v20 = vld [vmem:[%s6399_s5] ss:$8 sps:$4 sm:$0xff]  }
 0x48f   : > { %v2529_v29 = vpack.c.bf16 %v2434_v3, %v2426_v18  ;;  %v2423_v7 = vpop.permute.xlu1 %2422  ;;  %v2420_v6 = vpop.permute.xlu0 %2419 }
 0x490   : > { %v2528_v39 = vpack.c.bf16 %v2423_v7, %v2420_v6 }
 0x491   : > { %2562 = vmatpush1.bf16.msra.mxu1 %v2529_v29  ;;  %3912 = vrot.lane.b32.xlu1 %v5993_v42, %s4301_s24  ;;  %v2523_v42 = vpack.c.bf16 %v3869_v47, %v3864_v63 }
 0x492   : > { %3922 = vrot.lane.b32.xlu0 %v3921_v60, %s4301_s24  ;;  %2563 = vmatprep.subr.bf16.mxu1 %v6670_v9  ;;  %s4304_s24 = smov 121  }
 0x493   : > { %v2414_v57 = vpop.permute.xlu0 %2413  ;;  %v2417_v58 = vpop.permute.xlu1 %2416 }
 0x494   : > { %v2527_v11 = vpack.c.bf16 %v2417_v58, %v2414_v57  ;;  %v4302_v57 = vmov 0.0  }
 0x495   : > { %2564 = vmatpush1.bf16.msra.mxu1 %v2528_v39  ;;  %2537 = vperm.xlu1 %3810, %v532_v22   ;;  %v4137_v22 = vld [vmem:[%s6396_s2 + $0x28] ss:$0 sps:$4 sm:$0x33]  }
 0x496   : > { %2565 = vmatprep.subr.bf16.mxu1 %v6670_v9  ;;  %2542 = vperm.xlu0 %3926, %v533_v35   ;;  %v2663_v35 = vand.u32 %v4137_v22, %v5974_v61  ;;  %v4140_v61 = vld [vmem:[%s6396_s2 + $0x10] sm:$0xff]  }
 0x497   : > { %v2411_v36 = vpop.permute.xlu0 %2410  ;;  %v2396_v40 = vpop.permute.xlu1 %2395  ;;  %3615 = vmatprep.subr.bf16.mxu0 %v4302_v57  ;;  %3627 = vmatprep.mubr.msk.bf16.mxu0 %vm4303_vm3, %v4302_v57 }
 0x498   : > { %v2526_v55 = vpack.c.bf16 %v2411_v36, %v3839_v37  ;;  %v2524_v33 = vpack.c.bf16 %v3854_v56, %v2396_v40  ;;  %3616 = vmatpush3.bf16.msra.mxu0 %v2663_v35  ;;  %v4138_v36 = vld [vmem:[%s6396_s2 + $0x20] sm:$0xff]   ;;  %v4141_v40 = vld [vmem:[%s6396_s2 + $0x8] sm:$0xff]  }
 0x499   : > { %2566 = vmatpush1.bf16.msra.mxu1 %v2527_v11  ;;  %3617 = vmatprep.subr.bf16.mxu0 %v4302_v57 }
 0x49a   : > { %2567 = vmatprep.subr.bf16.mxu1 %v6670_v9 }
 0x49c   : > { %3618 = vmatpush3.bf16.msra.mxu0 %v4138_v36 }
 0x49d   : > { %2568 = vmatpush1.bf16.msra.mxu1 %v2526_v55  ;;  %3619 = vmatprep.subr.bf16.mxu0 %v4302_v57 }
 0x49e   : > { %2569 = vmatprep.subr.bf16.mxu1 %v6670_v9 }
 0x4a1   : > { %2570 = vmatpush1.bf16.msra.mxu1 %v2525_v13  ;;  %v4139_v13 = vld [vmem:[%s6396_s2 + $0x18] sm:$0xff]  }
 0x4a2   : > { %2571 = vmatprep.subr.bf16.mxu1 %v6670_v9  ;;  %3620 = vmatpush3.bf16.msra.mxu0 %v4139_v13 }
 0x4a3   : > { %3621 = vmatprep.subr.bf16.mxu0 %v4302_v57 }
 0x4a5   : > { %2572 = vmatpush1.bf16.msra.mxu1 %v2524_v33  ;;  %v4142_v33 = vld [vmem:[%s6396_s2] sm:$0xff]  }
 0x4a6   : > { %2573 = vmatprep.subr.bf16.mxu1 %v6670_v9  ;;  %3622 = vmatpush3.bf16.msra.mxu0 %v4140_v61 }
 0x4a7   : > { %3623 = vmatprep.subr.bf16.mxu0 %v4302_v57 }
 0x4a9   : > { %2574 = vmatpush1.bf16.msra.mxu1 %v2523_v42 }
 0x4aa   : > { %2575 = vmatprep.subr.bf16.mxu1 %v6670_v9  ;;  %3624 = vmatpush3.bf16.msra.mxu0 %v4141_v40 }
 0x4ab   : > { %3625 = vmatprep.subr.bf16.mxu0 %v4302_v57 }
 0x4ad   : > { %2576 = vmatpush1.bf16.msra.mxu1 %v2522_v59 }
 0x4ae   : > { %2583 = vmatprep.subr.bf16.mxu1 %v6670_v9  ;;  %3626 = vmatpush3.bf16.msra.mxu0 %v4142_v33 }
 0x4f3   : > { %v3888_v53 = vpop.permute.xlu1 %3887  ;;  %v3883_v38 = vpop.permute.xlu0 %3882 }
 0x4f4   : > { %v3885_v52 = vunpack.i.h.bf16 %v3883_v38  ;;  %v3884_v8 = vunpack.i.l.bf16 %v3883_v38  ;;  %v3890_v37 = vunpack.i.h.bf16 %v3888_v53  ;;  %v3889_v17 = vunpack.i.l.bf16 %v3888_v53 }
 0x4f6   : > { %v2512_v46 = vsel %vm2503_vm0, %v3884_v8, %v3885_v52  ;;  %v2510_v49 = vsel %vm2503_vm0, %v3889_v17, %v3890_v37 }
 0x4f7   : > { %v3893_v30 = vpop.permute.xlu0 %3892  ;;  %v2534_v28 = vpack.c.bf16 %v2512_v46, %v2512_v46 }
 0x4f8   : > { %v3895_v31 = vunpack.i.h.bf16 %v3893_v30  ;;  %v3894_v21 = vunpack.i.l.bf16 %v3893_v30 }
 0x4f9   : > { %v2559_v4 = vsel %vm2557_vm2, %v2534_v28, 0 }
 0x4fa   : > { %v2511_v56 = vsel %vm2503_vm0, %v3894_v21, %v3895_v31  ;;  %2584 = vmatpush2.bf16.msra.mxu1 %v2559_v4 }
 0x4fb   : > { %v2533_v34 = vpack.c.bf16 %v2511_v56, %v2510_v49  ;;  %v3898_v14 = vpop.permute.xlu1 %3897  ;;  %v3903_v54 = vpop.permute.xlu0 %3902  ;;  %2585 = vmatprep.subr.bf16.mxu1 %v6670_v9 }
 0x4fc   : > { %v3900_v1 = vunpack.i.h.bf16 %v3898_v14  ;;  %v3899_v23 = vunpack.i.l.bf16 %v3898_v14  ;;  %v3905_v26 = vunpack.i.h.bf16 %v3903_v54  ;;  %v3904_v43 = vunpack.i.l.bf16 %v3903_v54  ;;  %v4145_v54 = vld [vmem:[%s6401_s7 + $0x4] ss:$8 sps:$4 sm:$0xff]  }
 0x4fe   : > { %v2508_v41 = vsel %vm2503_vm0, %v3899_v23, %v3900_v1  ;;  %v2509_v63 = vsel %vm2503_vm0, %v3904_v43, %v3905_v26  ;;  %2586 = vmatpush2.bf16.msra.mxu1 %v2533_v34 }
 0x4ff   : > { %v2532_v2 = vpack.c.bf16 %v2509_v63, %v2508_v41  ;;  %v3908_v19 = vpop.permute.xlu1 %3907  ;;  %v3918_v24 = vpop.permute.xlu0 %3917  ;;  %2587 = vmatprep.subr.bf16.mxu1 %v6670_v9 }
 0x500   : > { %v3910_v62 = vunpack.i.h.bf16 %v3908_v19  ;;  %v3909_v32 = vunpack.i.l.bf16 %v3908_v19  ;;  %v3920_v0 = vunpack.i.h.bf16 %v3918_v24  ;;  %v3919_v44 = vunpack.i.l.bf16 %v3918_v24 }
 0x502   : > { %v2506_v16 = vsel %vm2503_vm0, %v3909_v32, %v3910_v62  ;;  %v2507_v15 = vsel %vm2503_vm0, %v3919_v44, %v3920_v0  ;;  %2588 = vmatpush2.bf16.msra.mxu1 %v2532_v2 }
 0x503   : > { %v2531_v47 = vpack.c.bf16 %v2507_v15, %v2506_v16  ;;  %v3913_v50 = vpop.permute.xlu1 %3912  ;;  %2589 = vmatprep.subr.bf16.mxu1 %v6670_v9 }
 0x504   : > { %v3915_v27 = vunpack.i.h.bf16 %v3913_v50  ;;  %v3914_v51 = vunpack.i.l.bf16 %v3913_v50  ;;  %v3923_v45 = vpop.permute.xlu0 %3922 }
 0x505   : > { %v3925_v5 = vunpack.i.h.bf16 %v3923_v45  ;;  %v3924_v12 = vunpack.i.l.bf16 %v3923_v45 }
 0x506   : > { %v2504_v18 = vsel %vm2503_vm0, %v3914_v51, %v3915_v27  ;;  %2590 = vmatpush2.bf16.msra.mxu1 %v2531_v47 }
 0x507   : > { %v2505_v10 = vsel %vm2503_vm0, %v3924_v12, %v3925_v5  ;;  %2591 = vmatprep.subr.bf16.mxu1 %v6670_v9 }
 0x508   : > { %v2530_v25 = vpack.c.bf16 %v2505_v10, %v2504_v18 }
 0x50a   : > { %2592 = vmatpush2.bf16.msra.mxu1 %v2530_v25 }
 0x50d   : > { %2594 = vmatmul.mubr.bf16.vlgmr.msra.gmra.mxu1 %v4136_v20 }
 0x50e   : > { %2953 = vmatprep.mubr.bf16.mxu1 %v4145_v54 }
 0x510   : > { %v2538_v3 = vpop.permute.xlu1 %2537 }
 0x511   : > { %v2543_v7 = vpop.permute.xlu0 %2542 }
 0x5cd   : > { %v2595_v48 = vpop.f32.mrf.mxu1 }
 0x5ce   : > { %v2596_v6 = vadd.f32 %v2595_v48, %v2538_v3 }
 0x5cf   : > { %v2597_v29 = vpop.f32.mrf.mxu1 }
 0x5d0   : > { %v2602_v58 = vmax.f32 %v2596_v6, 0.0 }
 0x5d1   : > { %v2598_v60 = vpop.f32.mrf.mxu1 }
 0x5d2   : > { %v2599_v39 = vadd.f32 %v2598_v60, %v2543_v7 }
 0x5d3   : > { %v2600_v9 = vpop.f32.mrf.mxu1 }
 0x5d4   : > { %v2603_v11 = vmax.f32 %v2599_v39, 0.0 }
 0x5d6   : > { %v3927_v55 = vpack.i.bf16 %v2603_v11, %v2602_v58 }
 0x5d8   : > { %3928 = vrot.lane.b32.xlu1 %v3927_v55, %s6660_s20 }
 0x64a   : > { %v3929_v42 = vpop.permute.xlu1 %3928 }
 0x64b   : > { %v3931_v59 = vunpack.i.h.bf16 %v3929_v42  ;;  %v3930_v53 = vunpack.i.l.bf16 %v3929_v42 }
 0x64d   : > { %v2613_v38 = vmax.f32 %v2603_v11, %v3931_v59  ;;  %v2612_v52 = vmax.f32 %v2602_v58, %v3930_v53 }
 0x64f   : > { %v3932_v8 = vpack.i.bf16 %v2613_v38, %v2612_v52 }
 0x651   : > { %3933 = vrot.lane.b32.xlu1 %v3932_v8, %s4292_s15 }
 0x6c3   : > { %v3934_v37 = vpop.permute.xlu1 %3933 }
 0x6c4   : > { %v3936_v17 = vunpack.i.h.bf16 %v3934_v37  ;;  %v3935_v46 = vunpack.i.l.bf16 %v3934_v37 }
 0x6c6   : > { %v2623_v30 = vmax.f32 %v2613_v38, %v3936_v17  ;;  %v2622_v28 = vmax.f32 %v2612_v52, %v3935_v46 }
 0x6c8   : > { %v2624_v31 = vpack.c.bf16 %v2623_v30, %v2622_v28 }
 0x6ca   : > { %3628 = vmatmul.mubr.msk.bf16.vlgmr.msra.gmra.mxu0 %vm2658_vm5, %v2624_v31 }
 0x78a   : > { %v6135_v21 = vpop.f32.mrf.mxu0 }
 0x78c   : > { %v3629_v4 = vpop.f32.mrf.mxu0 }
 0x78e   : > { %v6137_v49 = vpop.f32.mrf.mxu0 }
 0x78f   : > { %v3942_v56 = vpack.i.bf16 %v6137_v49, %v6135_v21  ;;  %v2813_v14 = vpack.c.bf16 %v6137_v49, %v6135_v21  ;;  %v4151_v21 = vld [vmem:[%s6401_s7 + $0x20] ss:$8 sps:$4 sm:$0xff]   ;;  %v4152_v49 = vld [vmem:[%s6401_s7 + $0x34] ss:$8 sps:$4 sm:$0xff]  }
 0x790   : > { %v3630_v34 = vpop.f32.mrf.mxu0 }
 0x791   : > { %3943 = vrot.lane.b32.xlu1 %v3942_v56, %s4304_s24  ;;  %3938 = vrot.lane.b32.xlu0 %v3942_v56, %s4291_s30  ;;  %s4307_s30 = smov 118   ;;  %s4310_s24 = smov [#allocation2]  }
 0x795   : > { %3953 = vrot.lane.b32.xlu1 %v3942_v56, %s4305_s27  ;;  %3948 = vrot.lane.b32.xlu0 %v3942_v56, %s6675_s3  ;;  %s4308_s27 = smov 119  }
 0x799   : > { %3963 = vrot.lane.b32.xlu1 %v3942_v56, %s4306_s23  ;;  %3958 = vrot.lane.b32.xlu0 %v3942_v56, %s6676_s21 }
 0x79d   : > { %3973 = vrot.lane.b32.xlu1 %v3942_v56, %s6673_s0  ;;  %3968 = vrot.lane.b32.xlu0 %v3942_v56, %s4292_s15  ;;  %s4309_s0 = smov 120  }
 0x7a1   : > { %3983 = vrot.lane.b32.xlu1 %v3942_v56, %s6672_s4  ;;  %3978 = vrot.lane.b32.xlu0 %v3942_v56, %s6677_s22  ;;  %s3520_s4 = sshll.u32 %s4402_s29, 4 }
 0x7a5   : > { %3993 = vrot.lane.b32.xlu1 %v3942_v56, %s6671_s17  ;;  %3988 = vrot.lane.b32.xlu0 %v3942_v56, %s4307_s30  ;;  %s6353_s30 = scalar_lea.hbm %s6407_s13, %s3520_s4 }
 0x7a9   : > { %4003 = vrot.lane.b32.xlu1 %v3942_v56, %s6660_s20  ;;  %3998 = vrot.lane.b32.xlu0 %v3942_v56, %s4308_s27  ;;  %s429_s20 = sand.u32 1, %s4230_s26   ;;  %s4182_s27 = sshll.u32 %s4310_s24, 4  ;;  %s4183_s27 = int_to_ptr.vmem [resolvable:$false] %s4182_s27 }
 0x7aa   : > { %s430_s3 = scalar_lea.vmem [#allocation2], %s429_s20  ;;  %s3321_s29 = scalar_lea.sflag [#allocation3], %s429_s20 }
 0x7ab   : > { %s3333_s23 = sshll.u32 %s430_s3, 4  ;;  %s6355_s23 = int_to_ptr.vmem [resolvable:$true] %s3333_s23 }
 0x7ac   : > { %s4178_s16 = scalar_lea.vmem %s6355_s23, 16  ;;  %p4185_p0 = scmp.lt.s32.totalorder %s6355_s23, %s4183_s27 }
 0x7ad   : > { %4008 = vrot.lane.b32.xlu0 %v3942_v56, %s4309_s0  ;;  %p4179_p11 = scmp.ne.s32.totalorder %s6355_s23, %s4178_s16  ;;  %s4184_s0 = scalar_lea.vmem %s4183_s27, 32 }
 0x7ae   : > { %p4186_p1 = scmp.lt.s32.totalorder %s4184_s0, %s4178_s16 }
 0x7af   : > { %p4180_p12 = pnand %p4179_p11, %p4419_p5 }
 0x7b0   : > { %p4187_p2 = por %p4186_p1, %p4185_p0 }
 0x7b1   : > { %p4181_p13 = pneg %p4180_p12 }
 0x7b3   : > { %p4188_p3 = pnand %p4187_p2, %p4181_p13 }
 0x803   : > { %v3944_v1 = vpop.permute.xlu1 %3943  ;;  %v3939_v23 = vpop.permute.xlu0 %3938 }
 0x804   : > { %v3946_v26 = vunpack.i.h.bf16 %v3944_v1  ;;  %v3945_v43 = vunpack.i.l.bf16 %v3944_v1  ;;  %v3941_v41 = vunpack.i.h.bf16 %v3939_v23  ;;  %v3940_v63 = vunpack.i.l.bf16 %v3939_v23  ;;  %v4143_v1 = vld [vmem:[%s6401_s7] ss:$8 sps:$4 sm:$0xff]   ;;  %v4146_v23 = vld [vmem:[%s6401_s7 + $0x14] ss:$8 sps:$4 sm:$0xff]  }
 0x806   : > { %v2820_v2 = vpack.c.bf16 %v3946_v26, %v3945_v43  ;;  %v2828_v19 = vpack.c.bf16 %v3941_v41, %v3940_v63  ;;  %v4148_v26 = vld [vmem:[%s6401_s7 + $0x10] ss:$8 sps:$4 sm:$0xff]   ;;  %v4149_v43 = vld [vmem:[%s6401_s7 + $0x24] ss:$8 sps:$4 sm:$0xff]   ;;  %v4157_v63 = vld [vmem:[%s6401_s7 + $0x40] ss:$8 sps:$4 sm:$0xff]  }
 0x807   : > { %v3954_v24 = vpop.permute.xlu1 %3953  ;;  %v3949_v62 = vpop.permute.xlu0 %3948  ;;  %v4155_v41 = vld [vmem:[%s6401_s7 + $0x44] ss:$8 sps:$4 sm:$0xff]  }
 0x808   : > { %v3956_v32 = vunpack.i.h.bf16 %v3954_v24  ;;  %v3955_v0 = vunpack.i.l.bf16 %v3954_v24  ;;  %v3951_v44 = vunpack.i.h.bf16 %v3949_v62  ;;  %v3950_v16 = vunpack.i.l.bf16 %v3949_v62  ;;  %3530 = vmatprep.subr.bf16.mxu1 %v2828_v19  ;;  %v4160_v19 = vld [vmem:[%s6401_s7 + $0x50] ss:$8 sps:$4 sm:$0xff]   ;;  %v4161_v24 = vld [vmem:[%s6401_s7 + $0x64] ss:$8 sps:$4 sm:$0xff]  }
 0x809   : > { %3531 = vmatpush3.bf16.msra.mxu1 %v2820_v2  ;;  %v4158_v2 = vld [vmem:[%s6401_s7 + $0x54] ss:$8 sps:$4 sm:$0xff]  }
 0x80a   : > { %v2819_v15 = vpack.c.bf16 %v3956_v32, %v3955_v0  ;;  %v2827_v47 = vpack.c.bf16 %v3951_v44, %v3950_v16  ;;  %v2812_v62 = vld [vmem:[%s6401_s7 + $0x70] sm:$0xff]  ;;  %v4163_v32 = vld [vmem:[%s6401_s7 + $0x60] ss:$8 sps:$4 sm:$0xff]  }
 0x80b   : > { %v3964_v50 = vpop.permute.xlu1 %3963  ;;  %v3959_v27 = vpop.permute.xlu0 %3958  ;;  %v3500_v0 = vcombine.high %v2812_v62, %v2812_v62  ;;  %v3499_v44 = vcombine.low %v2812_v62, %v2812_v62  ;;  %v4166_v16 = vld [vmem:[%s6403_s9] sm:$0xff]  }
 0x80c   : > { %v3966_v51 = vunpack.i.h.bf16 %v3964_v50  ;;  %v3965_v45 = vunpack.i.l.bf16 %v3964_v50  ;;  %v3961_v5 = vunpack.i.h.bf16 %v3959_v27  ;;  %v3960_v12 = vunpack.i.l.bf16 %v3959_v27  ;;  %3532 = vmatprep.subr.bf16.mxu1 %v2827_v47  ;;  %3647 = vmatprep.mubr.msk.bf16.mxu0 %vm3090_vm6, %v4166_v16  ;;  %v2829_v27 = vld [vmem:[%s6402_s8] sm:$0xff] }
 0x80d   : > { %3533 = vmatpush3.bf16.msra.mxu1 %v2819_v15 }
 0x80e   : > { %v2818_v18 = vpack.c.bf16 %v3966_v51, %v3965_v45  ;;  %v2826_v10 = vpack.c.bf16 %v3961_v5, %v3960_v12  ;;  %v2830_v45 = vld [vmem:[%s6402_s8 + $0x8] sm:$0xff] }
 0x80f   : > { %v3974_v25 = vpop.permute.xlu1 %3973  ;;  %v3969_v20 = vpop.permute.xlu0 %3968 }
 0x810   : > { %v3976_v48 = vunpack.i.h.bf16 %v3974_v25  ;;  %v3975_v3 = vunpack.i.l.bf16 %v3974_v25  ;;  %v3971_v29 = vunpack.i.h.bf16 %v3969_v20  ;;  %v3970_v7 = vunpack.i.l.bf16 %v3969_v20  ;;  %3534 = vmatprep.subr.bf16.mxu1 %v2826_v10 }
 0x811   : > { %3535 = vmatpush3.bf16.msra.mxu1 %v2818_v18 }
 0x812   : > { %v2817_v6 = vpack.c.bf16 %v3976_v48, %v3975_v3  ;;  %v2825_v60 = vpack.c.bf16 %v3971_v29, %v3970_v7  ;;  %v2831_v7 = vld [vmem:[%s6402_s8 + $0x10] sm:$0xff] }
 0x813   : > { %v3984_v22 = vpop.permute.xlu1 %3983  ;;  %v3979_v39 = vpop.permute.xlu0 %3978 }
 0x814   : > { %v3986_v9 = vunpack.i.h.bf16 %v3984_v22  ;;  %v3985_v35 = vunpack.i.l.bf16 %v3984_v22  ;;  %v3981_v58 = vunpack.i.h.bf16 %v3979_v39  ;;  %v3980_v11 = vunpack.i.l.bf16 %v3979_v39  ;;  %3536 = vmatprep.subr.bf16.mxu1 %v2825_v60  ;;  %v2832_v22 = vld [vmem:[%s6402_s8 + $0x18] sm:$0xff] }
 0x815   : > { %3537 = vmatpush3.bf16.msra.mxu1 %v2817_v6 }
 0x816   : > { %v2816_v36 = vpack.c.bf16 %v3986_v9, %v3985_v35  ;;  %v2824_v55 = vpack.c.bf16 %v3981_v58, %v3980_v11 }
 0x817   : > { %v3994_v13 = vpop.permute.xlu1 %3993  ;;  %v3989_v61 = vpop.permute.xlu0 %3988 }
 0x818   : > { %v3996_v40 = vunpack.i.h.bf16 %v3994_v13  ;;  %v3995_v33 = vunpack.i.l.bf16 %v3994_v13  ;;  %v3991_v42 = vunpack.i.h.bf16 %v3989_v61  ;;  %v3990_v59 = vunpack.i.l.bf16 %v3989_v61  ;;  %3538 = vmatprep.subr.bf16.mxu1 %v2824_v55 }
 0x819   : > { %3539 = vmatpush3.bf16.msra.mxu1 %v2816_v36 }
 0x81a   : > { %v2815_v53 = vpack.c.bf16 %v3996_v40, %v3995_v33  ;;  %v2823_v38 = vpack.c.bf16 %v3991_v42, %v3990_v59 }
 0x81b   : > { %v4004_v52 = vpop.permute.xlu1 %4003  ;;  %v3999_v8 = vpop.permute.xlu0 %3998 }
 0x81c   : > { %v4006_v37 = vunpack.i.h.bf16 %v4004_v52  ;;  %v4005_v17 = vunpack.i.l.bf16 %v4004_v52  ;;  %v4001_v46 = vunpack.i.h.bf16 %v3999_v8  ;;  %v4000_v30 = vunpack.i.l.bf16 %v3999_v8  ;;  %3540 = vmatprep.subr.bf16.mxu1 %v2823_v38 }
 0x81d   : > { %3541 = vmatpush3.bf16.msra.mxu1 %v2815_v53 }
 0x81e   : > { %v2814_v28 = vpack.c.bf16 %v4006_v37, %v4005_v17  ;;  %v2822_v31 = vpack.c.bf16 %v4001_v46, %v4000_v30 }
 0x81f   : > { %v4009_v4 = vpop.permute.xlu0 %4008 }
 0x820   : > { %v4011_v56 = vunpack.i.h.bf16 %v4009_v4  ;;  %v4010_v34 = vunpack.i.l.bf16 %v4009_v4  ;;  %3542 = vmatprep.subr.bf16.mxu1 %v2822_v31 }
 0x821   : > { %3543 = vmatpush3.bf16.msra.mxu1 %v2814_v28 }
 0x822   : > { %v2821_v54 = vpack.c.bf16 %v4011_v56, %v4010_v34 }
 0x824   : > { %3544 = vmatprep.subr.bf16.mxu1 %v2821_v54 }
 0x825   : > { %3545 = vmatpush3.bf16.msra.mxu1 %v2813_v14  ;;  %v4154_v14 = vld [vmem:[%s6401_s7 + $0x30] ss:$8 sps:$4 sm:$0xff]  }
 0x828   : > { %2954 = vmatmul.mubr.bf16.vlgmr.msra.gmra.mxu1 %v4143_v1 }
 0x829   : > { %2961 = vmatprep.mubr.bf16.mxu1 %v4146_v23  ;;  %v2842_v23 = vld [vmem:[%s6402_s8 + $0x68] sm:$0xff] }
 0x830   : > { %2962 = vmatmul.mubr.bf16.gmra.mxu1 %v4148_v26 }
 0x831   : > { %2969 = vmatprep.mubr.bf16.mxu1 %v4149_v43 }
 0x838   : > { %2970 = vmatmul.mubr.bf16.gmra.mxu1 %v4151_v21  ;;  %v2841_v21 = vld [vmem:[%s6402_s8 + $0x60] sm:$0xff] }
 0x839   : > { %2977 = vmatprep.mubr.bf16.mxu1 %v4152_v49  ;;  %v2843_v49 = vld [vmem:[%s6402_s8 + $0x70] sm:$0xff] }
 0x840   : > { %2978 = vmatmul.mubr.bf16.gmra.mxu1 %v4154_v14 }
 0x841   : > { %2985 = vmatprep.mubr.bf16.mxu1 %v4155_v41 }
 0x848   : > { %2986 = vmatmul.mubr.bf16.gmra.mxu1 %v4157_v63 }
 0x849   : > { %2993 = vmatprep.mubr.bf16.mxu1 %v4158_v2 }
 0x850   : > { %2994 = vmatmul.mubr.bf16.gmra.mxu1 %v4160_v19  ;;  %v2840_v19 = vld [vmem:[%s6402_s8 + $0x58] sm:$0xff] }
 0x851   : > { %3001 = vmatprep.mubr.bf16.mxu1 %v4161_v24 }
 0x858   : > { %3002 = vmatmul.mubr.bf16.gmra.mxu1 %v4163_v32 }
 0x859   : > { %3009 = vmatprep.mubr.bf16.mxu1 %v3500_v0 }
 0x860   : > { %3010 = vmatmul.mubr.bf16.gmra.mxu1 %v3499_v44  ;;  %v2839_v44 = vld [vmem:[%s6402_s8 + $0x50] sm:$0xff] }
 0x8e8   : > { %v3546_v15 = vpop.f32.mrf.mxu1 }
 0x8ea   : > { %v3547_v47 = vpop.f32.mrf.mxu1 }
 0x8eb   : > { %v3548_v50 = vadd.f32 %v3547_v47, %v3546_v15 }
 0x8ec   : > { %v3549_v51 = vpop.f32.mrf.mxu1 }
 0x8ed   : > { %v2956_v12 = vadd.f32 %v3548_v50, %v2829_v27 }
 0x8ee   : > { %v3550_v5 = vpop.f32.mrf.mxu1 }
 0x8ef   : > { %v3551_v18 = vadd.f32 %v3550_v5, %v3549_v51  ;;  %v3017_v48 = vmax.f32 %v2956_v12, 0.0  ;;  %v2838_v51 = vld [vmem:[%s6402_s8 + $0x48] sm:$0xff] }
 0x8f0   : > { %v3552_v10 = vpop.f32.mrf.mxu1 }
 0x8f1   : > { %v2959_v25 = vadd.f32 %v3551_v18, %v2830_v45 }
 0x8f2   : > { %v3553_v20 = vpop.f32.mrf.mxu1 }
 0x8f3   : > { %v3018_v3 = vmax.f32 %v2959_v25, 0.0  ;;  %v3554_v29 = vadd.f32 %v3553_v20, %v3552_v10  ;;  %v2837_v25 = vld [vmem:[%s6402_s8 + $0x40] sm:$0xff] }
 0x8f4   : > { %v3555_v6 = vpop.f32.mrf.mxu1 }
 0x8f5   : > { %v6213_v60 = vpack.c.bf16 %v3018_v3, %v3017_v48  ;;  %v2964_v9 = vadd.f32 %v3554_v29, %v2831_v7  ;;  %v2836_v7 = vld [vmem:[%s6402_s8 + $0x38] sm:$0xff] }
 0x8f6   : > { %v3556_v39 = vpop.f32.mrf.mxu1 }
 0x8f7   : > { %v3557_v35 = vadd.f32 %v3556_v39, %v3555_v6  ;;  %v3019_v55 = vmax.f32 %v2964_v9, 0.0  ;;  %v2835_v9 = vld [vmem:[%s6402_s8 + $0x30] sm:$0xff] }
 0x8f8   : > { %v6218_v58 = vpop.f32.mrf.mxu1 }
 0x8f9   : > { %v2967_v11 = vadd.f32 %v3557_v35, %v2832_v22 }
 0x8fa   : > { %v6220_v36 = vpop.f32.mrf.mxu1 }
 0x8fb   : > { %v3020_v13 = vmax.f32 %v2967_v11, 0.0 }
 0x8fc   : > { %v3561_v61 = vpop.f32.mrf.mxu1 }
 0x8fd   : > { %v6222_v40 = vpack.c.bf16 %v3020_v13, %v3019_v55 }
 0x8fe   : > { %v3562_v33 = vpop.f32.mrf.mxu1 }
 0x8ff   : > { %v3563_v35 = vadd.f32 %v3562_v33, %v3561_v61 }
 0x900   : > { %v3564_v42 = vpop.f32.mrf.mxu1 }
 0x902   : > { %v3565_v59 = vpop.f32.mrf.mxu1 }
 0x903   : > { %v3566_v6 = vadd.f32 %v3565_v59, %v3564_v42 }
 0x904   : > { %v3567_v53 = vpop.f32.mrf.mxu1 }
 0x905   : > { %v2980_v42 = vadd.f32 %v3566_v6, %v2835_v9 }
 0x906   : > { %v3568_v38 = vpop.f32.mrf.mxu1 }
 0x907   : > { %v3569_v10 = vadd.f32 %v3568_v38, %v3567_v53  ;;  %v2834_v53 = vld [vmem:[%s6402_s8 + $0x28] sm:$0xff]  ;;  %v3560_v38 = vadd.f32 %v6220_v36, %v6218_v58 }
 0x908   : > { %v3570_v52 = vpop.f32.mrf.mxu1  ;;  %v4167_v36 = vld [vmem:[%s6403_s9 + $0x8] sm:$0xff]  }
 0x909   : > { %v2983_v11 = vadd.f32 %v3569_v10, %v2836_v7 }
 0x90a   : > { %v3571_v8 = vpop.f32.mrf.mxu1 }
 0x90b   : > { %v3572_v45 = vadd.f32 %v3571_v8, %v3570_v52  ;;  %v2833_v52 = vld [vmem:[%s6402_s8 + $0x20] sm:$0xff]  ;;  %v2975_v8 = vadd.f32 %v3563_v35, %v2834_v53  ;;  %v3024_v61 = vmax.f32 %v2983_v11, 0.0 }
 0x90c   : > { %v3573_v37 = vpop.f32.mrf.mxu1  ;;  %v3059_v35 = vld [vmem:[%s6404_s10 + $0x40] sm:$0xff] }
 0x90d   : > { %v2988_v22 = vadd.f32 %v3572_v45, %v2837_v25  ;;  %v3058_v45 = vld [vmem:[%s6404_s10 + $0x38] sm:$0xff]  ;;  %v3057_v25 = vld [vmem:[%s6404_s10 + $0x30] sm:$0xff] }
 0x90e   : > { %v3574_v17 = vpop.f32.mrf.mxu1 }
 0x90f   : > { %v3575_v15 = vadd.f32 %v3574_v17, %v3573_v37  ;;  %v3025_v59 = vmax.f32 %v2988_v22, 0.0  ;;  %v2972_v37 = vadd.f32 %v3560_v38, %v2833_v52  ;;  %v3023_v17 = vmax.f32 %v2980_v42, 0.0  ;;  %v3060_v38 = vld [vmem:[%s6404_s10 + $0x48] sm:$0xff] }
 0x910   : > { %v3576_v46 = vpop.f32.mrf.mxu1 }
 0x911   : > { %v2991_v20 = vadd.f32 %v3575_v15, %v2838_v51 }
 0x912   : > { %v3577_v30 = vpop.f32.mrf.mxu1 }
 0x913   : > { %v3578_v62 = vadd.f32 %v3577_v30, %v3576_v46  ;;  %v3026_v55 = vmax.f32 %v2991_v20, 0.0  ;;  %v3022_v46 = vmax.f32 %v2975_v8, 0.0  ;;  %v3046_v30 = vpack.c.bf16 %v3024_v61, %v3023_v17 }
 0x914   : > { %v3579_v28 = vpop.f32.mrf.mxu1 }
 0x915   : > { %v2996_v5 = vadd.f32 %v3578_v62, %v2839_v44  ;;  %v3047_v33 = vpack.c.bf16 %v3026_v55, %v3025_v59 }
 0x916   : > { %v3580_v31 = vpop.f32.mrf.mxu1 }
 0x917   : > { %v3581_v41 = vadd.f32 %v3580_v31, %v3579_v28  ;;  %v3027_v39 = vmax.f32 %v2996_v5, 0.0  ;;  %v3021_v28 = vmax.f32 %v2972_v37, 0.0  ;;  %v4168_v31 = vld [vmem:[%s6403_s9 + $0x10] sm:$0xff]  }
 0x918   : > { %v3582_v4 = vpop.f32.mrf.mxu1 }
 0x919   : > { %v2999_v47 = vadd.f32 %v3581_v41, %v2840_v19  ;;  %v3045_v58 = vpack.c.bf16 %v3022_v46, %v3021_v28  ;;  %v3054_v41 = vld [vmem:[%s6404_s10 + $0x18] sm:$0xff] }
 0x91a   : > { %v3583_v56 = vpop.f32.mrf.mxu1 }
 0x91b   : > { %v3584_v43 = vadd.f32 %v3583_v56, %v3582_v4  ;;  %v3028_v48 = vmax.f32 %v2999_v47, 0.0  ;;  %v4170_v4 = vld [vmem:[%s6403_s9 + $0x20] sm:$0xff]   ;;  %v4172_v56 = vld [vmem:[%s6405_s11 + $0x28] ss:$0 sps:$4 sm:$0x33]  }
 0x91c   : > { %v3585_v34 = vpop.f32.mrf.mxu1 }
 0x91d   : > { %v3004_v32 = vadd.f32 %v3584_v43, %v2841_v21  ;;  %v3048_v13 = vpack.c.bf16 %v3028_v48, %v3027_v39  ;;  %v4177_v43 = vld [vmem:[%s6405_s11] sm:$0xff]  }
 0x91e   : > { %v3586_v54 = vpop.f32.mrf.mxu1 }
 0x91f   : > { %v3587_v1 = vadd.f32 %v3586_v54, %v3585_v34  ;;  %v3029_v12 = vmax.f32 %v3004_v32, 0.0  ;;  %v3275_v34 = vsel %vm2252_vm9, %v4172_v56, 0  ;;  %v4173_v54 = vld [vmem:[%s6405_s11 + $0x20] sm:$0xff]  }
 0x920   : > { %v3588_v26 = vpop.f32.mrf.mxu1 }
 0x921   : > { %v3007_v63 = vadd.f32 %v3587_v1, %v2842_v23  ;;  %v4174_v1 = vld [vmem:[%s6405_s11 + $0x18] sm:$0xff]   ;;  %v4175_v23 = vld [vmem:[%s6405_s11 + $0x10] sm:$0xff]  }
 0x922   : > { %v3589_v14 = vpop.f32.mrf.mxu1 }
 0x923   : > { %v3590_v2 = vadd.f32 %v3589_v14, %v3588_v26  ;;  %v3030_v50 = vmax.f32 %v3007_v63, 0.0  ;;  %v4176_v26 = vld [vmem:[%s6405_s11 + $0x8] sm:$0xff]   ;;  %v3051_v14 = vld [vmem:[%s6404_s10] sm:$0xff] }
 0x924   : > { %v3591_v24 = vpop.f32.mrf.mxu1 }
 0x925   : > { %v3012_v0 = vadd.f32 %v3590_v2, %v2843_v49  ;;  %v3049_v29 = vpack.c.bf16 %v3030_v50, %v3029_v12  ;;  %v3052_v2 = vld [vmem:[%s6404_s10 + $0x8] sm:$0xff]  ;;  %v3055_v50 = vld [vmem:[%s6404_s10 + $0x20] sm:$0xff] }
 0x926   : > { %v3592_v16 = vpop.f32.mrf.mxu1  ;;  %v3056_v12 = vld [vmem:[%s6404_s10 + $0x28] sm:$0xff] }
 0x927   : > { %v3031_v27 = vmax.f32 %v3012_v0, 0.0 }
 0x929   : > { %v3050_v18 = vpack.c.bf16 %v3031_v27, %v3031_v27 }
 0x92b   : > { %3675 = vmatprep.subr.msk.bf16.mxu0 %vm2557_vm2, %v3050_v18  ;;  %v3110_v3 = vsel %vm2557_vm2, %v3050_v18, 0 }
 0x92c   : > { %3632 = vmatpush3.bf16.msra.mxu0 %v3110_v3 }
 0x92d   : > { %3633 = vmatprep.subr.bf16.mxu0 %v3049_v29 }
 0x930   : > { %3634 = vmatpush3.bf16.msra.mxu0 %v3049_v29 }
 0x931   : > { %3635 = vmatprep.subr.bf16.mxu0 %v3048_v13 }
 0x934   : > { %3636 = vmatpush3.bf16.msra.mxu0 %v3048_v13  ;;  %v3061_v13 = vld [vmem:[%s6404_s10 + $0x50] sm:$0xf] }
 0x935   : > { %3637 = vmatprep.subr.bf16.mxu0 %v3047_v33 }
 0x938   : > { %3638 = vmatpush3.bf16.msra.mxu0 %v3047_v33 }
 0x939   : > { %3639 = vmatprep.subr.bf16.mxu0 %v3046_v30 }
 0x93c   : > { %3640 = vmatpush3.bf16.msra.mxu0 %v3046_v30 }
 0x93d   : > { %3641 = vmatprep.subr.bf16.mxu0 %v3045_v58 }
 0x940   : > { %3642 = vmatpush3.bf16.msra.mxu0 %v3045_v58 }
 0x941   : > { %3643 = vmatprep.subr.bf16.mxu0 %v6222_v40 }
 0x944   : > { %3644 = vmatpush3.bf16.msra.mxu0 %v6222_v40  ;;  %v4169_v40 = vld [vmem:[%s6403_s9 + $0x18] sm:$0xff]  }
 0x945   : > { %3645 = vmatprep.subr.bf16.mxu0 %v6213_v60 }
 0x948   : > { %3646 = vmatpush3.bf16.msra.mxu0 %v6213_v60  ;;  %v4171_v60 = vld [vmem:[%s6403_s9 + $0x28] ss:$0 sps:$4 sm:$0x33]  }
 0x949   : > { %3659 = vmatprep.subr.bf16.mxu0 %v4302_v57 }
 0x94b   : > { %3648 = vmatmul.mubr.msk.bf16.vlgmr.msra.gmra.mxu0 %vm3090_vm6, %v4167_v36  ;;  %v3220_v36 = vld [vmem:[%s6406_s12] sm:$0x1] }
 0x94c   : > { %3651 = vmatprep.mubr.msk.bf16.mxu0 %vm3090_vm6, %v4168_v31  ;;  %3660 = vmatpush3.bf16.msra.mxu0 %v3275_v34 }
 0x94d   : > { %3661 = vmatprep.subr.bf16.mxu0 %v4302_v57 }
 0x950   : > { %3662 = vmatpush3.bf16.msra.mxu0 %v4173_v54 }
 0x951   : > { %3663 = vmatprep.subr.bf16.mxu0 %v4302_v57 }
 0x953   : > { %3652 = vmatmul.mubr.msk.bf16.gmra.mxu0 %vm3090_vm6, %v4169_v40 }
 0x954   : > { %3655 = vmatprep.mubr.msk.bf16.mxu0 %vm3090_vm6, %v4170_v4  ;;  %3664 = vmatpush3.bf16.msra.mxu0 %v4174_v1 }
 0x955   : > { %3665 = vmatprep.subr.bf16.mxu0 %v4302_v57 }
 0x958   : > { %3666 = vmatpush3.bf16.msra.mxu0 %v4175_v23 }
 0x959   : > { %3667 = vmatprep.subr.bf16.mxu0 %v4302_v57 }
 0x95b   : > { %3656 = vmatmul.mubr.msk.bf16.gmra.mxu0 %vm3090_vm6, %v4171_v60 }
 0x95c   : > { %3671 = vmatprep.mubr.msk.bf16.mxu0 %vm4303_vm3, %v4302_v57  ;;  %3668 = vmatpush3.bf16.msra.mxu0 %v4176_v26 }
 0x95d   : > { %3669 = vmatprep.subr.bf16.mxu0 %v4302_v57  ;;  %v3053_v57 = vld [vmem:[%s6404_s10 + $0x10] sm:$0xff] }
 0x960   : > { %3670 = vmatpush3.bf16.msra.mxu0 %v4177_v43 }
 0xa0b   : > { %v3649_v21 = vpop.f32.mrf.mxu0 }
 0xa0c   : > { %v3155_v44 = vadd.f32 %v3649_v21, %v3053_v57 }
 0xa0d   : > { %v3146_v49 = vpop.f32.mrf.mxu0 }
 0xa0e   : > { %v3147_v19 = vadd.f32 %v3146_v49, %v3051_v14  ;;  %v3194_v18 = vmax.f32 %v3155_v44, 0.0 }
 0xa0f   : > { %v3650_v63 = vpop.f32.mrf.mxu0 }
 0xa10   : > { %v3158_v62 = vadd.f32 %v3650_v63, %v3054_v41  ;;  %v3192_v16 = vmax.f32 %v3147_v19, 0.0 }
 0xa11   : > { %v3149_v24 = vpop.f32.mrf.mxu0 }
 0xa12   : > { %v3150_v32 = vadd.f32 %v3149_v24, %v3052_v2  ;;  %v3195_v27 = vmax.f32 %v3158_v62, 0.0 }
 0xa13   : > { %v3653_v0 = vpop.f32.mrf.mxu0 }
 0xa14   : > { %v3193_v15 = vmax.f32 %v3150_v32, 0.0  ;;  %v3204_v48 = vpack.c.bf16 %v3195_v27, %v3194_v18  ;;  %v3171_v6 = vadd.f32 %v3653_v0, %v3057_v25 }
 0xa15   : > { %v3162_v47 = vpop.f32.mrf.mxu0 }
 0xa16   : > { %v3203_v51 = vpack.c.bf16 %v3193_v15, %v3192_v16  ;;  %v3163_v10 = vadd.f32 %v3162_v47, %v3055_v50  ;;  %v3198_v42 = vmax.f32 %v3171_v6, 0.0 }
 0xa17   : > { %v3654_v5 = vpop.f32.mrf.mxu0 }
 0xa18   : > { %3221 = vxpose.xlu1.c.b16.start [1/6] (short) (narrow) %v3203_v51, 16  ;;  %v3174_v3 = vadd.f32 %v3654_v5, %v3058_v45  ;;  %v3196_v22 = vmax.f32 %v3163_v10, 0.0 }
 0xa19   : > { %v3165_v20 = vpop.f32.mrf.mxu0 }
 0xa1a   : > { %v3166_v29 = vadd.f32 %v3165_v20, %v3056_v12  ;;  %v3199_v11 = vmax.f32 %v3174_v3, 0.0 }
 0xa1b   : > { %v3657_v7 = vpop.f32.mrf.mxu0 }
 0xa1c   : > { %v3197_v39 = vmax.f32 %v3166_v29, 0.0  ;;  %3222 = vxpose.xlu1.c.b16.cont [2/6] (short) (narrow) %v3204_v48, 16  ;;  %v3206_v8 = vpack.c.bf16 %v3199_v11, %v3198_v42  ;;  %v3187_v61 = vadd.f32 %v3657_v7, %v3061_v13 }
 0xa1d   : > { %v3178_v9 = vpop.f32.mrf.mxu0 }
 0xa1e   : > { %v3205_v55 = vpack.c.bf16 %v3197_v39, %v3196_v22  ;;  %v3179_v59 = vadd.f32 %v3178_v9, %v3059_v35  ;;  %v3202_v46 = vmax.f32 %v3187_v61, 0.0 }
 0xa1f   : > { %v3658_v53 = vpop.f32.mrf.mxu0 }
 0xa20   : > { %3223 = vxpose.xlu1.c.b16.cont [3/6] (short) (narrow) %v3205_v55, 16  ;;  %v3200_v37 = vmax.f32 %v3179_v59, 0.0  ;;  %v3208_v28 = vpack.c.bf16 %v3202_v46, %v3202_v46 }
 0xa21   : > { %v3181_v52 = vpop.f32.mrf.mxu0 }
 0xa22   : > { %v3182_v33 = vadd.f32 %v3181_v52, %v3060_v38 }
 0xa24   : > { %v3201_v17 = vmax.f32 %v3182_v33, 0.0  ;;  %3224 = vxpose.xlu1.c.b16.cont [4/6] (short) (narrow) %v3206_v8, 16 }
 0xa26   : > { %v3207_v30 = vpack.c.bf16 %v3201_v17, %v3200_v37 }
 0xa28   : > { %3225 = vxpose.xlu1.c.b16.cont [5/6] (short) (narrow) %v3207_v30, 16 }
 0xa2c   : > { %3226 = vxpose.xlu1.c.b16.end [6/6] (short) (narrow) %v3208_v28, 16 }
 0xa7a   : > { %v3229_v58 = vpop.trf.xlu1 }
 0xa7b   : > { %3672 = vmatmul.mubr.msk.bf16.vlgmr.msra.gmra.mxu0 %vm3270_vm7, %v3229_v58 }
 0xb3b   : > { %v3311_v31 = vpop.f32.mrf.mxu0 }
 0xb3c   : > { %v3312_v40 = vadd.f32 %v3311_v31, %v3220_v36 }
 0xb3d   : > { %v3673_v4 = vpop.f32.mrf.mxu0 }
 0xb3e   : > { %v3318_v60 = vsel %vm3317_vm8, %v3312_v40, 0.0 }
 0xb3f   : > { %v3314_v56 = vpop.f32.mrf.mxu0  ;;  %3319 = vst [vmem:[%s430_s3] sm:$0x1] %v3318_v60 }
 0xb40   : > { %4191 = shalt.err (!%p4188_p3)
}
 0xb41   : > { %s4192_s15 = scalar_lea.hbm %s6353_s30, 16  ;;  %s4196_s4 = scalar_lea.hbm %s6407_s13, 32 }
 0xb42   : > { %p4193_p4 = scmp.ne.s32.totalorder %s6353_s30, %s4192_s15  ;;  %p4197_p9 = scmp.lt.s32.totalorder %s6353_s30, %s6407_s13 }
 0xb43   : > { %p4198_p10 = scmp.lt.s32.totalorder %s4196_s4, %s4192_s15 }
 0xb44   : > { %p4194_p7 = pnand %p4193_p4, %p4419_p5 }
 0xb45   : > { %p4199_p11 = por %p4198_p10, %p4197_p9 }
 0xb46   : > { %p4195_p8 = pneg %p4194_p7 }
 0xb48   : > { %p4200_p12 = pnand %p4199_p11, %p4195_p8 }
 0xb4a   : > { %4203 = shalt.err (!%p4200_p12)
}
 0xb4b   : > { %3677 = dma.vmem_to_hbm [thread:$0]  (%p4419_p5), %s6355_s23, 16, %s6353_s30, %s3321_s29   ;;  %v3674_v34 = vpop.f32.mrf.mxu0 }
 0xb4c PF: > { %p3683_p13 = scmp.ge.s32.totalorder %s4238_s28, 2  ;;  %s3345_s22 = sand.u32 1, %s4226_s25  }
 0xb4d   : > { %s3346_s16 = scalar_lea.sflag [#allocation3], %s3345_s22 }
 0xb4e   : > { %p3680_p0 = pnand %p3683_p13, %p4423_p6 }
 0xb50   : > { %p3681_p1 = pneg %p3680_p0 }
 0xb52   : > { %4221 = dma.done.wait (%p3681_p1), %s3346_s16, 16  }
 0xb53   : > { %4223 = vsyncadd (%p3681_p1), %s3346_s16, 4294967280  ;;  %s6678_s24 = sld [smem:[#allocation5_spill]]  ;;  %p23_p2 = scmp.ge.s32.totalorder %s4406_s14, 4  }
 0xb54   : > { %s6679_s27 = sld [smem:[#allocation6_spill]]  ;;  %s6680_s25 = smov %s4230_s26 }
 0xb55   : > { %s6682_s28 = smov %s4406_s14  ;;  %25 = sbr.rel (!%p23_p2) target bundleno = 7 (0x7), region = 107 }
 0xb59   : > { %s6681_s26 = smov %s6678_s24 }
 0xb5a   :  { %3350 = vsyncpa [#allocation3], 1 }
 0xb5b   :  { %3352 = vsyncpa [#allocation3 + $0x1], 1 }

</bundles_post_ra>
